<compile_context>
chip_gen: v5e
topology: v5e:2x2
jax: 0.10.0
libtpu: 0.0.40
codegen_flags: <defaults>
</compile_context>

<pallas_src>
import jax
import jax.numpy as jnp
from jax.experimental import pallas as pl
from jax.experimental.pallas import tpu as pltpu

# ---------------- sizes (small, consistent with the module defaults) ----------------
BATCH = 2
IMG_C, IMG_H, IMG_W = 3, 44, 44                    # NCHW input image
PATCH = 4
NUM_PATCH = (IMG_H // PATCH) * (IMG_W // PATCH)    # 11 * 11 = 121 (SpatialEmb num_patch)
PATCH_IN = IMG_C * PATCH * PATCH                   # 48
PATCH_REPR = 128                                   # patch_repr_dim
SPATIAL_EMB = 128                                  # spatial_emb (proj_dim)
OBS_DIM = 8                                        # proprio state dim
MLP_DIMS = [32, 32]                                # critic hidden dims -> [in, 32, 32, 1]
LN_EPS = 1e-5

# padded kernel-side sizes (lane / sublane aligned)
N_PAD = 128                                        # num_patch padded 121 -> 128
C_PAD = 128                                        # per-patch features padded 48 -> 128
D = PATCH_REPR                                     # 128

# packed-parameter row offsets inside the single [PACK_ROWS, 128] array
R_WP, R_POS, R_WF, R_SPW, R_W1Z, R_W2 = 0, 128, 256, 384, 512, 640
R_WS, R_W1S = 768, 776
(R_BP, R_VLNG, R_VLNB, R_PB, R_LNG, R_LNB,
 R_B1, R_B2, R_W3T, R_B3) = range(784, 794)        # R_BP row kept for layout, unused
PACK_ROWS = 800                                    # 794 rounded up to a multiple of 8


def _mish(x):
    return x * jnp.tanh(jax.nn.softplus(x))


def _layernorm(x, g, b):
    # single-pass statistics: one data pass (E[x], E[x^2]) instead of two.
    mu = jnp.mean(x, axis=-1, keepdims=True)
    ex2 = jnp.mean(x * x, axis=-1, keepdims=True)
    var = jnp.maximum(ex2 - mu * mu, 0.0)
    return (x - mu) * jax.lax.rsqrt(var + LN_EPS) * g + b


# ---------------- fused kernel: backbone stub + SpatialEmb + critic MLP ---------------
def _vit_critic_kernel(patches_ref, state_ref, p_ref, out_ref):
    b = patches_ref.shape[0]
    state = state_ref[...]                                              # [B, S]

    # ---- ViT backbone stub: patch embed -> + (pos embed ⊕ bias) -> LayerNorm ----
    # Flattened 2-D matmul ([B*N, C] x [C, D]) = one contiguous MXU stream.
    # The patch-embed bias bp was folded into the packed pos-embed rows at pack time.
    # TODO(synk): the injected backbone's transformer encoder blocks are external to
    # this module; only the patch-embedding stub is implemented here.
    x = patches_ref[...].reshape(b * N_PAD, C_PAD)
    f = jnp.dot(x, p_ref[R_WP:R_WP + C_PAD, :],
                preferred_element_type=jnp.float32).reshape(b, N_PAD, D)
    f = f + p_ref[R_POS:R_POS + N_PAD, :][None]
    f = _layernorm(f, p_ref[R_VLNG:R_VLNG + 1, :], p_ref[R_VLNB:R_VLNB + 1, :])

    # ---- SpatialEmb: explicit transpose (XLU) + canonical lane-axis-K matmul ----
    # y[b,p,d] = sum_n feat[b,n,p] * wf[n,d]; padded wf rows (n >= 121) are zero so the
    # zero-padded tokens never leak.  concat([featT, state]) is folded into (wf, ws).
    ft = jnp.transpose(f, (0, 2, 1)).reshape(b * D, N_PAD)              # [B*P, N]
    y = jnp.dot(ft, p_ref[R_WF:R_WF + N_PAD, :],
                preferred_element_type=jnp.float32).reshape(b, D, SPATIAL_EMB)
    state_bias = (jnp.dot(state, p_ref[R_WS:R_WS + OBS_DIM, :],
                          preferred_element_type=jnp.float32)
                  + p_ref[R_PB:R_PB + 1, :])                            # [B, proj_dim]
    y = y + state_bias[:, None, :]
    y = _layernorm(y, p_ref[R_LNG:R_LNG + 1, :], p_ref[R_LNB:R_LNB + 1, :])
    y = jnp.maximum(y, 0.0)
    z = jnp.sum(y * p_ref[R_SPW:R_SPW + D, :][None], axis=1)            # [B, proj_dim]

    # ---- CriticObs MLP on concat([z, state]); concat folded into split W1.
    # Hidden dim (32) lives on lanes 0..31 of 128-wide slabs; padded lanes stay exactly
    # zero through Mish (mish(0) == 0), so no masking is needed.
    h = (jnp.dot(z, p_ref[R_W1Z:R_W1Z + D, :], preferred_element_type=jnp.float32)
         + jnp.dot(state, p_ref[R_W1S:R_W1S + OBS_DIM, :],
                   preferred_element_type=jnp.float32)
         + p_ref[R_B1:R_B1 + 1, :])
    h = _mish(h)
    h = jnp.dot(h, p_ref[R_W2:R_W2 + D, :],
                preferred_element_type=jnp.float32) + p_ref[R_B2:R_B2 + 1, :]
    h = _mish(h)
    q = jnp.sum(h * p_ref[R_W3T:R_W3T + 1, :], axis=-1, keepdims=True)  # [B, 1]
    b3 = jnp.sum(p_ref[R_B3:R_B3 + 1, :], axis=-1, keepdims=True)       # b3 on lane 0
    out_ref[...] = q + b3


# ---------------- wrappers ------------------------------------------------------------
def _patchify(rgb):
    # NCHW -> [B, num_patch, C*ph*pw], channel-major within a patch (torch Conv2d order).
    b = rgb.shape[0]
    x = rgb.reshape(b, IMG_C, IMG_H // PATCH, PATCH, IMG_W // PATCH, PATCH)
    x = jnp.transpose(x, (0, 2, 4, 1, 3, 5))
    return x.reshape(b, NUM_PATCH, PATCH_IN)


def pack_params(p):
    """Pack every weight into one [PACK_ROWS, 128] f32 array (single DMA).
    All padded rows / columns are zero, so padded tokens and padded hidden lanes
    are mathematically inert.  The patch-embed bias bp is folded into the pos-embed
    rows here (one fewer broadcast-add over the [B,128,128] feature tensor in-kernel);
    the R_BP row is kept only so the static row offsets stay sublane-aligned."""
    def vec(v):
        v = jnp.asarray(v, jnp.float32).reshape(1, -1)
        return jnp.pad(v, ((0, 0), (0, PATCH_REPR - v.shape[1])))

    h1, h2 = MLP_DIMS
    pos_eff = p["pos"] + p["bp"]                                         # fold bias
    blocks = [
        jnp.pad(p["wp"], ((0, C_PAD - PATCH_IN), (0, 0))),               # R_WP
        jnp.pad(pos_eff, ((0, N_PAD - NUM_PATCH), (0, 0))),              # R_POS
        jnp.pad(p["wf"], ((0, N_PAD - NUM_PATCH), (0, 0))),              # R_WF
        p["spw"],                                                        # R_SPW
        jnp.pad(p["w1z"], ((0, 0), (0, PATCH_REPR - h1))),               # R_W1Z
        jnp.pad(p["w2"], ((0, PATCH_REPR - h1), (0, PATCH_REPR - h2))),  # R_W2
        p["ws"],                                                         # R_WS
        jnp.pad(p["w1s"], ((0, 0), (0, PATCH_REPR - h1))),               # R_W1S
        jnp.zeros((1, PATCH_REPR), jnp.float32),                         # R_BP (unused)
        p["vln_g"], p["vln_b"], p["pb"], p["ln_g"], p["ln_b"],           # R_VLNG..R_LNB
        vec(p["b1"]), vec(p["b2"]), vec(p["w3"][:, 0]), vec(p["b3"]),    # R_B1..R_B3
    ]
    packed = jnp.concatenate(blocks, axis=0)                             # [794, 128]
    return jnp.pad(packed, ((0, PACK_ROWS - packed.shape[0]), (0, 0)))   # [800, 128]


@jax.jit
def vit_critic_forward(rgb, state, packed):
    b = rgb.shape[0]
    patches = _patchify(rgb)                                             # glue (plain JAX)
    # zero-pad tokens 121->128 and per-patch features 48->128 for aligned tiles
    patches = jnp.pad(patches,
                      ((0, 0), (0, N_PAD - NUM_PATCH), (0, C_PAD - PATCH_IN)))
    vmem = pl.BlockSpec(memory_space=pltpu.MemorySpace.VMEM)
    return pl.pallas_call(
        _vit_critic_kernel,
        in_specs=[vmem, vmem, vmem],
        out_specs=vmem,
        out_shape=jax.ShapeDtypeStruct((b, 1), jnp.float32),
    )(patches, state.astype(jnp.float32), packed)


# ---------------- deterministic parameter init ---------------------------------------
def init_params(key):
    ks = jax.random.split(key, 13)
    h1, h2 = MLP_DIMS

    def w(k, shape, scale=0.02):
        return scale * jax.random.normal(k, shape, jnp.float32)

    return dict(
        # backbone patch-embed stub
        wp=w(ks[0], (PATCH_IN, PATCH_REPR)),
        bp=w(ks[1], (1, PATCH_REPR)),
        pos=w(ks[2], (NUM_PATCH, PATCH_REPR)),
        vln_g=jnp.ones((1, PATCH_REPR), jnp.float32),
        vln_b=jnp.zeros((1, PATCH_REPR), jnp.float32),
        # SpatialEmb: Linear(num_patch + obs_dim -> proj_dim), split into (wf, ws)
        wf=w(ks[3], (NUM_PATCH, SPATIAL_EMB)),
        ws=w(ks[4], (OBS_DIM, SPATIAL_EMB)),
        pb=w(ks[5], (1, SPATIAL_EMB)),
        ln_g=jnp.ones((1, SPATIAL_EMB), jnp.float32),
        ln_b=jnp.zeros((1, SPATIAL_EMB), jnp.float32),
        spw=w(ks[6], (PATCH_REPR, SPATIAL_EMB), scale=1.0),   # torch.randn(1, P, D)
        # CriticObs MLP: [spatial_emb + obs_dim, 32, 32, 1], W1 split for the concat
        w1z=w(ks[7], (SPATIAL_EMB, h1)),
        w1s=w(ks[8], (OBS_DIM, h1)),
        b1=w(ks[9], (1, h1)),
        w2=w(ks[10], (h1, h2)),
        b2=w(ks[11], (1, h2)),
        w3=w(ks[12], (h2, 1)),
        b3=jnp.full((1, 1), 0.05, jnp.float32),
    )


# ---------------- plain-JAX reference (unpadded, faithful to PyTorch semantics) -------
def reference_forward(rgb, state, p):
    patches = _patchify(rgb)
    f = jnp.einsum("bnc,cd->bnd", patches, p["wp"]) + p["bp"][None] + p["pos"][None]
    mu = f.mean(-1, keepdims=True)
    var = ((f - mu) ** 2).mean(-1, keepdims=True)
    f = (f - mu) / jnp.sqrt(var + LN_EPS) * p["vln_g"][None] + p["vln_b"][None]

    ft = jnp.transpose(f, (0, 2, 1))                                  # [B, P, N]
    prop = jnp.broadcast_to(state[:, None, :], (ft.shape[0], ft.shape[1], state.shape[-1]))
    x = jnp.concatenate([ft, prop], axis=-1)                          # [B, P, N+S]
    y = x @ jnp.concatenate([p["wf"], p["ws"]], 0) + p["pb"][None]
    mu = y.mean(-1, keepdims=True)
    var = ((y - mu) ** 2).mean(-1, keepdims=True)
    y = (y - mu) / jnp.sqrt(var + LN_EPS) * p["ln_g"][None] + p["ln_b"][None]
    y = jnp.maximum(y, 0.0)
    z = jnp.sum(y * p["spw"][None], axis=1)

    h = jnp.concatenate([z, state], axis=-1)
    h = h @ jnp.concatenate([p["w1z"], p["w1s"]], 0) + p["b1"]
    h = _mish(h)
    h = h @ p["w2"] + p["b2"]
    h = _mish(h)
    return h @ p["w3"] + p["b3"]


if __name__ == "__main__":
    key = jax.random.PRNGKey(0)
    k_rgb, k_state, k_param = jax.random.split(key, 3)
    rgb = jax.random.normal(k_rgb, (BATCH, IMG_C, IMG_H, IMG_W), jnp.float32)   # NCHW
    state = jax.random.normal(k_state, (BATCH, OBS_DIM), jnp.float32)
    params = init_params(k_param)
    packed = pack_params(params)

    q = vit_critic_forward(rgb, state, packed)
    q = jax.block_until_ready(q)

    q_ref = reference_forward(rgb, state, params)
    assert q.shape == (BATCH, 1)
    assert bool(jnp.all(jnp.isfinite(q)))
    assert bool(jnp.allclose(q, q_ref, rtol=2e-4, atol=2e-4)), (q, q_ref)
    print("KERNEL_OK")
</pallas_src>

<mosaic_0001>
module attributes {stable_mosaic.version = 11 : i64} {
  func.func @_vit_critic_kernel(%arg0: memref<2x128x128xf32, #tpu.memory_space<vmem>>, %arg1: memref<2x8xf32, #tpu.memory_space<vmem>>, %arg2: memref<800x128xf32, #tpu.memory_space<vmem>>, %arg3: memref<2x1xf32, #tpu.memory_space<vmem>>) attributes {dimension_semantics = [], scalar_prefetch = 0 : i64, scratch_operands = 0 : i64, tpu.core_type = #tpu.core_type<tc>} {
    %c0 = arith.constant 0 : index
    %c0_0 = arith.constant 0 : index
    %0 = vector.load %arg1[%c0, %c0_0] : memref<2x8xf32, #tpu.memory_space<vmem>>, vector<2x8xf32>
    %c0_1 = arith.constant 0 : index
    %c0_2 = arith.constant 0 : index
    %c0_3 = arith.constant 0 : index
    %1 = vector.load %arg0[%c0_1, %c0_2, %c0_3] : memref<2x128x128xf32, #tpu.memory_space<vmem>>, vector<2x128x128xf32>
    %2 = vector.shape_cast %1 : vector<2x128x128xf32> to vector<256x128xf32>
    %c0_4 = arith.constant 0 : index
    %c0_5 = arith.constant 0 : index
    %3 = vector.load %arg2[%c0_4, %c0_5] : memref<800x128xf32, #tpu.memory_space<vmem>>, vector<128x128xf32>
    %cst = arith.constant dense<0.000000e+00> : vector<256x128xf32>
    %4 = tpu.matmul %2, %3, %cst {dimension_numbers = #tpu.dot_dimension_numbers<[1], [0], [0], [1], [0, 0, 1, 1], [], []>} : vector<256x128xf32>, vector<128x128xf32>, vector<256x128xf32> -> vector<256x128xf32>
    %5 = vector.shape_cast %4 : vector<256x128xf32> to vector<2x128x128xf32>
    %c128 = arith.constant 128 : index
    %c0_6 = arith.constant 0 : index
    %6 = vector.load %arg2[%c128, %c0_6] : memref<800x128xf32, #tpu.memory_space<vmem>>, vector<128x128xf32>
    %7 = vector.shape_cast %6 : vector<128x128xf32> to vector<1x128x128xf32>
    %8 = vector.broadcast %7 : vector<1x128x128xf32> to vector<2x128x128xf32>
    %9 = arith.addf %5, %8 : vector<2x128x128xf32>
    %c785 = arith.constant 785 : index
    %c0_7 = arith.constant 0 : index
    %10 = vector.load %arg2[%c785, %c0_7] : memref<800x128xf32, #tpu.memory_space<vmem>>, vector<1x128xf32>
    %c786 = arith.constant 786 : index
    %c0_8 = arith.constant 0 : index
    %11 = vector.load %arg2[%c786, %c0_8] : memref<800x128xf32, #tpu.memory_space<vmem>>, vector<1x128xf32>
    %cst_9 = arith.constant dense<0.000000e+00> : vector<2x128xf32>
    %12 = vector.multi_reduction <add>, %9, %cst_9 [2] : vector<2x128x128xf32> to vector<2x128xf32>
    %13 = vector.shape_cast %12 : vector<2x128xf32> to vector<2x128x1xf32>
    %cst_10 = arith.constant 1.280000e+02 : f32
    %14 = vector.broadcast %cst_10 : f32 to vector<2x128x1xf32>
    %15 = arith.divf %13, %14 : vector<2x128x1xf32>
    %16 = arith.mulf %9, %9 : vector<2x128x128xf32>
    %cst_11 = arith.constant dense<0.000000e+00> : vector<2x128xf32>
    %17 = vector.multi_reduction <add>, %16, %cst_11 [2] : vector<2x128x128xf32> to vector<2x128xf32>
    %18 = vector.shape_cast %17 : vector<2x128xf32> to vector<2x128x1xf32>
    %cst_12 = arith.constant 1.280000e+02 : f32
    %19 = vector.broadcast %cst_12 : f32 to vector<2x128x1xf32>
    %20 = arith.divf %18, %19 : vector<2x128x1xf32>
    %21 = arith.mulf %15, %15 : vector<2x128x1xf32>
    %22 = arith.subf %20, %21 : vector<2x128x1xf32>
    %cst_13 = arith.constant 0.000000e+00 : f32
    %23 = vector.broadcast %cst_13 : f32 to vector<2x128x1xf32>
    %24 = arith.maximumf %22, %23 : vector<2x128x1xf32>
    %25 = vector.broadcast %15 : vector<2x128x1xf32> to vector<2x128x128xf32>
    %26 = arith.subf %9, %25 : vector<2x128x128xf32>
    %cst_14 = arith.constant 9.99999974E-6 : f32
    %27 = vector.broadcast %cst_14 : f32 to vector<2x128x1xf32>
    %28 = arith.addf %24, %27 : vector<2x128x1xf32>
    %29 = math.rsqrt %28 : vector<2x128x1xf32>
    %30 = vector.broadcast %29 : vector<2x128x1xf32> to vector<2x128x128xf32>
    %31 = arith.mulf %26, %30 : vector<2x128x128xf32>
    %32 = vector.shape_cast %10 : vector<1x128xf32> to vector<1x1x128xf32>
    %33 = vector.broadcast %32 : vector<1x1x128xf32> to vector<2x128x128xf32>
    %34 = arith.mulf %31, %33 : vector<2x128x128xf32>
    %35 = vector.shape_cast %11 : vector<1x128xf32> to vector<1x1x128xf32>
    %36 = vector.broadcast %35 : vector<1x1x128xf32> to vector<2x128x128xf32>
    %37 = arith.addf %34, %36 : vector<2x128x128xf32>
    %38 = tpu.transpose %37, [0, 2, 1] : vector<2x128x128xf32> -> vector<2x128x128xf32>
    %39 = vector.shape_cast %38 : vector<2x128x128xf32> to vector<256x128xf32>
    %c256 = arith.constant 256 : index
    %c0_15 = arith.constant 0 : index
    %40 = vector.load %arg2[%c256, %c0_15] : memref<800x128xf32, #tpu.memory_space<vmem>>, vector<128x128xf32>
    %cst_16 = arith.constant dense<0.000000e+00> : vector<256x128xf32>
    %41 = tpu.matmul %39, %40, %cst_16 {dimension_numbers = #tpu.dot_dimension_numbers<[1], [0], [0], [1], [0, 0, 1, 1], [], []>} : vector<256x128xf32>, vector<128x128xf32>, vector<256x128xf32> -> vector<256x128xf32>
    %42 = vector.shape_cast %41 : vector<256x128xf32> to vector<2x128x128xf32>
    %c768 = arith.constant 768 : index
    %c0_17 = arith.constant 0 : index
    %43 = vector.load %arg2[%c768, %c0_17] : memref<800x128xf32, #tpu.memory_space<vmem>>, vector<8x128xf32>
    %cst_18 = arith.constant dense<0.000000e+00> : vector<2x128xf32>
    %44 = tpu.matmul %0, %43, %cst_18 {dimension_numbers = #tpu.dot_dimension_numbers<[1], [0], [0], [1], [0, 0, 1, 1], [], []>} : vector<2x8xf32>, vector<8x128xf32>, vector<2x128xf32> -> vector<2x128xf32>
    %c787 = arith.constant 787 : index
    %c0_19 = arith.constant 0 : index
    %45 = vector.load %arg2[%c787, %c0_19] : memref<800x128xf32, #tpu.memory_space<vmem>>, vector<1x128xf32>
    %46 = vector.broadcast %45 : vector<1x128xf32> to vector<2x128xf32>
    %47 = arith.addf %44, %46 : vector<2x128xf32>
    %48 = vector.shape_cast %47 : vector<2x128xf32> to vector<2x1x128xf32>
    %49 = vector.broadcast %48 : vector<2x1x128xf32> to vector<2x128x128xf32>
    %50 = arith.addf %42, %49 : vector<2x128x128xf32>
    %c788 = arith.constant 788 : index
    %c0_20 = arith.constant 0 : index
    %51 = vector.load %arg2[%c788, %c0_20] : memref<800x128xf32, #tpu.memory_space<vmem>>, vector<1x128xf32>
    %c789 = arith.constant 789 : index
    %c0_21 = arith.constant 0 : index
    %52 = vector.load %arg2[%c789, %c0_21] : memref<800x128xf32, #tpu.memory_space<vmem>>, vector<1x128xf32>
    %cst_22 = arith.constant dense<0.000000e+00> : vector<2x128xf32>
    %53 = vector.multi_reduction <add>, %50, %cst_22 [2] : vector<2x128x128xf32> to vector<2x128xf32>
    %54 = vector.shape_cast %53 : vector<2x128xf32> to vector<2x128x1xf32>
    %cst_23 = arith.constant 1.280000e+02 : f32
    %55 = vector.broadcast %cst_23 : f32 to vector<2x128x1xf32>
    %56 = arith.divf %54, %55 : vector<2x128x1xf32>
    %57 = arith.mulf %50, %50 : vector<2x128x128xf32>
    %cst_24 = arith.constant dense<0.000000e+00> : vector<2x128xf32>
    %58 = vector.multi_reduction <add>, %57, %cst_24 [2] : vector<2x128x128xf32> to vector<2x128xf32>
    %59 = vector.shape_cast %58 : vector<2x128xf32> to vector<2x128x1xf32>
    %cst_25 = arith.constant 1.280000e+02 : f32
    %60 = vector.broadcast %cst_25 : f32 to vector<2x128x1xf32>
    %61 = arith.divf %59, %60 : vector<2x128x1xf32>
    %62 = arith.mulf %56, %56 : vector<2x128x1xf32>
    %63 = arith.subf %61, %62 : vector<2x128x1xf32>
    %cst_26 = arith.constant 0.000000e+00 : f32
    %64 = vector.broadcast %cst_26 : f32 to vector<2x128x1xf32>
    %65 = arith.maximumf %63, %64 : vector<2x128x1xf32>
    %66 = vector.broadcast %56 : vector<2x128x1xf32> to vector<2x128x128xf32>
    %67 = arith.subf %50, %66 : vector<2x128x128xf32>
    %cst_27 = arith.constant 9.99999974E-6 : f32
    %68 = vector.broadcast %cst_27 : f32 to vector<2x128x1xf32>
    %69 = arith.addf %65, %68 : vector<2x128x1xf32>
    %70 = math.rsqrt %69 : vector<2x128x1xf32>
    %71 = vector.broadcast %70 : vector<2x128x1xf32> to vector<2x128x128xf32>
    %72 = arith.mulf %67, %71 : vector<2x128x128xf32>
    %73 = vector.shape_cast %51 : vector<1x128xf32> to vector<1x1x128xf32>
    %74 = vector.broadcast %73 : vector<1x1x128xf32> to vector<2x128x128xf32>
    %75 = arith.mulf %72, %74 : vector<2x128x128xf32>
    %76 = vector.shape_cast %52 : vector<1x128xf32> to vector<1x1x128xf32>
    %77 = vector.broadcast %76 : vector<1x1x128xf32> to vector<2x128x128xf32>
    %78 = arith.addf %75, %77 : vector<2x128x128xf32>
    %cst_28 = arith.constant 0.000000e+00 : f32
    %79 = vector.broadcast %cst_28 : f32 to vector<2x128x128xf32>
    %80 = arith.maximumf %78, %79 : vector<2x128x128xf32>
    %c384 = arith.constant 384 : index
    %c0_29 = arith.constant 0 : index
    %81 = vector.load %arg2[%c384, %c0_29] : memref<800x128xf32, #tpu.memory_space<vmem>>, vector<128x128xf32>
    %82 = vector.shape_cast %81 : vector<128x128xf32> to vector<1x128x128xf32>
    %83 = vector.broadcast %82 : vector<1x128x128xf32> to vector<2x128x128xf32>
    %84 = arith.mulf %80, %83 : vector<2x128x128xf32>
    %cst_30 = arith.constant dense<0.000000e+00> : vector<2x128xf32>
    %85 = vector.multi_reduction <add>, %84, %cst_30 [1] : vector<2x128x128xf32> to vector<2x128xf32>
    %c512 = arith.constant 512 : index
    %c0_31 = arith.constant 0 : index
    %86 = vector.load %arg2[%c512, %c0_31] : memref<800x128xf32, #tpu.memory_space<vmem>>, vector<128x128xf32>
    %cst_32 = arith.constant dense<0.000000e+00> : vector<2x128xf32>
    %87 = tpu.matmul %85, %86, %cst_32 {dimension_numbers = #tpu.dot_dimension_numbers<[1], [0], [0], [1], [0, 0, 1, 1], [], []>} : vector<2x128xf32>, vector<128x128xf32>, vector<2x128xf32> -> vector<2x128xf32>
    %c776 = arith.constant 776 : index
    %c0_33 = arith.constant 0 : index
    %88 = vector.load %arg2[%c776, %c0_33] : memref<800x128xf32, #tpu.memory_space<vmem>>, vector<8x128xf32>
    %cst_34 = arith.constant dense<0.000000e+00> : vector<2x128xf32>
    %89 = tpu.matmul %0, %88, %cst_34 {dimension_numbers = #tpu.dot_dimension_numbers<[1], [0], [0], [1], [0, 0, 1, 1], [], []>} : vector<2x8xf32>, vector<8x128xf32>, vector<2x128xf32> -> vector<2x128xf32>
    %90 = arith.addf %87, %89 : vector<2x128xf32>
    %c790 = arith.constant 790 : index
    %c0_35 = arith.constant 0 : index
    %91 = vector.load %arg2[%c790, %c0_35] : memref<800x128xf32, #tpu.memory_space<vmem>>, vector<1x128xf32>
    %92 = vector.broadcast %91 : vector<1x128xf32> to vector<2x128xf32>
    %93 = arith.addf %90, %92 : vector<2x128xf32>
    %cst_36 = arith.constant 0.000000e+00 : f32
    %94 = vector.broadcast %cst_36 : f32 to vector<2x128xf32>
    %95 = arith.maximumf %93, %94 : vector<2x128xf32>
    %96 = vector.broadcast %cst_36 : f32 to vector<2x128xf32>
    %97 = arith.subf %93, %96 : vector<2x128xf32>
    %98 = arith.cmpf one, %97, %97 : vector<2x128xf32>
    %99 = vector.broadcast %cst_36 : f32 to vector<2x128xf32>
    %100 = arith.addf %93, %99 : vector<2x128xf32>
    %101 = math.absf %97 : vector<2x128xf32>
    %cst_37 = arith.constant 0.000000e+00 : f32
    %102 = vector.broadcast %cst_37 : f32 to vector<2x128xf32>
    %103 = arith.subf %102, %101 : vector<2x128xf32>
    %104 = math.exp %103 : vector<2x128xf32>
    %105 = math.log1p %104 : vector<2x128xf32>
    %106 = arith.addf %95, %105 : vector<2x128xf32>
    %107 = arith.select %98, %100, %106 : vector<2x128xi1>, vector<2x128xf32>
    %108 = math.tanh %107 : vector<2x128xf32>
    %109 = arith.mulf %93, %108 : vector<2x128xf32>
    %c640 = arith.constant 640 : index
    %c0_38 = arith.constant 0 : index
    %110 = vector.load %arg2[%c640, %c0_38] : memref<800x128xf32, #tpu.memory_space<vmem>>, vector<128x128xf32>
    %cst_39 = arith.constant dense<0.000000e+00> : vector<2x128xf32>
    %111 = tpu.matmul %109, %110, %cst_39 {dimension_numbers = #tpu.dot_dimension_numbers<[1], [0], [0], [1], [0, 0, 1, 1], [], []>} : vector<2x128xf32>, vector<128x128xf32>, vector<2x128xf32> -> vector<2x128xf32>
    %c791 = arith.constant 791 : index
    %c0_40 = arith.constant 0 : index
    %112 = vector.load %arg2[%c791, %c0_40] : memref<800x128xf32, #tpu.memory_space<vmem>>, vector<1x128xf32>
    %113 = vector.broadcast %112 : vector<1x128xf32> to vector<2x128xf32>
    %114 = arith.addf %111, %113 : vector<2x128xf32>
    %cst_41 = arith.constant 0.000000e+00 : f32
    %115 = vector.broadcast %cst_41 : f32 to vector<2x128xf32>
    %116 = arith.maximumf %114, %115 : vector<2x128xf32>
    %117 = vector.broadcast %cst_41 : f32 to vector<2x128xf32>
    %118 = arith.subf %114, %117 : vector<2x128xf32>
    %119 = arith.cmpf one, %118, %118 : vector<2x128xf32>
    %120 = vector.broadcast %cst_41 : f32 to vector<2x128xf32>
    %121 = arith.addf %114, %120 : vector<2x128xf32>
    %122 = math.absf %118 : vector<2x128xf32>
    %cst_42 = arith.constant 0.000000e+00 : f32
    %123 = vector.broadcast %cst_42 : f32 to vector<2x128xf32>
    %124 = arith.subf %123, %122 : vector<2x128xf32>
    %125 = math.exp %124 : vector<2x128xf32>
    %126 = math.log1p %125 : vector<2x128xf32>
    %127 = arith.addf %116, %126 : vector<2x128xf32>
    %128 = arith.select %119, %121, %127 : vector<2x128xi1>, vector<2x128xf32>
    %129 = math.tanh %128 : vector<2x128xf32>
    %130 = arith.mulf %114, %129 : vector<2x128xf32>
    %c792 = arith.constant 792 : index
    %c0_43 = arith.constant 0 : index
    %131 = vector.load %arg2[%c792, %c0_43] : memref<800x128xf32, #tpu.memory_space<vmem>>, vector<1x128xf32>
    %132 = vector.broadcast %131 : vector<1x128xf32> to vector<2x128xf32>
    %133 = arith.mulf %130, %132 : vector<2x128xf32>
    %cst_44 = arith.constant dense<0.000000e+00> : vector<2xf32>
    %134 = vector.multi_reduction <add>, %133, %cst_44 [1] : vector<2x128xf32> to vector<2xf32>
    %135 = vector.shape_cast %134 : vector<2xf32> to vector<2x1xf32>
    %c793 = arith.constant 793 : index
    %c0_45 = arith.constant 0 : index
    %136 = vector.load %arg2[%c793, %c0_45] : memref<800x128xf32, #tpu.memory_space<vmem>>, vector<1x128xf32>
    %cst_46 = arith.constant dense<0.000000e+00> : vector<1xf32>
    %137 = vector.multi_reduction <add>, %136, %cst_46 [1] : vector<1x128xf32> to vector<1xf32>
    %138 = vector.shape_cast %137 : vector<1xf32> to vector<1x1xf32>
    %139 = vector.broadcast %138 : vector<1x1xf32> to vector<2x1xf32>
    %140 = arith.addf %135, %139 : vector<2x1xf32>
    %c0_47 = arith.constant 0 : index
    %c0_48 = arith.constant 0 : index
    %141 = vector.load %arg3[%c0_47, %c0_48] : memref<2x1xf32, #tpu.memory_space<vmem>>, vector<2x1xf32>
    tpu.vector_store %arg3[%c0_47, %c0_48], %140 {strides = array<i32>} : memref<2x1xf32, #tpu.memory_space<vmem>>, vector<2x1xf32>,
    return
  }
}

</mosaic_0001>

<bundles_post_ra>
// kernel: vit_critic_forward.1
= control target key start
LH: loop header
LB: loop body
LE: loop exit
PB: predicated region body
PF: predicated region fallthrough
CT: control target
= control target key end

     0   :  { %s4952_s2 = inlined_call_operand.vmem [shape: f32[800,128], index: 2, kind: input, shape index: {}]   ;;  %s4953_s0 = inlined_call_operand.vmem [shape: f32[2,128,128], index: 0, kind: input, shape index: {}]   ;;  %s4954_s1 = inlined_call_operand.vmem [shape: f32[2,8], index: 1, kind: input, shape index: {}]   ;;  %s4955_s3 = inlined_call_operand.vmem [shape: f32[2,1], index: 3, kind: output, shape index: {}]  }
   0x1   :  { %v62_v0 = vld [vmem:[%s4952_s2 + $0x78] sm:$0xff]  ;;  %v61_v1 = vld [vmem:[%s4952_s2 + $0x70] sm:$0xff]  ;;  %v60_v2 = vld [vmem:[%s4952_s2 + $0x68] sm:$0xff] }
   0x2   :  { %63 = vmatpush.msra.mxu0 %v62_v0  ;;  %2384 = vmatpush.msra.mxu2 %v62_v0  ;;  %v59_v3 = vld [vmem:[%s4952_s2 + $0x60] sm:$0xff]  ;;  %v58_v4 = vld [vmem:[%s4952_s2 + $0x58] sm:$0xff]  ;;  %v57_v5 = vld [vmem:[%s4952_s2 + $0x50] sm:$0xff] }
   0x3   :  { %v56_v6 = vld [vmem:[%s4952_s2 + $0x48] sm:$0xff]  ;;  %v55_v7 = vld [vmem:[%s4952_s2 + $0x40] sm:$0xff]  ;;  %v54_v8 = vld [vmem:[%s4952_s2 + $0x38] sm:$0xff] }
   0x4   :  { %64 = vmatpush.msra.mxu0 %v61_v1  ;;  %2385 = vmatpush.msra.mxu2 %v61_v1  ;;  %v53_v9 = vld [vmem:[%s4952_s2 + $0x30] sm:$0xff]  ;;  %v52_v10 = vld [vmem:[%s4952_s2 + $0x28] sm:$0xff]  ;;  %v51_v11 = vld [vmem:[%s4952_s2 + $0x20] sm:$0xff] }
   0x5   :  { %v50_v12 = vld [vmem:[%s4952_s2 + $0x18] sm:$0xff]  ;;  %v49_v13 = vld [vmem:[%s4952_s2 + $0x10] sm:$0xff]  ;;  %v48_v14 = vld [vmem:[%s4952_s2 + $0x8] sm:$0xff] }
   0x6   :  { %65 = vmatpush.msra.mxu0 %v60_v2  ;;  %2386 = vmatpush.msra.mxu2 %v60_v2  ;;  %v47_v15 = vld [vmem:[%s4952_s2] sm:$0xff]  ;;  %v33_v17 = vld [vmem:[%s4953_s0 + $0x90] sm:$0xff]  ;;  %v16_v18 = vld [vmem:[%s4953_s0 + $0x8] sm:$0xff] }
   0x7   :  { %v15_v16 = vld [vmem:[%s4953_s0] sm:$0xff]  ;;  %v34_v19 = vld [vmem:[%s4953_s0 + $0x98] sm:$0xff]  ;;  %v17_v20 = vld [vmem:[%s4953_s0 + $0x10] sm:$0xff] }
   0x8   :  { %66 = vmatpush.msra.mxu0 %v59_v3  ;;  %2387 = vmatpush.msra.mxu2 %v59_v3  ;;  %v35_v21 = vld [vmem:[%s4953_s0 + $0xa0] sm:$0xff]  ;;  %v18_v22 = vld [vmem:[%s4953_s0 + $0x18] sm:$0xff]  ;;  %v36_v23 = vld [vmem:[%s4953_s0 + $0xa8] sm:$0xff] }
   0x9   :  { %v19_v24 = vld [vmem:[%s4953_s0 + $0x20] sm:$0xff]  ;;  %v37_v25 = vld [vmem:[%s4953_s0 + $0xb0] sm:$0xff]  ;;  %v20_v26 = vld [vmem:[%s4953_s0 + $0x28] sm:$0xff] }
   0xa   :  { %67 = vmatpush.msra.mxu0 %v58_v4  ;;  %2388 = vmatpush.msra.mxu2 %v58_v4  ;;  %v38_v27 = vld [vmem:[%s4953_s0 + $0xb8] sm:$0xff]  ;;  %v21_v28 = vld [vmem:[%s4953_s0 + $0x30] sm:$0xff]  ;;  %v39_v29 = vld [vmem:[%s4953_s0 + $0xc0] sm:$0xff] }
   0xb   :  { %v22_v30 = vld [vmem:[%s4953_s0 + $0x38] sm:$0xff]  ;;  %v40_v31 = vld [vmem:[%s4953_s0 + $0xc8] sm:$0xff]  ;;  %v23_v32 = vld [vmem:[%s4953_s0 + $0x40] sm:$0xff] }
   0xc   :  { %68 = vmatpush.msra.mxu0 %v57_v5  ;;  %2389 = vmatpush.msra.mxu2 %v57_v5  ;;  %v24_v33 = vld [vmem:[%s4953_s0 + $0x48] sm:$0xff]  ;;  %v25_v34 = vld [vmem:[%s4953_s0 + $0x50] sm:$0xff]  ;;  %v26_v35 = vld [vmem:[%s4953_s0 + $0x58] sm:$0xff] }
   0xd   :  { %v41_v36 = vld [vmem:[%s4953_s0 + $0xd0] sm:$0xff]  ;;  %v27_v37 = vld [vmem:[%s4953_s0 + $0x60] sm:$0xff]  ;;  %v42_v38 = vld [vmem:[%s4953_s0 + $0xd8] sm:$0xff] }
   0xe   :  { %69 = vmatpush.msra.mxu0 %v56_v6  ;;  %2390 = vmatpush.msra.mxu2 %v56_v6  ;;  %v28_v39 = vld [vmem:[%s4953_s0 + $0x68] sm:$0xff]  ;;  %v43_v40 = vld [vmem:[%s4953_s0 + $0xe0] sm:$0xff]  ;;  %v29_v41 = vld [vmem:[%s4953_s0 + $0x70] sm:$0xff] }
   0xf   :  { %v44_v42 = vld [vmem:[%s4953_s0 + $0xe8] sm:$0xff]  ;;  %v30_v43 = vld [vmem:[%s4953_s0 + $0x78] sm:$0xff]  ;;  %v45_v44 = vld [vmem:[%s4953_s0 + $0xf0] sm:$0xff] }
  0x10   :  { %70 = vmatpush.msra.mxu0 %v55_v7  ;;  %2391 = vmatpush.msra.mxu2 %v55_v7  ;;  %v2736_v45 = vld [vmem:[%s4952_s2 + $0x80] sm:$0xff]  ;;  %v46_v49 = vld [vmem:[%s4953_s0 + $0xf8] sm:$0xff]  ;;  %v2751_v51 = vld [vmem:[%s4952_s2 + $0x88] sm:$0xff] }
  0x11   :  { %v31_v47 = vld [vmem:[%s4953_s0 + $0x80] sm:$0xff]  ;;  %v178_v52 = vld [vmem:[%s4952_s2 + $0x90] sm:$0xff]  ;;  %v32_v56 = vld [vmem:[%s4953_s0 + $0x88] sm:$0xff] }
  0x12   :  { %71 = vmatpush.msra.mxu0 %v54_v8  ;;  %2392 = vmatpush.msra.mxu2 %v54_v8  ;;  %v179_v58 = vld [vmem:[%s4952_s2 + $0x98] sm:$0xff]  ;;  %v180_v4 = vld [vmem:[%s4952_s2 + $0xa0] sm:$0xff] }
  0x14   :  { %72 = vmatpush.msra.mxu0 %v53_v9  ;;  %2393 = vmatpush.msra.mxu2 %v53_v9  ;;  %v181_v9 = vld [vmem:[%s4952_s2 + $0xa8] sm:$0xff] }
  0x16   :  { %73 = vmatpush.msra.mxu0 %v52_v10  ;;  %2394 = vmatpush.msra.mxu2 %v52_v10 }
  0x18   :  { %74 = vmatpush.msra.mxu0 %v51_v11  ;;  %2395 = vmatpush.msra.mxu2 %v51_v11 }
  0x1a   :  { %75 = vmatpush.msra.mxu0 %v50_v12  ;;  %2396 = vmatpush.msra.mxu2 %v50_v12 }
  0x1c   :  { %76 = vmatpush.msra.mxu0 %v49_v13  ;;  %2397 = vmatpush.msra.mxu2 %v49_v13 }
  0x1e   :  { %77 = vmatpush.msra.mxu0 %v48_v14  ;;  %2398 = vmatpush.msra.mxu2 %v48_v14 }
  0x20   :  { %78 = vmatpush.msra.mxu0 %v47_v15  ;;  %2399 = vmatpush.msra.mxu2 %v47_v15 }
  0x21   :  { %79 = vmatmul.f32.vlgmr.msra.gmra.mxu0 %v15_v16  ;;  %133 = vmatmul.f32.vlgmr.msra.gmra.mxu2 %v33_v17 }
  0x29   :  { %82 = vmatmul.f32.gmra.mxu0 %v16_v18  ;;  %136 = vmatmul.f32.gmra.mxu2 %v34_v19  ;;  %v182_v18 = vld [vmem:[%s4952_s2 + $0xb0] sm:$0xff] }
  0x31   :  { %85 = vmatmul.f32.gmra.mxu0 %v17_v20  ;;  %139 = vmatmul.f32.gmra.mxu2 %v35_v21 }
  0x39   :  { %88 = vmatmul.f32.gmra.mxu0 %v18_v22  ;;  %142 = vmatmul.f32.gmra.mxu2 %v36_v23 }
  0x41   :  { %91 = vmatmul.f32.gmra.mxu0 %v19_v24  ;;  %145 = vmatmul.f32.gmra.mxu2 %v37_v25 }
  0x49   :  { %94 = vmatmul.f32.gmra.mxu0 %v20_v26  ;;  %148 = vmatmul.f32.gmra.mxu2 %v38_v27  ;;  %v183_v26 = vld [vmem:[%s4952_s2 + $0xb8] sm:$0xff] }
  0x51   :  { %97 = vmatmul.f32.gmra.mxu0 %v21_v28  ;;  %151 = vmatmul.f32.gmra.mxu2 %v39_v29 }
  0x59   :  { %100 = vmatmul.f32.gmra.mxu0 %v22_v30  ;;  %154 = vmatmul.f32.gmra.mxu2 %v40_v31  ;;  %v184_v31 = vld [vmem:[%s4952_s2 + $0xc0] sm:$0xff] }
  0x61   :  { %103 = vmatmul.f32.gmra.mxu0 %v23_v32  ;;  %157 = vmatmul.f32.gmra.mxu2 %v41_v36 }
  0x69   :  { %106 = vmatmul.f32.gmra.mxu0 %v24_v33  ;;  %160 = vmatmul.f32.gmra.mxu2 %v42_v38 }
  0x71   :  { %109 = vmatmul.f32.gmra.mxu0 %v25_v34  ;;  %163 = vmatmul.f32.gmra.mxu2 %v43_v40 }
  0x79   :  { %112 = vmatmul.f32.gmra.mxu0 %v26_v35  ;;  %166 = vmatmul.f32.gmra.mxu2 %v44_v42  ;;  %v185_v42 = vld [vmem:[%s4952_s2 + $0xc8] sm:$0xff] }
  0x81   :  { %115 = vmatmul.f32.gmra.mxu0 %v27_v37  ;;  %169 = vmatmul.f32.gmra.mxu2 %v45_v44 }
  0x89   :  { %118 = vmatmul.f32.gmra.mxu0 %v28_v39  ;;  %172 = vmatmul.f32.gmra.mxu2 %v46_v49  ;;  %v186_v49 = vld [vmem:[%s4952_s2 + $0xd0] sm:$0xff] }
  0x91   :  { %121 = vmatmul.f32.gmra.mxu0 %v29_v41 }
  0x99   :  { %124 = vmatmul.f32.gmra.mxu0 %v30_v43 }
  0x9e   :  { %v80_v46 = vpop.f32.mrf.mxu0 }
  0x9f   :  { %v2742_v48 = vadd.f32 %v2736_v45, %v80_v46 }
  0xa1   :  { %226 = vadd.xlane.f32.xlu0 %v2742_v48  ;;  %127 = vmatmul.f32.gmra.mxu0 %v31_v47  ;;  %v329_v55 = vmul.f32 %v2742_v48, %v2742_v48 }
  0xa4   :  { %v134_v50 = vpop.f32.mrf.mxu2 }
  0xa5   :  { %v2764_v57 = vadd.f32 %v178_v52, %v134_v50 }
  0xa6   :  { %v83_v53 = vpop.f32.mrf.mxu0 }
  0xa7   :  { %v2757_v54 = vadd.f32 %v2751_v51, %v83_v53  ;;  %4972 = vst [vmem:[#allocation2_spill] sm:$0xff] %v2764_v57  ;;  %v347_v61 = vmul.f32 %v2764_v57, %v2764_v57 }
  0xa9   :  { %361 = vadd.xlane.f32.xlu0 %v329_v55  ;;  %228 = vadd.xlane.f32.xlu1 %v2757_v54  ;;  %v330_v2 = vmul.f32 %v2757_v54, %v2757_v54 }
  0xaa   :  { %130 = vmatmul.f32.gmra.mxu0 %v32_v56 }
  0xac   :  { %v137_v59 = vpop.f32.mrf.mxu2 }
  0xad   :  { %v2770_v60 = vadd.f32 %v179_v58, %v137_v59  ;;  %v187_v59 = vld [vmem:[%s4952_s2 + $0xd8] sm:$0xff] }
  0xae   :  { %v86_v62 = vpop.f32.mrf.mxu0 }
  0xaf   :  { %4973 = vst [vmem:[#allocation3_spill] sm:$0xff] %v2770_v60  ;;  %264 = vadd.xlane.f32.xlu2 %v2770_v60  ;;  %v2776_v63 = vadd.f32 %v178_v52, %v86_v62  ;;  %v348_v0 = vmul.f32 %v2770_v60, %v2770_v60 }
  0xb1   :  { %262 = vadd.xlane.f32.xlu0 %v2764_v57  ;;  %397 = vadd.xlane.f32.xlu1 %v347_v61  ;;  %v331_v7 = vmul.f32 %v2776_v63, %v2776_v63 }
  0xb4   :  { %v140_v3 = vpop.f32.mrf.mxu2 }
  0xb5   :  { %v2788_v6 = vadd.f32 %v180_v4, %v140_v3 }
  0xb6   :  { %v89_v1 = vpop.f32.mrf.mxu0 }
  0xb7   :  { %230 = vadd.xlane.f32.xlu2 %v2776_v63  ;;  %v2786_v5 = vadd.f32 %v179_v58, %v89_v1  ;;  %v349_v12 = vmul.f32 %v2788_v6, %v2788_v6  ;;  %v2876_v58 = vld [vmem:[%s4952_s2 + $0xe0] sm:$0xff] }
  0xb9   :  { %399 = vadd.xlane.f32.xlu0 %v348_v0  ;;  %363 = vadd.xlane.f32.xlu1 %v330_v2  ;;  %v332_v14 = vmul.f32 %v2786_v5, %v2786_v5  ;;  %v2887_v0 = vld [vmem:[%s4952_s2 + $0xe8] sm:$0xff] }
  0xbc   :  { %v143_v10 = vpop.f32.mrf.mxu2 }
  0xbd   :  { %v2797_v11 = vadd.f32 %v181_v9, %v143_v10  ;;  %v190_v10 = vld [vmem:[%s4952_s2 + $0xf0] sm:$0xff] }
  0xbe   :  { %v92_v8 = vpop.f32.mrf.mxu0 }
  0xbf   :  { %365 = vadd.xlane.f32.xlu2 %v331_v7  ;;  %4974 = vst [vmem:[#allocation4_spill] sm:$0xff] %v2797_v11  ;;  %v2804_v15 = vadd.f32 %v180_v4, %v92_v8  ;;  %v350_v16 = vmul.f32 %v2797_v11, %v2797_v11 }
  0xc1   :  { %266 = vadd.xlane.f32.xlu1 %v2788_v6  ;;  %232 = vadd.xlane.f32.xlu0 %v2786_v5  ;;  %v333_v20 = vmul.f32 %v2804_v15, %v2804_v15 }
  0xc4   :  { %v146_v19 = vpop.f32.mrf.mxu2 }
  0xc5   :  { %v2814_v21 = vadd.f32 %v182_v18, %v146_v19 }
  0xc6   :  { %v95_v13 = vpop.f32.mrf.mxu0 }
  0xc7   :  { %401 = vadd.xlane.f32.xlu2 %v349_v12  ;;  %4975 = vst [vmem:[#allocation5_spill] sm:$0xff] %v2814_v21  ;;  %v351_v22 = vmul.f32 %v2814_v21, %v2814_v21  ;;  %v2818_v24 = vadd.f32 %v181_v9, %v95_v13  ;;  %v2911_v13 = vld [vmem:[%s4952_s2 + $0xf8] sm:$0xff] }
  0xc9   :  { %268 = vadd.xlane.f32.xlu0 %v2797_v11  ;;  %367 = vadd.xlane.f32.xlu1 %v332_v14  ;;  %v334_v28 = vmul.f32 %v2818_v24, %v2818_v24 }
  0xcc   :  { %v149_v25 = vpop.f32.mrf.mxu2 }
  0xcd   :  { %v2825_v27 = vadd.f32 %v183_v26, %v149_v25 }
  0xce   :  { %v98_v17 = vpop.f32.mrf.mxu0 }
  0xcf   :  { %234 = vadd.xlane.f32.xlu2 %v2804_v15  ;;  %v2829_v30 = vadd.f32 %v182_v18, %v98_v17  ;;  %v352_v34 = vmul.f32 %v2825_v27, %v2825_v27 }
  0xd1   :  { %403 = vadd.xlane.f32.xlu1 %v350_v16  ;;  %369 = vadd.xlane.f32.xlu0 %v333_v20  ;;  %v335_v36 = vmul.f32 %v2829_v30, %v2829_v30 }
  0xd4   :  { %v152_v32 = vpop.f32.mrf.mxu2 }
  0xd5   :  { %v2836_v33 = vadd.f32 %v184_v31, %v152_v32 }
  0xd6   :  { %v101_v23 = vpop.f32.mrf.mxu0 }
  0xd7   :  { %270 = vadd.xlane.f32.xlu2 %v2814_v21  ;;  %4976 = vst [vmem:[#allocation6_spill] sm:$0xff] %v2836_v33  ;;  %v2843_v37 = vadd.f32 %v183_v26, %v101_v23  ;;  %v353_v38 = vmul.f32 %v2836_v33, %v2836_v33 }
  0xd9   :  { %405 = vadd.xlane.f32.xlu0 %v351_v22  ;;  %236 = vadd.xlane.f32.xlu1 %v2818_v24  ;;  %v336_v40 = vmul.f32 %v2843_v37, %v2843_v37  ;;  %v2577_v22 = vmov 128.0  }
  0xda   :  { %2428 = vrcp.f32 %v2577_v22 }
  0xdc   :  { %v155_v41 = vpop.f32.mrf.mxu2 }
  0xdd   :  { %v2853_v43 = vadd.f32 %v185_v42, %v155_v41 }
  0xde   :  { %v104_v29 = vpop.f32.mrf.mxu0 }
  0xdf   :  { %371 = vadd.xlane.f32.xlu2 %v334_v28  ;;  %4977 = vst [vmem:[#allocation7_spill] sm:$0xff] %v2853_v43  ;;  %v2855_v46 = vadd.f32 %v184_v31, %v104_v29  ;;  %v354_v28 = vmul.f32 %v2853_v43, %v2853_v43 }
  0xe1   :  { %272 = vadd.xlane.f32.xlu1 %v2825_v27  ;;  %238 = vadd.xlane.f32.xlu0 %v2829_v30  ;;  %v337_v52 = vmul.f32 %v2855_v46, %v2855_v46 }
  0xe4   :  { %v158_v3 = vpop.f32.mrf.mxu2 }
  0xe5   :  { %v2927_v26 = vadd.f32 %v186_v49, %v158_v3 }
  0xe6   :  { %v107_v35 = vpop.f32.mrf.mxu0 }
  0xe7   :  { %407 = vadd.xlane.f32.xlu2 %v352_v34  ;;  %v2857_v47 = vadd.f32 %v185_v42, %v107_v35  ;;  %v2429_v34 = vpop.eup %2428 }
  0xe8   :  { %v291_v41 = vmul.f32 128.0, %v2429_v34  ;;  %vm295_vm0 = vweird.f32 %v2429_v34 }
  0xe9   :  { %274 = vadd.xlane.f32.xlu0 %v2836_v33  ;;  %373 = vadd.xlane.f32.xlu1 %v335_v36  ;;  %v338_v55 = vmul.f32 %v2857_v47, %v2857_v47 }
  0xea   :  { %v292_v42 = vsub.f32 1.0, %v291_v41 }
  0xec   :  { %v161_v16 = vpop.f32.mrf.mxu2 }
  0xee   :  { %v110_v39 = vpop.f32.mrf.mxu0 }
  0xef   :  { %240 = vadd.xlane.f32.xlu2 %v2843_v37  ;;  %v2865_v50 = vadd.f32 %v186_v49, %v110_v39  ;;  %v2949_v49 = vadd.f32 %v187_v59, %v161_v16 }
  0xf1   :  { %409 = vadd.xlane.f32.xlu1 %v353_v38  ;;  %375 = vadd.xlane.f32.xlu0 %v336_v40  ;;  %v339_v56 = vmul.f32 %v2865_v50, %v2865_v50  ;;  %v355_v38 = vmul.f32 %v2927_v26, %v2927_v26  ;;  %4982 = vst [vmem:[#allocation12_spill] sm:$0xff] %v2949_v49 }
  0xf4   :  { %v164_v29 = vpop.f32.mrf.mxu2 }
  0xf6   :  { %v113_v44 = vpop.f32.mrf.mxu0 }
  0xf7   :  { %276 = vadd.xlane.f32.xlu2 %v2853_v43  ;;  %v2889_v1 = vadd.f32 %v187_v59, %v113_v44 }
  0xf9   :  { %242 = vadd.xlane.f32.xlu1 %v2855_v46  ;;  %244 = vadd.xlane.f32.xlu0 %v2857_v47  ;;  %v340_v4 = vmul.f32 %v2889_v1, %v2889_v1 }
  0xfe   :  { %v116_v53 = vpop.f32.mrf.mxu0 }
  0xff   :  { %377 = vadd.xlane.f32.xlu2 %v337_v52  ;;  %v2882_v61 = vadd.f32 %v2876_v58, %v116_v53 }
 0x101   :  { %379 = vadd.xlane.f32.xlu1 %v338_v55  ;;  %381 = vadd.xlane.f32.xlu0 %v339_v56  ;;  %4978 = vst [vmem:[#allocation8_spill] sm:$0xff] %v2882_v61  ;;  %v341_v9 = vmul.f32 %v2882_v61, %v2882_v61  ;;  %v293_v55 = vmul.f32 %v2429_v34, %v292_v42 }
 0x102   :  { %v356_v56 = vmul.f32 %v2949_v49, %v2949_v49 }
 0x106   :  { %v119_v62 = vpop.f32.mrf.mxu0 }
 0x107   :  { %246 = vadd.xlane.f32.xlu2 %v2865_v50  ;;  %v2893_v2 = vadd.f32 %v2887_v0, %v119_v62  ;;  %v294_v62 = vadd.f32 %v2429_v34, %v293_v55 }
 0x109   :  { %4979 = vst [vmem:[#allocation9_spill] sm:$0xff] %v2893_v2  ;;  %248 = vadd.xlane.f32.xlu1 %v2889_v1  ;;  %250 = vadd.xlane.f32.xlu0 %v2882_v61  ;;  %v342_v7 = vmul.f32 %v2893_v2, %v2893_v2 }
 0x10e   :  { %v122_v8 = vpop.f32.mrf.mxu0 }
 0x10f   :  { %383 = vadd.xlane.f32.xlu2 %v340_v4  ;;  %v2913_v14 = vadd.f32 %v190_v10, %v122_v8  ;;  %v2960_v4 = vadd.f32 %v2876_v58, %v164_v29 }
 0x111   :  { %385 = vadd.xlane.f32.xlu1 %v341_v9  ;;  %387 = vadd.xlane.f32.xlu0 %v342_v7  ;;  %4980 = vst [vmem:[#allocation10_spill] sm:$0xff] %v2913_v14  ;;  %v343_v23 = vmul.f32 %v2913_v14, %v2913_v14  ;;  %v2964_v9 = vsel %vm295_vm0, %v2429_v34, %v294_v62 }
 0x112   :  { %4983 = vst [vmem:[#allocation13_spill] sm:$0xff] %v2960_v4  ;;  %v357_v22 = vmul.f32 %v2960_v4, %v2960_v4 }
 0x114   :  { %v2906_v12 = vpop.xlane.xlu0 %226 }
 0x116   :  { %v125_v17 = vpop.f32.mrf.mxu0 }
 0x117   :  { %v2916_v18 = vadd.f32 %v2911_v13, %v125_v17  ;;  %252 = vadd.xlane.f32.xlu2 %v2893_v2 }
 0x119   :  { %4981 = vst [vmem:[#allocation11_spill] sm:$0xff] %v2916_v18  ;;  %254 = vadd.xlane.f32.xlu1 %v2913_v14  ;;  %256 = vadd.xlane.f32.xlu0 %v2916_v18  ;;  %v344_v39 = vmul.f32 %v2916_v18, %v2916_v18 }
 0x11c   :  { %v2921_v19 = vpop.xlane.xlu0 %361  ;;  %v2923_v20 = vpop.xlane.xlu1 %228 }
 0x11e   :  { %v128_v25 = vpop.f32.mrf.mxu0 }
 0x11f   :  { %389 = vadd.xlane.f32.xlu2 %v343_v23  ;;  %v2933_v31 = vadd.f32 %v2736_v45, %v128_v25  ;;  %v167_v45 = vpop.f32.mrf.mxu2 }
 0x120   :  { %v2967_v16 = vadd.f32 %v2887_v0, %v167_v45 }
 0x121   :  { %278 = vadd.xlane.f32.xlu1 %v2927_v26  ;;  %411 = vadd.xlane.f32.xlu0 %v354_v28  ;;  %v345_v40 = vmul.f32 %v2933_v31, %v2933_v31 }
 0x122   :  { %v2935_v32 = vpop.xlane.xlu2 %264 }
 0x124   :  { %v2937_v35 = vpop.xlane.xlu0 %262  ;;  %v2939_v36 = vpop.xlane.xlu1 %397 }
 0x127   :  { %413 = vadd.xlane.f32.xlu2 %v355_v38  ;;  %v170_v59 = vpop.f32.mrf.mxu2  ;;  %v358_v38 = vmul.f32 %v2967_v16, %v2967_v16  ;;  %v131_v55 = vpop.f32.mrf.mxu0 }
 0x128   :  { %v2976_v58 = vadd.f32 %v190_v10, %v170_v59 }
 0x129   :  { %391 = vadd.xlane.f32.xlu1 %v344_v39  ;;  %393 = vadd.xlane.f32.xlu0 %v345_v40 }
 0x12a   :  { %v2947_v44 = vpop.xlane.xlu2 %230  ;;  %4984 = vst [vmem:[#allocation14_spill] sm:$0xff] %v2976_v58  ;;  %v359_v39 = vmul.f32 %v2976_v58, %v2976_v58 }
 0x12c   :  { %v2951_v52 = vpop.xlane.xlu0 %399  ;;  %v364_v53 = vpop.xlane.xlu1 %363 }
 0x12f   :  { %258 = vadd.xlane.f32.xlu2 %v2933_v31  ;;  %v173_v40 = vpop.f32.mrf.mxu2 }
 0x130   :  { %v2991_v45 = vadd.f32 %v2911_v13, %v173_v40  ;;  %v425_v13 = vmul.f32 %v2921_v19, %v2964_v9 }
 0x131   :  { %415 = vadd.xlane.f32.xlu1 %v356_v56  ;;  %280 = vadd.xlane.f32.xlu0 %v2949_v49  ;;  %v2997_v56 = vmul.f32 %v2964_v9, %v2906_v12 }
 0x132   :  { %v2957_v3 = vpop.xlane.xlu2 %365  ;;  %4985 = vst [vmem:[#allocation15_spill] sm:$0xff] %v2991_v45 }
 0x134   :  { %v267_v7 = vpop.xlane.xlu1 %266  ;;  %v2962_v8 = vpop.xlane.xlu0 %232 }
 0x135   :  { %v2970_v17 = vmul.f32 %v2964_v9, %v267_v7  ;;  %v3004_v7 = vadd.f32 %v2751_v51, %v131_v55 }
 0x137   :  { %282 = vadd.xlane.f32.xlu2 %v2960_v4  ;;  %v477_v25 = vmul.f32 %v2970_v17, %v2970_v17  ;;  %4986 = vst [vmem:[#allocation16_spill] sm:$0xff] %v3004_v7  ;;  %v346_v19 = vmul.f32 %v3004_v7, %v3004_v7 }
 0x139   :  { %284 = vadd.xlane.f32.xlu1 %v2967_v16  ;;  %417 = vadd.xlane.f32.xlu0 %v357_v22  ;;  %v360_v22 = vmul.f32 %v2991_v45, %v2991_v45 }
 0x13a   :  { %v402_v23 = vpop.xlane.xlu2 %401 }
 0x13b   :  { %v445_v0 = vmul.f32 %v402_v23, %v2964_v9  ;;  %v457_v23 = vmul.f32 %v2997_v56, %v2997_v56 }
 0x13c   :  { %v2981_v28 = vpop.xlane.xlu0 %268  ;;  %v2983_v29 = vpop.xlane.xlu1 %367 }
 0x13d   :  { %v509_v34 = vsub.f32 %v445_v0, %v477_v25  ;;  %v489_v25 = vsub.f32 %v425_v13, %v457_v23 }
 0x13f   :  { %v541_v10 = vmax.f32 %v509_v34, 0.0  ;;  %419 = vadd.xlane.f32.xlu2 %v358_v38  ;;  %v521_v40 = vmax.f32 %v489_v25, 0.0 }
 0x141   :  { %v605_v41 = vadd.f32 1e-05, %v541_v10  ;;  %421 = vadd.xlane.f32.xlu1 %v359_v39  ;;  %286 = vadd.xlane.f32.xlu0 %v2976_v58  ;;  %v3024_v10 = vmul.f32 %v2964_v9, %v2923_v20  ;;  %v3027_v23 = vadd.f32 1e-05, %v521_v40  ;;  %v3038_v20 = vmul.f32 %v2964_v9, %v2947_v44 }
 0x142   :  { %v2993_v42 = vpop.xlane.xlu2 %234 }
 0x143   :  { %2430 = vrsqrt.f32 %v605_v41  ;;  %vm823_vm2 = vweird.f32 %v605_v41  ;;  %vm623_vm6 = vweird.f32 %v3027_v23 }
 0x144   :  { %v2999_v62 = vpop.xlane.xlu1 %403  ;;  %v3001_v59 = vpop.xlane.xlu0 %369  ;;  %2432 = vrsqrt.f32 %v3027_v23 }
 0x147   :  { %288 = vadd.xlane.f32.xlu2 %v2991_v45 }
 0x149   :  { %v2431_v12 = vpop.eup %2430  ;;  %423 = vadd.xlane.f32.xlu0 %v360_v22  ;;  %260 = vadd.xlane.f32.xlu1 %v3004_v7  ;;  %v426_v22 = vmul.f32 %v364_v53, %v2964_v9  ;;  %v427_v53 = vmul.f32 %v2957_v3, %v2964_v9 }
 0x14a   :  { %v818_v0 = vmul.f32 %v2431_v12, %v605_v41  ;;  %v3014_v34 = vpop.xlane.xlu2 %270  ;;  %vm824_vm1 = vweird.f32 %v2431_v12  ;;  %v459_v41 = vmul.f32 %v3038_v20, %v3038_v20  ;;  %v3054_v43 = vpop.eup %2432 }
 0x14b   :  { %vm825_vm3 = vmor %vm823_vm2, %vm824_vm1  ;;  %vm624_vm4 = vweird.f32 %v3054_v43 }
 0x14c   :  { %v819_v51 = vmul.f32 %v2431_v12, %v818_v0  ;;  %v3016_v38 = vpop.xlane.xlu0 %405  ;;  %v3018_v39 = vpop.xlane.xlu1 %236  ;;  %v458_v0 = vmul.f32 %v3024_v10, %v3024_v10  ;;  %vm625_vm8 = vmor %vm623_vm6, %vm624_vm4 }
 0x14e   :  { %v820_v55 = vmul.f32 0.5, %v819_v51  ;;  %v490_v4 = vsub.f32 %v426_v22, %v458_v0  ;;  %v491_v0 = vsub.f32 %v427_v53, %v459_v41 }
 0x14f   :  { %395 = vadd.xlane.f32.xlu2 %v346_v19 }
 0x150   :  { %v821_v13 = vsub.f32 1.5, %v820_v55  ;;  %v522_v40 = vmax.f32 %v490_v4, 0.0  ;;  %v573_v55 = vsub.f32 %v2788_v6, %v2970_v17  ;;  %v3064_v6 = vmul.f32 %v2964_v9, %v2962_v8 }
 0x151   :  { %v523_v53 = vmax.f32 %v491_v0, 0.0  ;;  %v3080_v0 = vmul.f32 %v2964_v9, %v2993_v42 }
 0x152   :  { %v3031_v45 = vpop.xlane.xlu2 %371  ;;  %v822_v58 = vmul.f32 %v2431_v12, %v821_v13 }
 0x153   :  { %v3076_v33 = vadd.f32 1e-05, %v523_v53  ;;  %v429_v53 = vmul.f32 %v3001_v59, %v2964_v9 }
 0x154   :  { %v273_v25 = vpop.xlane.xlu1 %272  ;;  %v3033_v49 = vpop.xlane.xlu0 %238  ;;  %v826_v19 = vsel %vm825_vm3, %v2431_v12, %v822_v58  ;;  %v618_v12 = vmul.f32 %v3054_v43, %v3027_v23 }
 0x155   :  { %v3043_v51 = vmul.f32 %v2964_v9, %v273_v25  ;;  %v3049_v13 = vmul.f32 %v826_v19, %v573_v55  ;;  %v3056_v25 = vadd.f32 1e-05, %v522_v40  ;;  %v428_v19 = vmul.f32 %v2983_v29, %v2964_v9 }
 0x156   :  { %v460_v40 = vmul.f32 %v3064_v6, %v3064_v6  ;;  %v619_v8 = vmul.f32 %v3054_v43, %v618_v12  ;;  %v461_v12 = vmul.f32 %v3080_v0, %v3080_v0  ;;  %vm643_vm14 = vweird.f32 %v3076_v33 }
 0x157   :  { %4987 = vst [vmem:[#allocation17_spill] sm:$0xff] %v3049_v13  ;;  %v480_v44 = vmul.f32 %v3043_v51, %v3043_v51  ;;  %2434 = vrsqrt.f32 %v3056_v25  ;;  %v576_v61 = vsub.f32 %v2825_v27, %v3043_v51  ;;  %vm633_vm11 = vweird.f32 %v3056_v25 }
 0x158   :  { %v620_v21 = vmul.f32 0.5, %v619_v8  ;;  %v493_v8 = vsub.f32 %v429_v53, %v461_v12 }
 0x15a   :  { %v408_v22 = vpop.xlane.xlu2 %407  ;;  %v621_v13 = vsub.f32 1.5, %v620_v21  ;;  %v525_v12 = vmax.f32 %v493_v8, 0.0 }
 0x15b   :  { %v448_v3 = vmul.f32 %v408_v22, %v2964_v9 }
 0x15c   :  { %v3058_v4 = vpop.xlane.xlu0 %274  ;;  %v3060_v58 = vpop.xlane.xlu1 %373  ;;  %v622_v21 = vmul.f32 %v3054_v43, %v621_v13  ;;  %v3123_v8 = vadd.f32 1e-05, %v525_v12 }
 0x15d   :  { %4988 = vst [vmem:[#allocation18_spill] sm:$0xff] %v3058_v4  ;;  %v512_v17 = vsub.f32 %v448_v3, %v480_v44  ;;  %v492_v44 = vsub.f32 %v428_v19, %v460_v40  ;;  %v3109_v4 = vmul.f32 %v2964_v9, %v3018_v39  ;;  %v431_v27 = vmul.f32 %v3060_v58, %v2964_v9 }
 0x15e   :  { %vm663_vm4 = vweird.f32 %v3123_v8 }
 0x15f   :  { %v544_v55 = vmax.f32 %v512_v17, 0.0  ;;  %v3086_v17 = vpop.eup %2434  ;;  %v462_v13 = vmul.f32 %v3109_v4, %v3109_v4 }
 0x160   :  { %v628_v42 = vmul.f32 %v3086_v17, %v3056_v25  ;;  %vm634_vm10 = vweird.f32 %v3086_v17 }
 0x161   :  { %v608_v41 = vadd.f32 1e-05, %v544_v55  ;;  %v524_v55 = vmax.f32 %v492_v44, 0.0  ;;  %vm3165_vm12 = vmor %vm633_vm11, %vm634_vm10 }
 0x162   :  { %v3073_v22 = vpop.xlane.xlu2 %240  ;;  %v629_v59 = vmul.f32 %v3086_v17, %v628_v42 }
 0x163   :  { %2436 = vrsqrt.f32 %v608_v41  ;;  %v3097_v18 = vadd.f32 1e-05, %v524_v55  ;;  %vm853_vm7 = vweird.f32 %v608_v41 }
 0x164   :  { %v3082_v29 = vpop.xlane.xlu1 %409  ;;  %v3084_v3 = vpop.xlane.xlu0 %375  ;;  %2438 = vrsqrt.f32 %v3076_v33  ;;  %v630_v42 = vmul.f32 0.5, %v629_v59  ;;  %v626_v59 = vsel %vm625_vm8, %v3054_v43, %v622_v21  ;;  %v3143_v43 = vld [vmem:[%s4952_s2 + $0x311] ss:$0 sm:$0xff] }
 0x165   :  { %4989 = vst [vmem:[#allocation19_spill] sm:$0xff] %v3082_v29  ;;  %2440 = vrsqrt.f32 %v3097_v18  ;;  %vm653_vm1 = vweird.f32 %v3097_v18 }
 0x166   :  { %v631_v7 = vsub.f32 1.5, %v630_v42  ;;  %2442 = vrsqrt.f32 %v3123_v8 }
 0x169   :  { %v2437_v19 = vpop.eup %2436 }
 0x16a   :  { %v848_v40 = vmul.f32 %v2437_v19, %v608_v41  ;;  %v3095_v11 = vpop.xlane.xlu2 %276  ;;  %v3103_v29 = vpop.eup %2438  ;;  %vm854_vm5 = vweird.f32 %v2437_v19  ;;  %v553_v41 = vsub.f32 %v2742_v48, %v2997_v56 }
 0x16b   :  { %4990 = vst [vmem:[#allocation20_spill] sm:$0xff] %v3095_v11  ;;  %v638_v55 = vmul.f32 %v3103_v29, %v3076_v33  ;;  %vm855_vm9 = vmor %vm853_vm7, %vm854_vm5  ;;  %vm644_vm13 = vweird.f32 %v3103_v29 }
 0x16c   :  { %v849_v14 = vmul.f32 %v2437_v19, %v848_v40  ;;  %v3099_v60 = vpop.xlane.xlu1 %242  ;;  %v3101_v44 = vpop.xlane.xlu0 %244  ;;  %v937_v12 = vmul.f32 %v626_v59, %v553_v41  ;;  %v3178_v59 = vmul.f32 %v2964_v9, %v3073_v22  ;;  %vm3200_vm15 = vmor %vm643_vm14, %vm644_vm13 }
 0x16d   :  { %v639_v11 = vmul.f32 %v3103_v29, %v638_v55  ;;  %v3138_v55 = vmul.f32 %v2964_v9, %v3033_v49  ;;  %v632_v49 = vmul.f32 %v3086_v17, %v631_v7 }
 0x16e   :  { %v850_v2 = vmul.f32 0.5, %v849_v14  ;;  %v430_v14 = vmul.f32 %v3031_v45, %v2964_v9 }
 0x16f   :  { %v640_v21 = vmul.f32 0.5, %v639_v11  ;;  %v463_v51 = vmul.f32 %v3138_v55, %v3138_v55  ;;  %v970_v11 = vmul.f32 %v3143_v43, %v937_v12  ;;  %v554_v12 = vsub.f32 %v2757_v54, %v3024_v10 }
 0x170   :  { %v851_v53 = vsub.f32 1.5, %v850_v2  ;;  %v494_v57 = vsub.f32 %v430_v14, %v462_v13  ;;  %v432_v54 = vmul.f32 %v3084_v3, %v2964_v9 }
 0x171   :  { %v641_v7 = vsub.f32 1.5, %v640_v21  ;;  %v495_v14 = vsub.f32 %v431_v27, %v463_v51 }
 0x172   :  { %v852_v40 = vmul.f32 %v2437_v19, %v851_v53  ;;  %v3118_v39 = vpop.xlane.xlu2 %377  ;;  %v3130_v53 = vpop.eup %2440  ;;  %v526_v56 = vmax.f32 %v494_v57, 0.0 }
 0x173   :  { %v648_v48 = vmul.f32 %v3130_v53, %v3097_v18  ;;  %v3183_v41 = vpop.eup %2442  ;;  %vm654_vm0 = vweird.f32 %v3130_v53 }
 0x174   :  { %v3125_v2 = vpop.xlane.xlu1 %379  ;;  %v3127_v23 = vpop.xlane.xlu0 %381  ;;  %v856_v45 = vsel %vm855_vm9, %v2437_v19, %v852_v40  ;;  %v3174_v25 = vadd.f32 1e-05, %v526_v56  ;;  %v527_v56 = vmax.f32 %v495_v14, 0.0  ;;  %v658_v22 = vmul.f32 %v3183_v41, %v3123_v8  ;;  %vm655_vm2 = vmor %vm653_vm1, %vm654_vm0 }
 0x175   :  { %v3145_v19 = vmul.f32 %v856_v45, %v576_v61  ;;  %v3163_v61 = vld [vmem:[%s4952_s2 + $0x312] ss:$0 sm:$0xff]  ;;  %v649_v57 = vmul.f32 %v3130_v53, %v648_v48  ;;  %v636_v45 = vsel %vm3165_vm12, %v3086_v17, %v632_v49  ;;  %v642_v48 = vmul.f32 %v3103_v29, %v641_v7 }
 0x176   :  { %v1003_v21 = vadd.f32 %v3163_v61, %v970_v11  ;;  %v938_v51 = vmul.f32 %v636_v45, %v554_v12  ;;  %2444 = vrsqrt.f32 %v3174_v25  ;;  %v464_v17 = vmul.f32 %v3178_v59, %v3178_v59 }
 0x177   :  { %4991 = vst [vmem:[#allocation21_spill] sm:$0xff] %v3145_v19  ;;  %v650_v27 = vmul.f32 0.5, %v649_v57  ;;  %v3204_v11 = vadd.f32 1e-05, %v527_v56  ;;  %v646_v3 = vsel %vm3200_vm15, %v3103_v29, %v642_v48  ;;  %v659_v14 = vmul.f32 %v3183_v41, %v658_v22 }
 0x178   :  { %v971_v57 = vmul.f32 %v3143_v43, %v938_v51  ;;  %v496_v45 = vsub.f32 %v432_v54, %v464_v17  ;;  %v3217_v12 = vmul.f32 %v2964_v9, %v3099_v60  ;;  %v433_v51 = vmul.f32 %v3118_v39, %v2964_v9 }
 0x179   :  { %v651_v33 = vsub.f32 1.5, %v650_v27  ;;  %2446 = vrsqrt.f32 %v3204_v11  ;;  %v660_v22 = vmul.f32 0.5, %v659_v14  ;;  %v3238_v39 = vmul.f32 %v2964_v9, %v3101_v44 }
 0x17a   :  { %v3156_v42 = vpop.xlane.xlu2 %246  ;;  %v1004_v29 = vadd.f32 %v3163_v61, %v971_v57  ;;  %v528_v60 = vmax.f32 %v496_v45, 0.0  ;;  %v465_v17 = vmul.f32 %v3217_v12, %v3217_v12  ;;  %v434_v14 = vmul.f32 %v3125_v2, %v2964_v9 }
 0x17b   :  { %v652_v27 = vmul.f32 %v3130_v53, %v651_v33  ;;  %v556_v44 = vsub.f32 %v2786_v5, %v3064_v6  ;;  %vm664_vm3 = vweird.f32 %v3183_v41  ;;  %vm673_vm7 = vweird.f32 %v3174_v25 }
 0x17c   :  { %v3170_v40 = vpop.xlane.xlu1 %248  ;;  %v3172_v13 = vpop.xlane.xlu0 %250  ;;  %v497_v54 = vsub.f32 %v433_v51, %v465_v17  ;;  %v3243_v33 = vadd.f32 1e-05, %v528_v60  ;;  %v3265_v60 = vmul.f32 %v2964_v9, %v3156_v42  ;;  %vm665_vm5 = vmor %vm663_vm4, %vm664_vm3  ;;  %v557_v42 = vsub.f32 %v2804_v15, %v3080_v0 }
 0x17d   :  { %v3221_v56 = vpop.eup %2444  ;;  %v656_v45 = vsel %vm655_vm2, %v3130_v53, %v652_v27  ;;  %vm683_vm10 = vweird.f32 %v3204_v11 }
 0x17e   :  { %v940_v2 = vmul.f32 %v656_v45, %v556_v44  ;;  %2448 = vrsqrt.f32 %v3243_v33  ;;  %vm674_vm6 = vweird.f32 %v3221_v56  ;;  %vm693_vm13 = vweird.f32 %v3243_v33 }
 0x17f   :  { %v3248_v18 = vpop.eup %2446  ;;  %vm3309_vm8 = vmor %vm673_vm7, %vm674_vm6 }
 0x180   :  { %v678_v53 = vmul.f32 %v3248_v18, %v3204_v11  ;;  %vm684_vm9 = vweird.f32 %v3248_v18 }
 0x181   :  { %vm3354_vm11 = vmor %vm683_vm10, %vm684_vm9 }
 0x182   :  { %v3198_v10 = vpop.xlane.xlu2 %383 }
 0x183   :  { %1035 = vxpose.xlu1.b32.start [1/16] %v1003_v21, 128  ;;  %v555_v21 = vsub.f32 %v2776_v63, %v3038_v20  ;;  %v668_v63 = vmul.f32 %v3221_v56, %v3174_v25 }
 0x184   :  { %v3206_v58 = vpop.xlane.xlu1 %385  ;;  %v3208_v7 = vpop.xlane.xlu0 %387 }
 0x185   :  { %v939_v48 = vmul.f32 %v646_v3, %v555_v21  ;;  %v661_v3 = vsub.f32 1.5, %v660_v22  ;;  %v669_v21 = vmul.f32 %v3221_v56, %v668_v63  ;;  %v3279_v8 = vpop.eup %2448 }
 0x186   :  { %vm694_vm12 = vweird.f32 %v3279_v8 }
 0x187   :  { %v972_v57 = vmul.f32 %v3143_v43, %v939_v48  ;;  %v529_v48 = vmax.f32 %v497_v54, 0.0  ;;  %v662_v5 = vmul.f32 %v3183_v41, %v661_v3  ;;  %v670_v6 = vmul.f32 0.5, %v669_v21  ;;  %vm3412_vm14 = vmor %vm693_vm13, %vm694_vm12 }
 0x188   :  { %v467_v21 = vmul.f32 %v3265_v60, %v3265_v60 }
 0x189   :  { %v1005_v22 = vadd.f32 %v3163_v61, %v972_v57  ;;  %v3270_v63 = vadd.f32 1e-05, %v529_v48  ;;  %v679_v57 = vmul.f32 %v3248_v18, %v678_v53  ;;  %v666_v3 = vsel %vm665_vm5, %v3183_v41, %v662_v5 }
 0x18a   :  { %v3233_v20 = vpop.xlane.xlu2 %252  ;;  %v671_v44 = vsub.f32 1.5, %v670_v6  ;;  %v941_v41 = vmul.f32 %v666_v3, %v557_v42  ;;  %v3298_v6 = vmul.f32 %v2964_v9, %v2937_v35 }
 0x18b   :  { %1036 = vxpose.xlu1.b32.cont [2/16] %v1004_v29, 128  ;;  %v466_v29 = vmul.f32 %v3238_v39, %v3238_v39  ;;  %2450 = vrsqrt.f32 %v3270_v63  ;;  %vm703_vm0 = vweird.f32 %v3270_v63 }
 0x18c   :  { %v3240_v49 = vpop.xlane.xlu1 %254  ;;  %v3253_v51 = vpop.xlane.xlu0 %256  ;;  %v672_v0 = vmul.f32 %v3221_v56, %v671_v44 }
 0x18d   :  { %v498_v27 = vsub.f32 %v434_v14, %v466_v29  ;;  %v973_v14 = vmul.f32 %v3143_v43, %v940_v2  ;;  %v435_v29 = vmul.f32 %v3127_v23, %v2964_v9  ;;  %v680_v2 = vmul.f32 0.5, %v679_v57 }
 0x18f   :  { %v530_v45 = vmax.f32 %v498_v27, 0.0  ;;  %v1006_v15 = vadd.f32 %v3163_v61, %v973_v14  ;;  %v688_v27 = vmul.f32 %v3279_v8, %v3243_v33  ;;  %v499_v5 = vsub.f32 %v435_v29, %v467_v21 }
 0x190   :  { %v974_v14 = vmul.f32 %v3143_v43, %v941_v41  ;;  %v681_v35 = vsub.f32 1.5, %v680_v2  ;;  %v676_v29 = vsel %vm3309_vm8, %v3221_v56, %v672_v0  ;;  %v558_v41 = vsub.f32 %v2818_v24, %v3109_v4 }
 0x191   :  { %v3289_v53 = vadd.f32 1e-05, %v530_v45  ;;  %v3307_v3 = vpop.eup %2450  ;;  %v689_v25 = vmul.f32 %v3279_v8, %v688_v27  ;;  %v531_v44 = vmax.f32 %v499_v5, 0.0  ;;  %v475_v2 = vmul.f32 %v3298_v6, %v3298_v6 }
 0x192   :  { %v3267_v17 = vpop.xlane.xlu2 %389  ;;  %v1007_v5 = vadd.f32 %v3163_v61, %v974_v14  ;;  %v436_v24 = vmul.f32 %v3198_v10, %v2964_v9  ;;  %v942_v4 = vmul.f32 %v676_v29, %v558_v41  ;;  %vm704_vm15 = vweird.f32 %v3307_v3 }
 0x193   :  { %1037 = vxpose.xlu1.b32.cont [3/16] %v1005_v22, 128  ;;  %2452 = vrsqrt.f32 %v3289_v53  ;;  %v690_v56 = vmul.f32 0.5, %v689_v25  ;;  %v3335_v0 = vadd.f32 1e-05, %v531_v44  ;;  %vm3442_vm1 = vmor %vm703_vm0, %vm704_vm15  ;;  %vm713_vm2 = vweird.f32 %v3289_v53 }
 0x194   :  { %v279_v54 = vpop.xlane.xlu1 %278  ;;  %v3287_v22 = vpop.xlane.xlu0 %411 }
 0x195   :  { %v3285_v48 = vmul.f32 %v2964_v9, %v279_v54  ;;  %vm723_vm12 = vweird.f32 %v3335_v0 }
 0x197   :  { %v483_v54 = vmul.f32 %v3285_v48, %v3285_v48 }
 0x199   :  { %v3339_v19 = vpop.eup %2452 }
 0x19a   :  { %v414_v23 = vpop.xlane.xlu2 %413  ;;  %vm714_vm3 = vweird.f32 %v3339_v19 }
 0x19b   :  { %1038 = vxpose.xlu1.b32.cont [4/16] %v1006_v15, 128  ;;  %v451_v57 = vmul.f32 %v414_v23, %v2964_v9  ;;  %v3322_v15 = vmul.f32 %v2964_v9, %v3170_v40  ;;  %v698_v23 = vmul.f32 %v3307_v3, %v3270_v63  ;;  %v443_v40 = vmul.f32 %v2939_v36, %v2964_v9  ;;  %vm3488_vm6 = vmor %vm713_vm2, %vm714_vm3 }
 0x19c   :  { %v3304_v45 = vpop.xlane.xlu1 %391  ;;  %v394_v42 = vpop.xlane.xlu0 %393  ;;  %v3350_v36 = vmul.f32 %v2964_v9, %v2935_v32  ;;  %v975_v32 = vmul.f32 %v3143_v43, %v942_v4  ;;  %v3378_v4 = vmul.f32 %v2964_v9, %v3172_v13  ;;  %v444_v13 = vmul.f32 %v2951_v52, %v2964_v9 }
 0x19d   :  { %v515_v21 = vsub.f32 %v451_v57, %v483_v54  ;;  %v682_v54 = vmul.f32 %v3248_v18, %v681_v35  ;;  %v468_v14 = vmul.f32 %v3322_v15, %v3322_v15  ;;  %v441_v10 = vmul.f32 %v394_v42, %v2964_v9 }
 0x19e   :  { %v507_v25 = vsub.f32 %v443_v40, %v475_v2  ;;  %v699_v11 = vmul.f32 %v3307_v3, %v698_v23  ;;  %v691_v40 = vsub.f32 1.5, %v690_v56  ;;  %v708_v23 = vmul.f32 %v3339_v19, %v3289_v53 }
 0x19f   :  { %v547_v27 = vmax.f32 %v515_v21, 0.0  ;;  %v500_v41 = vsub.f32 %v436_v24, %v468_v14  ;;  %v686_v2 = vsel %vm3354_vm11, %v3248_v18, %v682_v54  ;;  %v1228_v24 = vld [vmem:[%s4952_s2 + $0x300] sm:$0xff]  ;;  %v476_v18 = vmul.f32 %v3350_v36, %v3350_v36 }
 0x1a0   :  { %1250 = vmatpush.msrb.mxu2 %v1228_v24  ;;  %v1008_v44 = vadd.f32 %v3163_v61, %v975_v32  ;;  %v561_v63 = vsub.f32 %v2855_v46, %v3217_v12 }
 0x1a1   :  { %v3337_v57 = vadd.f32 1e-05, %v547_v27  ;;  %v532_v56 = vmax.f32 %v500_v41, 0.0 }
 0x1a2   :  { %v259_v21 = vpop.xlane.xlu2 %258 }
 0x1a3   :  { %v3346_v35 = vmul.f32 %v2964_v9, %v259_v21  ;;  %1039 = vxpose.xlu1.b32.cont [5/16] %v1007_v5, 128  ;;  %2454 = vrsqrt.f32 %v3337_v57  ;;  %v559_v5 = vsub.f32 %v2829_v30, %v3138_v55  ;;  %v539_v30 = vmax.f32 %v507_v25, 0.0 }
 0x1a4   :  { %v3360_v29 = vpop.xlane.xlu1 %415  ;;  %2456 = vrsqrt.f32 %v3335_v0  ;;  %v700_v55 = vmul.f32 0.5, %v699_v11  ;;  %v437_v21 = vmul.f32 %v3206_v58, %v2964_v9  ;;  %v692_v25 = vmul.f32 %v3279_v8, %v691_v40 }
 0x1a5   :  { %5000 = vst [vmem:[#allocation22_spill] sm:$0xff] %v3360_v29  ;;  %v473_v27 = vmul.f32 %v3346_v35, %v3346_v35  ;;  %v943_v54 = vmul.f32 %v686_v2, %v559_v5  ;;  %v469_v11 = vmul.f32 %v3378_v4, %v3378_v4  ;;  %v3398_v58 = vmul.f32 %v2964_v9, %v3233_v20 }
 0x1a6   :  { %v3406_v2 = vadd.f32 1e-05, %v539_v30  ;;  %v701_v5 = vsub.f32 1.5, %v700_v55  ;;  %v3416_v24 = vadd.f32 1e-05, %v532_v56  ;;  %v696_v33 = vsel %vm3412_vm14, %v3279_v8, %v692_v25 }
 0x1a7   :  { %v505_v42 = vsub.f32 %v441_v10, %v473_v27  ;;  %v709_v10 = vmul.f32 %v3339_v19, %v708_v23  ;;  %v976_v23 = vmul.f32 %v3143_v43, %v943_v54  ;;  %v560_v55 = vsub.f32 %v2843_v37, %v3178_v59 }
 0x1a8   :  { %v470_v56 = vmul.f32 %v3398_v58, %v3398_v58  ;;  %v438_v59 = vmul.f32 %v3208_v7, %v2964_v9  ;;  %vm883_vm9 = vweird.f32 %v3337_v57  ;;  %vm733_vm2 = vweird.f32 %v3416_v24 }
 0x1a9   :  { %v537_v14 = vmax.f32 %v505_v42, 0.0  ;;  %v3385_v29 = vpop.eup %2454  ;;  %v501_v42 = vsub.f32 %v437_v21, %v469_v11  ;;  %v710_v30 = vmul.f32 0.5, %v709_v10  ;;  %v1009_v8 = vadd.f32 %v3163_v61, %v976_v23 }
 0x1aa   :  { %v3391_v27 = vpop.xlane.xlu2 %282  ;;  %v878_v41 = vmul.f32 %v3385_v29, %v3337_v57  ;;  %v3404_v52 = vpop.eup %2456  ;;  %v502_v20 = vsub.f32 %v438_v59, %v470_v56  ;;  %vm884_vm7 = vweird.f32 %v3385_v29  ;;  %v569_v57 = vsub.f32 %v2933_v31, %v3346_v35 }
 0x1ab   :  { %v3402_v32 = vadd.f32 1e-05, %v537_v14  ;;  %1040 = vxpose.xlu1.b32.cont [6/16] %v1008_v44, 128  ;;  %v508_v14 = vsub.f32 %v444_v13, %v476_v18  ;;  %v718_v54 = vmul.f32 %v3404_v52, %v3335_v0  ;;  %v702_v18 = vmul.f32 %v3307_v3, %v701_v5  ;;  %vm3521_vm10 = vmor %vm883_vm9, %vm884_vm7 }
 0x1ac   :  { %v285_v40 = vpop.xlane.xlu1 %284  ;;  %v879_v44 = vmul.f32 %v3385_v29, %v878_v41  ;;  %v533_v37 = vmax.f32 %v501_v42, 0.0  ;;  %v944_v13 = vmul.f32 %v696_v33, %v560_v55  ;;  %v711_v25 = vsub.f32 1.5, %v710_v30 }
 0x1ad   :  { %2458 = vrsqrt.f32 %v3402_v32  ;;  %v3430_v21 = vmul.f32 %v2964_v9, %v285_v40  ;;  %v540_v10 = vmax.f32 %v508_v14, 0.0  ;;  %v719_v23 = vmul.f32 %v3404_v52, %v718_v54 }
 0x1ae   :  { %2460 = vrsqrt.f32 %v3406_v2  ;;  %v880_v11 = vmul.f32 0.5, %v879_v44  ;;  %v706_v44 = vsel %vm3442_vm1, %v3307_v3, %v702_v18  ;;  %v3460_v33 = vadd.f32 1e-05, %v533_v37 }
 0x1af   :  { %2462 = vrsqrt.f32 %v3416_v24  ;;  %v486_v42 = vmul.f32 %v3430_v21, %v3430_v21  ;;  %v3464_v55 = vmul.f32 %v2964_v9, %v3240_v49  ;;  %v977_v46 = vmul.f32 %v3143_v43, %v944_v13 }
 0x1b0   :  { %v712_v56 = vmul.f32 %v3339_v19, %v711_v25  ;;  %v720_v3 = vmul.f32 0.5, %v719_v23  ;;  %v534_v18 = vmax.f32 %v502_v20, 0.0  ;;  %v945_v5 = vmul.f32 %v706_v44, %v561_v63 }
 0x1b1   :  { %v439_v49 = vmul.f32 %v3267_v17, %v2964_v9  ;;  %vm783_vm4 = vweird.f32 %v3402_v32  ;;  %2464 = vrsqrt.f32 %v3460_v33  ;;  %v471_v13 = vmul.f32 %v3464_v55, %v3464_v55 }
 0x1b2   :  { %v420_v41 = vpop.xlane.xlu2 %419  ;;  %v721_v63 = vsub.f32 1.5, %v720_v3  ;;  %v978_v53 = vmul.f32 %v3143_v43, %v945_v5  ;;  %v716_v44 = vsel %vm3488_vm6, %v3339_v19, %v712_v56  ;;  %v562_v3 = vsub.f32 %v2857_v47, %v3238_v39 }
 0x1b3   :  { %v3440_v40 = vpop.eup %2458  ;;  %v454_v7 = vmul.f32 %v420_v41, %v2964_v9  ;;  %1041 = vxpose.xlu1.b32.cont [7/16] %v1009_v8, 128  ;;  %v881_v8 = vsub.f32 1.5, %v880_v11  ;;  %v1010_v11 = vadd.f32 %v3163_v61, %v977_v46  ;;  %v503_v46 = vsub.f32 %v439_v49, %v471_v13 }
 0x1b4   :  { %v778_v14 = vmul.f32 %v3440_v40, %v3402_v32  ;;  %v3455_v30 = vpop.xlane.xlu1 %421  ;;  %v3467_v12 = vpop.eup %2460  ;;  %vm784_vm5 = vweird.f32 %v3440_v40  ;;  %vm724_vm11 = vweird.f32 %v3404_v52  ;;  %v579_v31 = vsub.f32 %v2927_v26, %v3285_v48 }
 0x1b5   :  { %v518_v54 = vsub.f32 %v454_v7, %v486_v42  ;;  %v3472_v41 = vpop.eup %2462  ;;  %v882_v23 = vmul.f32 %v3385_v29, %v881_v8  ;;  %vm3498_vm8 = vmor %vm783_vm4, %vm784_vm5  ;;  %v946_v5 = vmul.f32 %v716_v44, %v562_v3  ;;  %v722_v49 = vmul.f32 %v3404_v52, %v721_v63 }
 0x1b6   :  { %v779_v59 = vmul.f32 %v3440_v40, %v778_v14  ;;  %v728_v32 = vmul.f32 %v3472_v41, %v3416_v24  ;;  %v798_v63 = vmul.f32 %v3467_v12, %v3406_v2  ;;  %vm3565_vm13 = vmor %vm723_vm12, %vm724_vm11  ;;  %vm734_vm14 = vweird.f32 %v3472_v41 }
 0x1b7   :  { %v550_v37 = vmax.f32 %v518_v54, 0.0  ;;  %v3507_v54 = vadd.f32 1e-05, %v534_v18  ;;  %v3535_v56 = vpop.eup %2464  ;;  %v3604_v14 = vmul.f32 %v2964_v9, %v3014_v34  ;;  %vm3610_vm3 = vmor %vm733_vm2, %vm734_vm14  ;;  %vm743_vm5 = vweird.f32 %v3460_v33 }
 0x1b8   :  { %v780_v42 = vmul.f32 0.5, %v779_v59  ;;  %v3511_v59 = vadd.f32 1e-05, %v540_v10  ;;  %v729_v10 = vmul.f32 %v3472_v41, %v728_v32  ;;  %v738_v48 = vmul.f32 %v3535_v56, %v3460_v33 }
 0x1b9   :  { %v3481_v25 = vadd.f32 1e-05, %v550_v37  ;;  %v3517_v37 = vmul.f32 %v2964_v9, %v3253_v51  ;;  %v886_v51 = vsel %vm3521_vm10, %v3385_v29, %v882_v23  ;;  %v440_v29 = vmul.f32 %v3304_v45, %v2964_v9 }
 0x1ba   :  { %v781_v20 = vsub.f32 1.5, %v780_v42  ;;  %v3496_v7 = vpop.xlane.xlu2 %288  ;;  %v1011_v42 = vadd.f32 %v3163_v61, %v978_v53  ;;  %v3550_v32 = vmul.f32 %v886_v51, %v579_v31  ;;  %v730_v26 = vmul.f32 0.5, %v729_v10 }
 0x1bb   :  { %2466 = vrsqrt.f32 %v3481_v25  ;;  %1042 = vxpose.xlu1.b32.cont [8/16] %v1010_v11, 128  ;;  %v472_v18 = vmul.f32 %v3517_v37, %v3517_v37  ;;  %v3560_v45 = vmul.f32 %v2964_v9, %v2981_v28  ;;  %v726_v28 = vsel %vm3565_vm13, %v3404_v52, %v722_v49 }
 0x1bc   :  { %v782_v8 = vmul.f32 %v3440_v40, %v781_v20  ;;  %v261_v39 = vpop.xlane.xlu1 %260  ;;  %2468 = vrsqrt.f32 %v3507_v54  ;;  %v563_v10 = vsub.f32 %v2865_v50, %v3265_v60  ;;  %v446_v52 = vmul.f32 %v2999_v62, %v2964_v9 }
 0x1bd   :  { %v3547_v11 = vmul.f32 %v2964_v9, %v261_v39  ;;  %2470 = vrsqrt.f32 %v3511_v59  ;;  %v504_v0 = vsub.f32 %v440_v29, %v472_v18  ;;  %v739_v39 = vmul.f32 %v3535_v56, %v738_v48 }
 0x1be   :  { %v786_v47 = vsel %vm3498_vm8, %v3440_v40, %v782_v8  ;;  %v535_v40 = vmax.f32 %v503_v46, 0.0  ;;  %v979_v8 = vmul.f32 %v3143_v43, %v946_v5  ;;  %v478_v31 = vmul.f32 %v3560_v45, %v3560_v45 }
 0x1bf   :  { %v953_v35 = vmul.f32 %v786_v47, %v569_v57  ;;  %v474_v19 = vmul.f32 %v3547_v11, %v3547_v11  ;;  %v731_v47 = vsub.f32 1.5, %v730_v26  ;;  %v740_v62 = vmul.f32 0.5, %v739_v39 }
 0x1c0   :  { %v3575_v3 = vadd.f32 1e-05, %v535_v40  ;;  %v1012_v49 = vadd.f32 %v3163_v61, %v979_v8  ;;  %v536_v40 = vmax.f32 %v504_v0, 0.0  ;;  %vm913_vm0 = vweird.f32 %v3481_v25 }
 0x1c1   :  { %v2467_v13 = vpop.eup %2466  ;;  %v986_v17 = vmul.f32 %v3143_v43, %v953_v35  ;;  %v947_v35 = vmul.f32 %v726_v28, %v563_v10  ;;  %v732_v29 = vmul.f32 %v3472_v41, %v731_v47  ;;  %v799_v26 = vmul.f32 %v3467_v12, %v798_v63 }
 0x1c2   :  { %v908_v23 = vmul.f32 %v2467_v13, %v3481_v25  ;;  %v396_v20 = vpop.xlane.xlu2 %395  ;;  %v3579_v57 = vpop.eup %2468  ;;  %vm914_vm15 = vweird.f32 %v2467_v13  ;;  %2472 = vrsqrt.f32 %v3575_v3  ;;  %v510_v48 = vsub.f32 %v446_v52, %v478_v31 }
 0x1c3   :  { %1043 = vxpose.xlu1.b32.cont [9/16] %v1011_v42, 128  ;;  %v442_v44 = vmul.f32 %v396_v20, %v2964_v9  ;;  %v1019_v46 = vadd.f32 %v3163_v61, %v986_v17  ;;  %v3590_v50 = vpop.eup %2470  ;;  %v748_v60 = vmul.f32 %v3579_v57, %v3507_v54  ;;  %vm915_vm1 = vmor %vm913_vm0, %vm914_vm15  ;;  %v741_v34 = vsub.f32 1.5, %v740_v62 }
 0x1c4   :  { %v909_v53 = vmul.f32 %v2467_v13, %v908_v23  ;;  %v582_v23 = vsub.f32 %v2967_v16, %v3430_v21  ;;  %v3615_v21 = vadd.f32 1e-05, %v536_v40  ;;  %v736_v24 = vsel %vm3610_vm3, %v3472_v41, %v732_v29 }
 0x1c5   :  { %1067 = vxpose.xlu2.b32.start [1/16] %v1019_v46, 128  ;;  %v506_v18 = vsub.f32 %v442_v44, %v474_v19  ;;  %v749_v16 = vmul.f32 %v3579_v57, %v748_v60  ;;  %v800_v46 = vmul.f32 0.5, %v799_v26  ;;  %v808_v8 = vmul.f32 %v3590_v50, %v3511_v59 }
 0x1c6   :  { %v910_v51 = vmul.f32 0.5, %v909_v53  ;;  %v980_v53 = vmul.f32 %v3143_v43, %v947_v35  ;;  %v564_v28 = vsub.f32 %v2889_v1, %v3322_v15  ;;  %v542_v0 = vmax.f32 %v510_v48, 0.0 }
 0x1c7   :  { %v538_v42 = vmax.f32 %v506_v18, 0.0  ;;  %v479_v19 = vmul.f32 %v3604_v14, %v3604_v14  ;;  %v447_v10 = vmul.f32 %v3016_v38, %v2964_v9  ;;  %v750_v47 = vmul.f32 0.5, %v749_v16 }
 0x1c8   :  { %v911_v5 = vsub.f32 1.5, %v910_v51  ;;  %v1013_v41 = vadd.f32 %v3163_v61, %v980_v53  ;;  %v948_v39 = vmul.f32 %v736_v24, %v564_v28  ;;  %v742_v51 = vmul.f32 %v3535_v56, %v741_v34  ;;  %v5032_v28 = vld [vmem:[#allocation10_spill] sm:$0xff] }
 0x1c9   :  { %v3600_v20 = vadd.f32 1e-05, %v538_v42  ;;  %vm744_vm4 = vweird.f32 %v3535_v56  ;;  %v801_v31 = vsub.f32 1.5, %v800_v46  ;;  %v809_v52 = vmul.f32 %v3590_v50, %v808_v8 }
 0x1ca   :  { %v912_v17 = vmul.f32 %v2467_v13, %v911_v5  ;;  %v3640_v18 = vadd.f32 1e-05, %v542_v0  ;;  %v511_v38 = vsub.f32 %v447_v10, %v479_v19  ;;  %vm3644_vm6 = vmor %vm743_vm5, %vm744_vm4  ;;  %v981_v60 = vmul.f32 %v3143_v43, %v948_v39  ;;  %v5022_v19 = vld [vmem:[#allocation2_spill] sm:$0xff]  ;;  %v5023_v10 = vld [vmem:[#allocation16_spill] sm:$0xff] }
 0x1cb   :  { %1044 = vxpose.xlu1.b32.cont [10/16] %v1012_v49, 128  ;;  %2474 = vrsqrt.f32 %v3600_v20  ;;  %v751_v49 = vsub.f32 1.5, %v750_v47  ;;  %v746_v29 = vsel %vm3644_vm6, %v3535_v56, %v742_v51  ;;  %v802_v33 = vmul.f32 %v3467_v12, %v801_v31  ;;  %v5024_v31 = vld [vmem:[#allocation18_spill] sm:$0xff] }
 0x1cc   :  { %v916_v44 = vsel %vm915_vm1, %v2467_v13, %v912_v17  ;;  %v3623_v13 = vpop.eup %2472  ;;  %2476 = vrsqrt.f32 %v3615_v21  ;;  %vm803_vm7 = vweird.f32 %v3406_v2  ;;  %vm804_vm8 = vweird.f32 %v3467_v12  ;;  %v5017_v17 = vld [vmem:[#allocation8_spill] sm:$0xff] }
 0x1cd   :  { %v3618_v63 = vmul.f32 %v916_v44, %v582_v23  ;;  %v758_v1 = vmul.f32 %v3623_v13, %v3575_v3  ;;  %v565_v26 = vsub.f32 %v5017_v17, %v3378_v4  ;;  %v810_v48 = vmul.f32 0.5, %v809_v52  ;;  %vm3668_vm11 = vmor %vm803_vm7, %vm804_vm8  ;;  %v5025_v52 = vld [vmem:[#allocation9_spill] sm:$0xff] }
 0x1ce   :  { %2478 = vrsqrt.f32 %v3640_v18  ;;  %v543_v23 = vmax.f32 %v511_v38, 0.0  ;;  %v752_v44 = vmul.f32 %v3579_v57, %v751_v49  ;;  %vm754_vm9 = vweird.f32 %v3579_v57 }
 0x1cf   :  { %v759_v40 = vmul.f32 %v3623_v13, %v758_v1  ;;  %v1014_v56 = vadd.f32 %v3163_v61, %v981_v60  ;;  %v949_v25 = vmul.f32 %v746_v29, %v565_v26  ;;  %vm753_vm12 = vweird.f32 %v3507_v54  ;;  %v1108_v26 = vld [vmem:[%s4952_s2 + $0x148] sm:$0xff] }
 0x1d0   :  { %v811_v46 = vsub.f32 1.5, %v810_v48  ;;  %v3673_v8 = vadd.f32 1e-05, %v543_v23  ;;  %vm3675_vm13 = vmor %vm753_vm12, %vm754_vm9  ;;  %vm793_vm14 = vweird.f32 %v3600_v20  ;;  %v571_v2 = vsub.f32 %v5022_v19, %v3298_v6  ;;  %v1107_v48 = vld [vmem:[%s4952_s2 + $0x140] sm:$0xff] }
 0x1d1   :  { %v2475_v15 = vpop.eup %2474  ;;  %v760_v16 = vmul.f32 0.5, %v759_v40  ;;  %v570_v47 = vsub.f32 %v5023_v10, %v3547_v11  ;;  %v982_v54 = vmul.f32 %v3143_v43, %v949_v25  ;;  %v756_v51 = vsel %vm3675_vm13, %v3579_v57, %v752_v44  ;;  %v5026_v40 = vld [vmem:[#allocation19_spill] sm:$0xff]  ;;  %v1113_v44 = vld [vmem:[%s4952_s2 + $0x170] sm:$0xff] }
 0x1d2   :  { %v788_v35 = vmul.f32 %v2475_v15, %v3600_v20  ;;  %v3653_v62 = vpop.eup %2476  ;;  %vm794_vm10 = vweird.f32 %v2475_v15  ;;  %v3696_v11 = vmul.f32 %v2964_v9, %v5024_v31  ;;  %v566_v38 = vsub.f32 %v5025_v52, %v3398_v58  ;;  %v1112_v31 = vld [vmem:[%s4952_s2 + $0x168] sm:$0xff] }
 0x1d3   :  { %1045 = vxpose.xlu1.b32.cont [11/16] %v1013_v41, 128  ;;  %v768_v34 = vmul.f32 %v3653_v62, %v3615_v21  ;;  %vm795_vm15 = vmor %vm793_vm14, %vm794_vm10  ;;  %v806_v41 = vsel %vm3668_vm11, %v3467_v12, %v802_v33  ;;  %v761_v20 = vsub.f32 1.5, %v760_v16  ;;  %vm814_vm0 = vweird.f32 %v3590_v50 }
 0x1d4   :  { %v789_v42 = vmul.f32 %v2475_v15, %v788_v35  ;;  %v3688_v39 = vpop.eup %2478  ;;  %2480 = vrsqrt.f32 %v3673_v8  ;;  %v955_v12 = vmul.f32 %v806_v41, %v571_v2  ;;  %v812_v5 = vmul.f32 %v3590_v50, %v811_v46  ;;  %v5033_v41 = vld [vmem:[#allocation20_spill] sm:$0xff] }
 0x1d5   :  { %v769_v1 = vmul.f32 %v3653_v62, %v768_v34  ;;  %v481_v57 = vmul.f32 %v3696_v11, %v3696_v11  ;;  %v950_v49 = vmul.f32 %v756_v51, %v566_v38  ;;  %v762_v58 = vmul.f32 %v3623_v13, %v761_v20 }
 0x1d6   :  { %v790_v53 = vmul.f32 0.5, %v789_v42  ;;  %v449_v42 = vmul.f32 %v5026_v40, %v2964_v9  ;;  %vm764_vm1 = vweird.f32 %v3623_v13  ;;  %vm813_vm2 = vweird.f32 %v3511_v59 }
 0x1d7   :  { %v770_v29 = vmul.f32 0.5, %v769_v1  ;;  %v828_v33 = vmul.f32 %v3688_v39, %v3640_v18  ;;  %vm3717_vm3 = vmor %vm813_vm2, %vm814_vm0  ;;  %vm763_vm4 = vweird.f32 %v3575_v3  ;;  %v983_v59 = vmul.f32 %v3143_v43, %v950_v49  ;;  %v1102_v1 = vld [vmem:[%s4952_s2 + $0x118] sm:$0xff] }
 0x1d8   :  { %v791_v24 = vsub.f32 1.5, %v790_v53  ;;  %vm3722_vm5 = vmor %vm763_vm4, %vm764_vm1  ;;  %v988_v23 = vmul.f32 %v3143_v43, %v955_v12  ;;  %v1114_v53 = vld [vmem:[%s4952_s2 + $0x178] sm:$0xff]  ;;  %v513_v3 = vsub.f32 %v449_v42, %v481_v57  ;;  %v816_v34 = vsel %vm3717_vm3, %v3590_v50, %v812_v5  ;;  %v5036_v5 = vld [vmem:[#allocation11_spill] sm:$0xff] }
 0x1d9   :  { %v771_v25 = vsub.f32 1.5, %v770_v29  ;;  %v766_v16 = vsel %vm3722_vm5, %v3623_v13, %v762_v58  ;;  %1115 = vmatpush.msra.mxu1 %v1114_v53  ;;  %2400 = vmatpush.msra.mxu3 %v1114_v53  ;;  %v829_v46 = vmul.f32 %v3688_v39, %v828_v33  ;;  %v1016_v19 = vadd.f32 %v3163_v61, %v983_v59  ;;  %v281_v33 = vpop.xlane.xlu0 %280 }
 0x1da   :  { %v792_v0 = vmul.f32 %v2475_v15, %v791_v24  ;;  %v5031_v24 = vld [vmem:[#allocation3_spill] sm:$0xff]  ;;  %v545_v10 = vmax.f32 %v513_v3, 0.0  ;;  %vm774_vm6 = vweird.f32 %v3653_v62  ;;  %v1021_v50 = vadd.f32 %v3163_v61, %v988_v23  ;;  %v5039_v23 = vld [vmem:[#allocation17_spill] sm:$0xff] }
 0x1db   :  { %1046 = vxpose.xlu1.b32.cont [12/16] %v1014_v56, 128  ;;  %v3734_v56 = vpop.eup %2480  ;;  %v572_v4 = vsub.f32 %v5031_v24, %v3350_v36  ;;  %1116 = vmatpush.msra.mxu1 %v1113_v44  ;;  %v450_v51 = vmul.f32 %v3287_v22, %v2964_v9  ;;  %vm773_vm7 = vweird.f32 %v3615_v21  ;;  %v1111_v22 = vld [vmem:[%s4952_s2 + $0x160] sm:$0xff]  ;;  %v568_v57 = vsub.f32 %v5036_v5, %v3517_v37 }
 0x1dc   :  { %v796_v6 = vsel %vm795_vm15, %v2475_v15, %v792_v0  ;;  %v1015_v15 = vadd.f32 %v3163_v61, %v982_v54  ;;  %v567_v0 = vsub.f32 %v5032_v28, %v3464_v55  ;;  %2401 = vmatpush.msra.mxu3 %v1113_v44  ;;  %v830_v54 = vmul.f32 0.5, %v829_v46  ;;  %vm3762_vm8 = vmor %vm773_vm7, %vm774_vm6  ;;  %v1105_v46 = vld [vmem:[%s4952_s2 + $0x130] sm:$0xff] }
 0x1dd   :  { %v954_v35 = vmul.f32 %v796_v6, %v570_v47  ;;  %v956_v13 = vmul.f32 %v816_v34, %v572_v4  ;;  %v772_v47 = vmul.f32 %v3653_v62, %v771_v25  ;;  %v838_v36 = vmul.f32 %v3734_v56, %v3673_v8  ;;  %1117 = vmatpush.msra.mxu1 %v1112_v31 }
 0x1de   :  { %v951_v2 = vmul.f32 %v766_v16, %v567_v0  ;;  %v3755_v55 = vmul.f32 %v2964_v9, %v5033_v41  ;;  %v3773_v52 = vadd.f32 1e-05, %v545_v10  ;;  %2402 = vmatpush.msra.mxu3 %v1112_v31  ;;  %vm834_vm9 = vweird.f32 %v3688_v39  ;;  %v1106_v16 = vld [vmem:[%s4952_s2 + $0x138] sm:$0xff]  ;;  %v14_v10 = vld [vmem:[%s4954_s1] sm:$0x3] }
 0x1df   :  { %v987_v60 = vmul.f32 %v3143_v43, %v954_v35  ;;  %v989_v21 = vmul.f32 %v3143_v43, %v956_v13  ;;  %v776_v38 = vsel %vm3762_vm8, %v3653_v62, %v772_v47  ;;  %v831_v35 = vsub.f32 1.5, %v830_v54  ;;  %1118 = vmatpush.msra.mxu1 %v1111_v22  ;;  %v1109_v62 = vld [vmem:[%s4952_s2 + $0x150] sm:$0xff]  ;;  %v1104_v13 = vld [vmem:[%s4952_s2 + $0x128] sm:$0xff]  ;;  %v1103_v47 = vld [vmem:[%s4952_s2 + $0x120] sm:$0xff] }
 0x1e0   :  { %v482_v20 = vmul.f32 %v3755_v55, %v3755_v55  ;;  %v984_v6 = vmul.f32 %v3143_v43, %v951_v2  ;;  %v839_v12 = vmul.f32 %v3734_v56, %v838_v36  ;;  %2403 = vmatpush.msra.mxu3 %v1111_v22  ;;  %v952_v40 = vmul.f32 %v776_v38, %v568_v57 }
 0x1e1   :  { %v1020_v17 = vadd.f32 %v3163_v61, %v987_v60  ;;  %2482 = vrsqrt.f32 %v3773_v52  ;;  %v1022_v42 = vadd.f32 %v3163_v61, %v989_v21  ;;  %v832_v37 = vmul.f32 %v3688_v39, %v831_v35  ;;  %v418_v22 = vpop.xlane.xlu0 %417 }
 0x1e2   :  { %v514_v49 = vsub.f32 %v450_v51, %v482_v20  ;;  %v1017_v60 = vadd.f32 %v3163_v61, %v984_v6  ;;  %v840_v58 = vmul.f32 0.5, %v839_v12  ;;  %vm833_vm10 = vweird.f32 %v3640_v18  ;;  %v5044_v6 = vld [vmem:[#allocation5_spill] sm:$0xff] }
 0x1e3   :  { %1047 = vxpose.xlu1.b32.cont [13/16] %v1015_v15, 128  ;;  %1068 = vxpose.xlu2.b32.cont [2/16] %v1020_v17, 128  ;;  %v1110_v15 = vld [vmem:[%s4952_s2 + $0x158] sm:$0xff]  ;;  %v985_v17 = vmul.f32 %v3143_v43, %v952_v40  ;;  %vm3801_vm11 = vmor %vm833_vm10, %vm834_vm9  ;;  %v990_v53 = vmul.f32 %v3143_v43, %v5039_v23  ;;  %v3810_v3 = vmul.f32 %v2964_v9, %v281_v33  ;;  %v5040_v43 = vld [vmem:[#allocation4_spill] sm:$0xff]  ;;  %vm844_vm12 = vweird.f32 %v3734_v56 }
 0x1e4   :  { %1119 = vmatpush.msra.mxu1 %v1110_v15  ;;  %2404 = vmatpush.msra.mxu3 %v1110_v15  ;;  %v546_v29 = vmax.f32 %v514_v49, 0.0  ;;  %v841_v18 = vsub.f32 1.5, %v840_v58  ;;  %v836_v25 = vsel %vm3801_vm11, %v3688_v39, %v832_v37  ;;  %v574_v24 = vsub.f32 %v5040_v43, %v3560_v45  ;;  %v1100_v15 = vld [vmem:[%s4952_s2 + $0x108] sm:$0xff] }
 0x1e5   :  { %v1018_v4 = vadd.f32 %v3163_v61, %v985_v17  ;;  %v1023_v39 = vadd.f32 %v3163_v61, %v990_v53  ;;  %v484_v45 = vmul.f32 %v3810_v3, %v3810_v3  ;;  %vm843_vm13 = vweird.f32 %v3673_v8  ;;  %v5041_v61 = vld [vmem:[#allocation22_spill] sm:$0xff]  ;;  %v5045_v53 = vld [vmem:[#allocation21_spill] sm:$0xff] }
 0x1e6   :  { %1120 = vmatpush.msra.mxu1 %v1109_v62  ;;  %2405 = vmatpush.msra.mxu3 %v1109_v62  ;;  %v3807_v44 = vadd.f32 1e-05, %v546_v29  ;;  %v958_v28 = vmul.f32 %v836_v25, %v574_v24  ;;  %v452_v2 = vmul.f32 %v5041_v61, %v2964_v9  ;;  %vm1231_vm14 = vcmask 64512   ;;  %vm3848_vm15 = vmor %vm843_vm13, %vm844_vm12 }
 0x1e7   :  { %v3818_v34 = vpop.eup %2482  ;;  %2382 = vmatmul.msk.f32.vlgmr.msrb.gmra.mxu2 %vm1231_vm14, %v14_v10  ;;  %v3862_v51 = vmul.f32 %v2964_v9, %v3391_v27  ;;  %v575_v31 = vsub.f32 %v5044_v6, %v3604_v14  ;;  %v1101_v27 = vld [vmem:[%s4952_s2 + $0x110] sm:$0xff]  ;;  %v453_v57 = vmul.f32 %v418_v22, %v2964_v9  ;;  %vm863_vm1 = vweird.f32 %v3773_v52 }
 0x1e8   :  { %1121 = vmatpush.msra.mxu1 %v1108_v26  ;;  %2406 = vmatpush.msra.mxu3 %v1108_v26  ;;  %v858_v0 = vmul.f32 %v3818_v34, %v3773_v52  ;;  %2484 = vrsqrt.f32 %v3807_v44  ;;  %v516_v41 = vsub.f32 %v452_v2, %v484_v45  ;;  %vm864_vm0 = vweird.f32 %v3818_v34 }
 0x1e9   :  { %v485_v5 = vmul.f32 %v3862_v51, %v3862_v51  ;;  %vm865_vm2 = vmor %vm863_vm1, %vm864_vm0  ;;  %vm873_vm4 = vweird.f32 %v3807_v44 }
 0x1ea   :  { %1122 = vmatpush.msra.mxu1 %v1107_v48  ;;  %2407 = vmatpush.msra.mxu3 %v1107_v48  ;;  %v859_v36 = vmul.f32 %v3818_v34, %v858_v0  ;;  %v548_v14 = vmax.f32 %v516_v41, 0.0  ;;  %v287_v48 = vpop.xlane.xlu0 %286 }
 0x1eb   :  { %1048 = vxpose.xlu1.b32.cont [14/16] %v1016_v19, 128  ;;  %1069 = vxpose.xlu2.b32.cont [3/16] %v1021_v50, 128  ;;  %v842_v19 = vmul.f32 %v3734_v56, %v841_v18  ;;  %v3855_v50 = vld [vmem:[%s4952_s2 + $0x311] ss:$0 sm:$0xff]  ;;  %v517_v37 = vsub.f32 %v453_v57, %v485_v5  ;;  %v3906_v23 = vmul.f32 %v2964_v9, %v287_v48 }
 0x1ec   :  { %1123 = vmatpush.msra.mxu1 %v1106_v16  ;;  %2408 = vmatpush.msra.mxu3 %v1106_v16  ;;  %v991_v54 = vmul.f32 %v3855_v50, %v958_v28  ;;  %v860_v12 = vmul.f32 0.5, %v859_v36  ;;  %v993_v18 = vmul.f32 %v3855_v50, %v5045_v53  ;;  %v5046_v16 = vld [vmem:[#allocation6_spill] sm:$0xff]  ;;  %v996_v5 = vmul.f32 %v3855_v50, %v3550_v32 }
 0x1ed   :  { %v846_v20 = vsel %vm3848_vm15, %v3734_v56, %v842_v19  ;;  %v3880_v56 = vld [vmem:[%s4952_s2 + $0x312] ss:$0 sm:$0xff]  ;;  %v549_v17 = vmax.f32 %v517_v37, 0.0  ;;  %v577_v43 = vsub.f32 %v5046_v16, %v3696_v11  ;;  %v487_v52 = vmul.f32 %v3906_v23, %v3906_v23 }
 0x1ee   :  { %1124 = vmatpush.msra.mxu1 %v1105_v46  ;;  %2409 = vmatpush.msra.mxu3 %v1105_v46  ;;  %v3872_v21 = vpop.eup %2484  ;;  %v1024_v38 = vadd.f32 %v3880_v56, %v991_v54  ;;  %v959_v35 = vmul.f32 %v846_v20, %v575_v31  ;;  %v861_v62 = vsub.f32 1.5, %v860_v12  ;;  %v3926_v19 = vmul.f32 %v2964_v9, %v3496_v7 }
 0x1ef   :  { %v868_v49 = vmul.f32 %v3872_v21, %v3807_v44  ;;  %v3903_v59 = vadd.f32 1e-05, %v549_v17  ;;  %vm874_vm3 = vweird.f32 %v3872_v21  ;;  %v1029_v37 = vadd.f32 %v3880_v56, %v996_v5 }
 0x1f0   :  { %1125 = vmatpush.msra.mxu1 %v1104_v13  ;;  %2410 = vmatpush.msra.mxu3 %v1104_v13  ;;  %v992_v40 = vmul.f32 %v3855_v50, %v959_v35  ;;  %v862_v33 = vmul.f32 %v3818_v34, %v861_v62  ;;  %vm875_vm5 = vmor %vm873_vm4, %vm874_vm3  ;;  %v488_v44 = vmul.f32 %v3926_v19, %v3926_v19 }
 0x1f1   :  { %v869_v58 = vmul.f32 %v3872_v21, %v868_v49  ;;  %vm903_vm10 = vweird.f32 %v3903_v59 }
 0x1f2   :  { %1126 = vmatpush.msra.mxu1 %v1103_v47  ;;  %2411 = vmatpush.msra.mxu3 %v1103_v47  ;;  %v1025_v29 = vadd.f32 %v3880_v56, %v992_v40  ;;  %v866_v25 = vsel %vm865_vm2, %v3818_v34, %v862_v33  ;;  %v455_v34 = vmul.f32 %v3455_v30, %v2964_v9  ;;  %v424_v2 = vpop.xlane.xlu0 %423  ;;  %v5047_v47 = vld [vmem:[#allocation7_spill] sm:$0xff] }
 0x1f3   :  { %1049 = vxpose.xlu1.b32.cont [15/16] %v1017_v60, 128  ;;  %1070 = vxpose.xlu2.b32.cont [4/16] %v1022_v42, 128  ;;  %v1099_v60 = vld [vmem:[%s4952_s2 + $0x100] sm:$0xff]  ;;  %v3895_v42 = vadd.f32 1e-05, %v548_v14  ;;  %v870_v26 = vmul.f32 0.5, %v869_v58  ;;  %v961_v46 = vmul.f32 %v866_v25, %v577_v43  ;;  %v578_v8 = vsub.f32 %v5047_v47, %v3755_v55 }
 0x1f4   :  { %1127 = vmatpush.msra.mxu1 %v1102_v1  ;;  %2412 = vmatpush.msra.mxu3 %v1102_v1  ;;  %v519_v45 = vsub.f32 %v455_v34, %v487_v52  ;;  %v456_v36 = vmul.f32 %v424_v2, %v2964_v9 }
 0x1f5   :  { %2486 = vrsqrt.f32 %v3895_v42  ;;  %v871_v24 = vsub.f32 1.5, %v870_v26  ;;  %v994_v11 = vmul.f32 %v3855_v50, %v961_v46  ;;  %vm893_vm7 = vweird.f32 %v3895_v42 }
 0x1f6   :  { %1128 = vmatpush.msra.mxu1 %v1101_v27  ;;  %2413 = vmatpush.msra.mxu3 %v1101_v27  ;;  %2488 = vrsqrt.f32 %v3903_v59  ;;  %v551_v54 = vmax.f32 %v519_v45, 0.0  ;;  %v520_v6 = vsub.f32 %v456_v36, %v488_v44 }
 0x1f7   :  { %v872_v0 = vmul.f32 %v3872_v21, %v871_v24  ;;  %v1027_v30 = vadd.f32 %v3880_v56, %v994_v11  ;;  %v5050_v11 = vld [vmem:[#allocation14_spill] sm:$0xff] }
 0x1f8   :  { %1129 = vmatpush.msra.mxu1 %v1100_v15  ;;  %2414 = vmatpush.msra.mxu3 %v1100_v15  ;;  %v615_v1 = vadd.f32 1e-05, %v551_v54  ;;  %v552_v55 = vmax.f32 %v520_v6, 0.0  ;;  %v583_v45 = vsub.f32 %v5050_v11, %v3906_v23 }
 0x1f9   :  { %v876_v13 = vsel %vm875_vm5, %v3872_v21, %v872_v0 }
 0x1fa   :  { %1130 = vmatpush.msra.mxu1 %v1099_v60  ;;  %2415 = vmatpush.msra.mxu3 %v1099_v60  ;;  %v962_v41 = vmul.f32 %v876_v13, %v578_v8  ;;  %2490 = vrsqrt.f32 %v615_v1  ;;  %v616_v12 = vadd.f32 1e-05, %v552_v55  ;;  %v5048_v60 = vld [vmem:[#allocation12_spill] sm:$0xff]  ;;  %vm923_vm13 = vweird.f32 %v615_v1 }
 0x1fb   :  { %1050 = vxpose.xlu1.b32.end [16/16] %v1018_v4, 128  ;;  %1071 = vxpose.xlu2.b32.cont [5/16] %v1023_v39, 128  ;;  %v2487_v4 = vpop.eup %2486  ;;  %v1026_v39 = vadd.f32 %v3880_v56, %v993_v18  ;;  %v580_v40 = vsub.f32 %v5048_v60, %v3810_v3  ;;  %v5049_v3 = vld [vmem:[#allocation13_spill] sm:$0xff] }
 0x1fc   :  { %v888_v28 = vmul.f32 %v2487_v4, %v3895_v42  ;;  %v2489_v10 = vpop.eup %2488  ;;  %v995_v31 = vmul.f32 %v3855_v50, %v962_v41  ;;  %vm894_vm6 = vweird.f32 %v2487_v4  ;;  %2492 = vrsqrt.f32 %v616_v12 }
 0x1fd   :  { %v898_v7 = vmul.f32 %v2489_v10, %v3903_v59  ;;  %vm895_vm8 = vmor %vm893_vm7, %vm894_vm6  ;;  %vm904_vm9 = vweird.f32 %v2489_v10  ;;  %v581_v48 = vsub.f32 %v5049_v3, %v3862_v51  ;;  %vm933_vm0 = vweird.f32 %v616_v12 }
 0x1fe   :  { %v889_v61 = vmul.f32 %v2487_v4, %v888_v28  ;;  %v1028_v27 = vadd.f32 %v3880_v56, %v995_v31  ;;  %vm905_vm11 = vmor %vm903_vm10, %vm904_vm9  ;;  %v999_v28 = vmul.f32 %v3855_v50, %v3618_v63  ;;  %v5051_v63 = vld [vmem:[#allocation15_spill] sm:$0xff] }
 0x1ff   :  { %v899_v21 = vmul.f32 %v2489_v10, %v898_v7 }
 0x200   :  { %v890_v20 = vmul.f32 0.5, %v889_v61  ;;  %v2491_v15 = vpop.eup %2490  ;;  %v1032_v2 = vadd.f32 %v3880_v56, %v999_v28 }
 0x201   :  { %v900_v35 = vmul.f32 0.5, %v899_v21  ;;  %v918_v42 = vmul.f32 %v2491_v15, %v615_v1  ;;  %vm924_vm12 = vweird.f32 %v2491_v15 }
 0x202   :  { %v891_v22 = vsub.f32 1.5, %v890_v20  ;;  %v2493_v26 = vpop.eup %2492  ;;  %vm925_vm15 = vmor %vm923_vm13, %vm924_vm12 }
 0x203   :  { %1072 = vxpose.xlu2.b32.cont [6/16] %v1024_v38, 128  ;;  %v901_v49 = vsub.f32 1.5, %v900_v35  ;;  %v919_v33 = vmul.f32 %v2491_v15, %v918_v42  ;;  %v928_v16 = vmul.f32 %v2493_v26, %v616_v12  ;;  %vm934_vm1 = vweird.f32 %v2493_v26  ;;  %v2422_v12 = vld [vmem:[%s4952_s2 + $0x313] ss:$0 sm:$0xff] }
 0x204   :  { %v892_v38 = vmul.f32 %v2487_v4, %v891_v22  ;;  %vm935_vm2 = vmor %vm933_vm0, %vm934_vm1 }
 0x205   :  { %v902_v58 = vmul.f32 %v2489_v10, %v901_v49  ;;  %v920_v25 = vmul.f32 0.5, %v919_v33 }
 0x206   :  { %v896_v57 = vsel %vm895_vm8, %v2487_v4, %v892_v38  ;;  %v929_v4 = vmul.f32 %v2493_v26, %v928_v16 }
 0x207   :  { %v964_v62 = vmul.f32 %v896_v57, %v580_v40  ;;  %v906_v17 = vsel %vm905_vm11, %v2489_v10, %v902_v58  ;;  %v921_v24 = vsub.f32 1.5, %v920_v25 }
 0x208   :  { %v965_v18 = vmul.f32 %v906_v17, %v581_v48 }
 0x209   :  { %v997_v32 = vmul.f32 %v3855_v50, %v964_v62  ;;  %v922_v52 = vmul.f32 %v2491_v15, %v921_v24 }
 0x20a   :  { %v998_v59 = vmul.f32 %v3855_v50, %v965_v18 }
 0x20b   :  { %1073 = vxpose.xlu2.b32.cont [7/16] %v1025_v29, 128  ;;  %v1030_v53 = vadd.f32 %v3880_v56, %v997_v32  ;;  %v926_v0 = vsel %vm925_vm15, %v2491_v15, %v922_v52 }
 0x20c   :  { %v1031_v46 = vadd.f32 %v3880_v56, %v998_v59  ;;  %v967_v61 = vmul.f32 %v926_v0, %v583_v45 }
 0x20e   :  { %v1000_v47 = vmul.f32 %v3855_v50, %v967_v61 }
 0x210   :  { %v1033_v54 = vadd.f32 %v3880_v56, %v1000_v47 }
 0x213   :  { %1074 = vxpose.xlu2.b32.cont [8/16] %v1026_v39, 128  ;;  %v930_v39 = vmul.f32 0.5, %v929_v4 }
 0x215   :  { %v931_v34 = vsub.f32 1.5, %v930_v39 }
 0x217   :  { %v932_v13 = vmul.f32 %v2493_v26, %v931_v34 }
 0x219   :  { %v936_v8 = vsel %vm935_vm2, %v2493_v26, %v932_v13 }
 0x21b   :  { %1075 = vxpose.xlu2.b32.cont [9/16] %v1027_v30, 128  ;;  %v584_v30 = vsub.f32 %v5051_v63, %v3926_v19 }
 0x21d   :  { %v968_v44 = vmul.f32 %v936_v8, %v584_v30 }
 0x21f   :  { %v1001_v36 = vmul.f32 %v3855_v50, %v968_v44 }
 0x221   :  { %v1034_v41 = vadd.f32 %v3880_v56, %v1001_v36 }
 0x223   :  { %1076 = vxpose.xlu2.b32.cont [10/16] %v1028_v27, 128 }
 0x227   :  { %v1051_v14 = vpop.trf.xlu1 }
 0x228   :  { %1131 = vmatmul.f32.vlgmr.msra.gmra.mxu1 %v1051_v14 }
 0x22b   :  { %1077 = vxpose.xlu2.b32.cont [11/16] %v1029_v37, 128 }
 0x22f   :  { %v1052_v29 = vpop.trf.xlu1 }
 0x230   :  { %1134 = vmatmul.f32.gmra.mxu1 %v1052_v29 }
 0x233   :  { %1078 = vxpose.xlu2.b32.cont [12/16] %v1030_v53, 128 }
 0x237   :  { %v1053_v43 = vpop.trf.xlu1 }
 0x238   :  { %1137 = vmatmul.f32.gmra.mxu1 %v1053_v43 }
 0x23b   :  { %1079 = vxpose.xlu2.b32.cont [13/16] %v1031_v46, 128 }
 0x23f   :  { %v1054_v51 = vpop.trf.xlu1 }
 0x240   :  { %1140 = vmatmul.f32.gmra.mxu1 %v1054_v51 }
 0x243   :  { %1080 = vxpose.xlu2.b32.cont [14/16] %v1032_v2, 128 }
 0x247   :  { %v1055_v10 = vpop.trf.xlu1 }
 0x248   :  { %1143 = vmatmul.f32.gmra.mxu1 %v1055_v10 }
 0x24b   :  { %1081 = vxpose.xlu2.b32.cont [15/16] %v1033_v54, 128 }
 0x24f   :  { %v1056_v23 = vpop.trf.xlu1 }
 0x250   :  { %1146 = vmatmul.f32.gmra.mxu1 %v1056_v23 }
 0x253   :  { %1082 = vxpose.xlu2.b32.end [16/16] %v1034_v41, 128 }
 0x257   :  { %v1057_v20 = vpop.trf.xlu1 }
 0x258   :  { %1149 = vmatmul.f32.gmra.mxu1 %v1057_v20 }
 0x25f   :  { %v1058_v7 = vpop.trf.xlu1 }
 0x260   :  { %1152 = vmatmul.f32.gmra.mxu1 %v1058_v7 }
 0x267   :  { %v1059_v1 = vpop.trf.xlu1 }
 0x268   :  { %1155 = vmatmul.f32.gmra.mxu1 %v1059_v1 }
 0x26a   :  { %v1252_v14 = vpop.f32.mrf.mxu2 }
 0x26b   :  { %v3965_v57 = vadd.f32 %v2422_v12, %v1252_v14 }
 0x26d   :  { %v3968_v15 = vperm.slane %v3965_v57, 0 }
 0x26f   :  { %v1060_v6 = vpop.trf.xlu1 }
 0x270   :  { %1158 = vmatmul.f32.gmra.mxu1 %v1060_v6 }
 0x274   :  { %v1083_v19 = vpop.trf.xlu2 }
 0x277   :  { %v1061_v31 = vpop.trf.xlu1 }
 0x278   :  { %1161 = vmatmul.f32.gmra.mxu1 %v1061_v31 }
 0x27c   :  { %v1084_v22 = vpop.trf.xlu2 }
 0x27f   :  { %v1062_v21 = vpop.trf.xlu1 }
 0x280   :  { %1164 = vmatmul.f32.gmra.mxu1 %v1062_v21 }
 0x284   :  { %v1085_v55 = vpop.trf.xlu2 }
 0x287   :  { %v1063_v50 = vpop.trf.xlu1 }
 0x288   :  { %1167 = vmatmul.f32.gmra.mxu1 %v1063_v50 }
 0x28c   :  { %v1086_v27 = vpop.trf.xlu2 }
 0x28d   :  { %1188 = vmatmul.f32.vlgmr.msra.gmra.mxu3 %v1086_v27 }
 0x28f   :  { %v1064_v56 = vpop.trf.xlu1 }
 0x290   :  { %1170 = vmatmul.f32.gmra.mxu1 %v1064_v56 }
 0x294   :  { %v1087_v38 = vpop.trf.xlu2 }
 0x295   :  { %1191 = vmatmul.f32.gmra.mxu3 %v1087_v38 }
 0x297   :  { %v1065_v35 = vpop.trf.xlu1 }
 0x298   :  { %1173 = vmatmul.f32.gmra.mxu1 %v1065_v35 }
 0x29c   :  { %v1088_v5 = vpop.trf.xlu2 }
 0x29d   :  { %1194 = vmatmul.f32.gmra.mxu3 %v1088_v5 }
 0x29f   :  { %v1066_v49 = vpop.trf.xlu1 }
 0x2a0   :  { %1176 = vmatmul.f32.gmra.mxu1 %v1066_v49 }
 0x2a4   :  { %v1089_v40 = vpop.trf.xlu2 }
 0x2a5   :  { %v1132_v60 = vpop.f32.mrf.mxu1  ;;  %1197 = vmatmul.f32.gmra.mxu3 %v1089_v40 }
 0x2a6   :  { %v3971_v62 = vadd.f32 %v3968_v15, %v1132_v60  ;;  %v1256_v60 = vrot.slane %v3965_v57, 1 }
 0x2a8   :  { %1295 = vadd.xlane.f32.xlu0 %v3971_v62  ;;  %1179 = vmatmul.f32.gmra.mxu1 %v1083_v19  ;;  %v1391_v42 = vmul.f32 %v3971_v62, %v3971_v62 }
 0x2ac   :  { %v1090_v58 = vpop.trf.xlu2 }
 0x2ad   :  { %v1135_v37 = vpop.f32.mrf.mxu1  ;;  %1200 = vmatmul.f32.gmra.mxu3 %v1090_v58  ;;  %v4063_v58 = vperm.slane %v1256_v60, 0 }
 0x2ae   :  { %v3977_v32 = vadd.f32 %v3968_v15, %v1135_v37 }
 0x2b0   :  { %1423 = vadd.xlane.f32.xlu0 %v1391_v42  ;;  %1182 = vmatmul.f32.gmra.mxu1 %v1084_v22  ;;  %v1392_v3 = vmul.f32 %v3977_v32, %v3977_v32 }
 0x2b4   :  { %v1091_v33 = vpop.trf.xlu2 }
 0x2b5   :  { %v1138_v29 = vpop.f32.mrf.mxu1  ;;  %1203 = vmatmul.f32.gmra.mxu3 %v1091_v33 }
 0x2b6   :  { %v3983_v53 = vadd.f32 %v3968_v15, %v1138_v29 }
 0x2b8   :  { %1297 = vadd.xlane.f32.xlu0 %v3977_v32  ;;  %1185 = vmatmul.f32.gmra.mxu1 %v1085_v55  ;;  %v1393_v24 = vmul.f32 %v3983_v53, %v3983_v53 }
 0x2bc   :  { %v1092_v26 = vpop.trf.xlu2 }
 0x2bd   :  { %v1141_v17 = vpop.f32.mrf.mxu1  ;;  %1206 = vmatmul.f32.gmra.mxu3 %v1092_v26 }
 0x2be   :  { %v3994_v46 = vadd.f32 %v3968_v15, %v1141_v17 }
 0x2c0   :  { %1425 = vadd.xlane.f32.xlu0 %v1392_v3  ;;  %v1394_v28 = vmul.f32 %v3994_v46, %v3994_v46 }
 0x2c4   :  { %v1093_v18 = vpop.trf.xlu2 }
 0x2c5   :  { %v1144_v48 = vpop.f32.mrf.mxu1  ;;  %1209 = vmatmul.f32.gmra.mxu3 %v1093_v18 }
 0x2c6   :  { %v3986_v25 = vadd.f32 %v3968_v15, %v1144_v48 }
 0x2c8   :  { %1299 = vadd.xlane.f32.xlu0 %v3983_v53  ;;  %v1395_v16 = vmul.f32 %v3986_v25, %v3986_v25 }
 0x2ca   :  { %1431 = vadd.xlane.f32.xlu2 %v1395_v16 }
 0x2cc   :  { %v1094_v59 = vpop.trf.xlu2 }
 0x2cd   :  { %v1147_v43 = vpop.f32.mrf.mxu1  ;;  %1212 = vmatmul.f32.gmra.mxu3 %v1094_v59 }
 0x2ce   :  { %v4006_v2 = vadd.f32 %v3968_v15, %v1147_v43 }
 0x2d0   :  { %1427 = vadd.xlane.f32.xlu0 %v1393_v24  ;;  %v1396_v63 = vmul.f32 %v4006_v2, %v4006_v2 }
 0x2d4   :  { %v1095_v52 = vpop.trf.xlu2 }
 0x2d5   :  { %v1150_v4 = vpop.f32.mrf.mxu1  ;;  %1215 = vmatmul.f32.gmra.mxu3 %v1095_v52 }
 0x2d6   :  { %v4017_v54 = vadd.f32 %v3968_v15, %v1150_v4 }
 0x2d8   :  { %1301 = vadd.xlane.f32.xlu0 %v3994_v46  ;;  %v1397_v41 = vmul.f32 %v4017_v54, %v4017_v54 }
 0x2dc   :  { %v1096_v51 = vpop.trf.xlu2 }
 0x2dd   :  { %v1153_v39 = vpop.f32.mrf.mxu1  ;;  %1218 = vmatmul.f32.gmra.mxu3 %v1096_v51 }
 0x2de   :  { %v4035_v1 = vadd.f32 %v3968_v15, %v1153_v39 }
 0x2e0   :  { %1429 = vadd.xlane.f32.xlu0 %v1394_v28  ;;  %v1398_v21 = vmul.f32 %v4035_v1, %v4035_v1 }
 0x2e4   :  { %v1097_v34 = vpop.trf.xlu2 }
 0x2e5   :  { %v1156_v0 = vpop.f32.mrf.mxu1  ;;  %1221 = vmatmul.f32.gmra.mxu3 %v1097_v34 }
 0x2e6   :  { %v4000_v11 = vadd.f32 %v3968_v15, %v1156_v0 }
 0x2e8   :  { %1303 = vadd.xlane.f32.xlu0 %v3986_v25  ;;  %v1399_v45 = vmul.f32 %v4000_v11, %v4000_v11 }
 0x2ea   :  { %1439 = vadd.xlane.f32.xlu1 %v1399_v45 }
 0x2ec   :  { %v1098_v13 = vpop.trf.xlu2 }
 0x2ed   :  { %v1159_v61 = vpop.f32.mrf.mxu1  ;;  %1224 = vmatmul.f32.gmra.mxu3 %v1098_v13 }
 0x2ee   :  { %v4009_v10 = vadd.f32 %v3968_v15, %v1159_v61 }
 0x2f0   :  { %1305 = vadd.xlane.f32.xlu0 %v4006_v2  ;;  %v1400_v47 = vmul.f32 %v4009_v10, %v4009_v10 }
 0x2f2   :  { %1441 = vadd.xlane.f32.xlu2 %v1400_v47 }
 0x2f5   :  { %v1162_v8 = vpop.f32.mrf.mxu1 }
 0x2f6   :  { %v4070_v26 = vadd.f32 %v3968_v15, %v1162_v8 }
 0x2f8   :  { %1433 = vadd.xlane.f32.xlu0 %v1396_v63  ;;  %v1401_v52 = vmul.f32 %v4070_v26, %v4070_v26 }
 0x2fd   :  { %v1165_v30 = vpop.f32.mrf.mxu1 }
 0x2fe   :  { %v4020_v44 = vadd.f32 %v3968_v15, %v1165_v30 }
 0x300   :  { %1307 = vadd.xlane.f32.xlu0 %v4017_v54  ;;  %1317 = vadd.xlane.f32.xlu1 %v4020_v44  ;;  %v1402_v20 = vmul.f32 %v4020_v44, %v4020_v44 }
 0x305   :  { %v1168_v23 = vpop.f32.mrf.mxu1 }
 0x306   :  { %v4025_v36 = vadd.f32 %v3968_v15, %v1168_v23 }
 0x308   :  { %1435 = vadd.xlane.f32.xlu0 %v1397_v41  ;;  %1445 = vadd.xlane.f32.xlu1 %v1402_v20  ;;  %v1403_v6 = vmul.f32 %v4025_v36, %v4025_v36 }
 0x309   :  { %1319 = vadd.xlane.f32.xlu2 %v4025_v36 }
 0x30d   :  { %v4032_v7 = vpop.f32.mrf.mxu1 }
 0x30e   :  { %v4091_v30 = vadd.f32 %v3968_v15, %v4032_v7 }
 0x310   :  { %1309 = vadd.xlane.f32.xlu0 %v4035_v1  ;;  %v4040_v19 = vpop.f32.mrf.mxu3 }
 0x311   :  { %1447 = vadd.xlane.f32.xlu2 %v1403_v6 }
 0x315   :  { %v1174_v31 = vpop.f32.mrf.mxu1 }
 0x316   :  { %v4043_v22 = vadd.f32 %v3968_v15, %v1174_v31 }
 0x318   :  { %1437 = vadd.xlane.f32.xlu0 %v1398_v21  ;;  %1323 = vadd.xlane.f32.xlu1 %v4043_v22  ;;  %v4048_v55 = vpop.f32.mrf.mxu3  ;;  %v1405_v38 = vmul.f32 %v4043_v22, %v4043_v22 }
 0x31b   :  { %v1296_v50 = vpop.xlane.xlu0 %1295 }
 0x31c   :  { %v1359_v35 = vmul.f32 %v1296_v50, %v2964_v9 }
 0x31d   :  { %v1177_v27 = vpop.f32.mrf.mxu1 }
 0x31e   :  { %v4051_v56 = vadd.f32 %v3968_v15, %v1177_v27  ;;  %v1519_v5 = vmul.f32 %v1359_v35, %v1359_v35  ;;  %v1615_v47 = vsub.f32 %v3971_v62, %v1359_v35  ;;  %v4105_v15 = vld [vmem:[%s4952_s2 + $0x314] ss:$0 sm:$0xff] }
 0x320   :  { %5052 = vst [vmem:[#allocation8_spill] sm:$0xff] %v4051_v56  ;;  %1311 = vadd.xlane.f32.xlu0 %v4000_v11  ;;  %1451 = vadd.xlane.f32.xlu1 %v1405_v38  ;;  %v4058_v12 = vpop.f32.mrf.mxu3  ;;  %v1404_v38 = vmul.f32 %v4091_v30, %v4091_v30 }
 0x321   :  { %1325 = vadd.xlane.f32.xlu2 %v4051_v56 }
 0x323   :  { %v1424_v14 = vpop.xlane.xlu0 %1423 }
 0x324   :  { %v1487_v49 = vmul.f32 %v1424_v14, %v2964_v9 }
 0x326   :  { %v1551_v40 = vsub.f32 %v1487_v49, %v1519_v5  ;;  %v4112_v49 = vld [vmem:[%s4952_s2 + $0x315] ss:$0 sm:$0xff] }
 0x328   :  { %v1583_v37 = vmax.f32 %v1551_v40, 0.0  ;;  %1313 = vadd.xlane.f32.xlu0 %v4009_v10  ;;  %v1198_v29 = vpop.f32.mrf.mxu3 }
 0x329   :  { %v4066_v33 = vadd.f32 %v4063_v58, %v1198_v29 }
 0x32a   :  { %v1647_v42 = vadd.f32 1e-05, %v1583_v37 }
 0x32b   :  { %v1298_v17 = vpop.xlane.xlu0 %1297  ;;  %1339 = vadd.xlane.f32.xlu1 %v4066_v33 }
 0x32c   :  { %2494 = vrsqrt.f32 %v1647_v42  ;;  %v4073_v57 = vmul.f32 %v1298_v17, %v2964_v9  ;;  %vm1685_vm4 = vweird.f32 %v1647_v42 }
 0x32e   :  { %v1520_v43 = vmul.f32 %v4073_v57, %v4073_v57 }
 0x330   :  { %1315 = vadd.xlane.f32.xlu0 %v4070_v26  ;;  %v4076_v48 = vpop.f32.mrf.mxu3 }
 0x332   :  { %v2495_v3 = vpop.eup %2494 }
 0x333   :  { %v1680_v18 = vmul.f32 %v2495_v3, %v1647_v42  ;;  %v1426_v16 = vpop.xlane.xlu0 %1425  ;;  %vm1686_vm3 = vweird.f32 %v2495_v3  ;;  %v1180_v42 = vpop.f32.mrf.mxu1 }
 0x334   :  { %v1488_v59 = vmul.f32 %v1426_v16, %v2964_v9  ;;  %vm1687_vm5 = vmor %vm1685_vm4, %vm1686_vm3 }
 0x335   :  { %v1681_v24 = vmul.f32 %v2495_v3, %v1680_v18  ;;  %v1616_v18 = vsub.f32 %v3977_v32, %v4073_v57 }
 0x336   :  { %v1552_v4 = vsub.f32 %v1488_v59, %v1520_v43  ;;  %v4123_v59 = vadd.f32 %v4063_v58, %v1180_v42 }
 0x337   :  { %v1682_v39 = vmul.f32 0.5, %v1681_v24 }
 0x338   :  { %v1584_v51 = vmax.f32 %v1552_v4, 0.0  ;;  %1443 = vadd.xlane.f32.xlu0 %v1401_v52  ;;  %v1204_v34 = vpop.f32.mrf.mxu3 }
 0x339   :  { %v1683_v28 = vsub.f32 1.5, %v1682_v39  ;;  %v4084_v61 = vadd.f32 %v4063_v58, %v1204_v34 }
 0x33a   :  { %v1648_v0 = vadd.f32 1e-05, %v1584_v51 }
 0x33b   :  { %v1684_v45 = vmul.f32 %v2495_v3, %v1683_v28  ;;  %v1300_v13 = vpop.xlane.xlu0 %1299  ;;  %v1415_v63 = vmul.f32 %v4084_v61, %v4084_v61  ;;  %v4134_v28 = vld [vmem:[%s4952_s2 + $0x180] sm:$0xff] }
 0x33c   :  { %2496 = vrsqrt.f32 %v1648_v0  ;;  %v4094_v41 = vmul.f32 %v1300_v13, %v2964_v9  ;;  %vm1695_vm7 = vweird.f32 %v1648_v0 }
 0x33d   :  { %v1688_v8 = vsel %vm1687_vm5, %v2495_v3, %v1684_v45  ;;  %1471 = vadd.xlane.f32.xlu2 %v1415_v63 }
 0x33e   :  { %v1999_v23 = vmul.f32 %v1688_v8, %v1615_v47  ;;  %v1521_v21 = vmul.f32 %v4094_v41, %v4094_v41 }
 0x340   :  { %1321 = vadd.xlane.f32.xlu0 %v4091_v30  ;;  %v4097_v6 = vpop.f32.mrf.mxu3  ;;  %v2032_v60 = vmul.f32 %v4105_v15, %v1999_v23 }
 0x342   :  { %v2497_v20 = vpop.eup %2496  ;;  %v2065_v43 = vadd.f32 %v4112_v49, %v2032_v60 }
 0x343   :  { %v1690_v62 = vmul.f32 %v2497_v20, %v1648_v0  ;;  %v1428_v31 = vpop.xlane.xlu0 %1427  ;;  %vm1696_vm6 = vweird.f32 %v2497_v20  ;;  %v4139_v0 = vld [vmem:[%s4952_s2 + $0x188] sm:$0xff] }
 0x344   :  { %v1489_v50 = vmul.f32 %v1428_v31, %v2964_v9  ;;  %vm1697_vm8 = vmor %vm1695_vm7, %vm1696_vm6  ;;  %v2097_v32 = vmax.f32 %v2065_v43, 0.0 }
 0x345   :  { %v1691_v27 = vmul.f32 %v2497_v20, %v1690_v62 }
 0x346   :  { %v1553_v7 = vsub.f32 %v1489_v50, %v1521_v21  ;;  %v2145_v62 = vmul.f32 %v4134_v28, %v2097_v32  ;;  %v1407_v50 = vmul.f32 %v4123_v59, %v4123_v59 }
 0x347   :  { %v1692_v35 = vmul.f32 0.5, %v1691_v27 }
 0x348   :  { %v1585_v14 = vmax.f32 %v1553_v7, 0.0  ;;  %1449 = vadd.xlane.f32.xlu0 %v1404_v38  ;;  %v1210_v37 = vpop.f32.mrf.mxu3 }
 0x349   :  { %v1693_v5 = vsub.f32 1.5, %v1692_v35  ;;  %v4116_v17 = vadd.f32 %v4063_v58, %v1210_v37  ;;  %v1432_v37 = vpop.xlane.xlu2 %1431 }
 0x34a   :  { %v1649_v40 = vadd.f32 1e-05, %v1585_v14  ;;  %v1183_v14 = vpop.f32.mrf.mxu1 }
 0x34b   :  { %v1694_v29 = vmul.f32 %v2497_v20, %v1693_v5  ;;  %v1302_v3 = vpop.xlane.xlu0 %1301  ;;  %1347 = vadd.xlane.f32.xlu1 %v4116_v17  ;;  %v1417_v47 = vmul.f32 %v4116_v17, %v4116_v17 }
 0x34c   :  { %2498 = vrsqrt.f32 %v1649_v40  ;;  %v4127_v52 = vmul.f32 %v1302_v3, %v2964_v9  ;;  %vm1705_vm10 = vweird.f32 %v1649_v40 }
 0x34d   :  { %v1698_v16 = vsel %vm1697_vm8, %v2497_v20, %v1694_v29 }
 0x34e   :  { %v2000_v24 = vmul.f32 %v1698_v16, %v1616_v18  ;;  %v1522_v63 = vmul.f32 %v4127_v52, %v4127_v52  ;;  %v1617_v18 = vsub.f32 %v3983_v53, %v4094_v41 }
 0x350   :  { %v2033_v4 = vmul.f32 %v4105_v15, %v2000_v24  ;;  %1327 = vadd.xlane.f32.xlu0 %v4123_v59  ;;  %v1213_v51 = vpop.f32.mrf.mxu3  ;;  %v4164_v24 = vadd.f32 %v4063_v58, %v1183_v14 }
 0x351   :  { %v4142_v45 = vadd.f32 %v4063_v58, %v1213_v51 }
 0x352   :  { %v2499_v39 = vpop.eup %2498  ;;  %v2066_v57 = vadd.f32 %v4112_v49, %v2033_v4  ;;  %v1491_v4 = vmul.f32 %v1432_v37, %v2964_v9  ;;  %v1186_v37 = vpop.f32.mrf.mxu1 }
 0x353   :  { %v1700_v34 = vmul.f32 %v2499_v39, %v1649_v40  ;;  %v1430_v13 = vpop.xlane.xlu0 %1429  ;;  %1475 = vadd.xlane.f32.xlu1 %v1417_v47  ;;  %1349 = vadd.xlane.f32.xlu2 %v4142_v45  ;;  %vm1706_vm9 = vweird.f32 %v2499_v39  ;;  %v1418_v3 = vmul.f32 %v4142_v45, %v4142_v45 }
 0x354   :  { %v2098_v8 = vmax.f32 %v2066_v57, 0.0  ;;  %v1490_v23 = vmul.f32 %v1430_v13, %v2964_v9  ;;  %vm1707_vm11 = vmor %vm1705_vm10, %vm1706_vm9  ;;  %v4175_v13 = vld [vmem:[%s4952_s2 + $0x190] sm:$0xff] }
 0x355   :  { %v1701_v20 = vmul.f32 %v2499_v39, %v1700_v34 }
 0x356   :  { %v2146_v31 = vmul.f32 %v4139_v0, %v2098_v8  ;;  %v1554_v21 = vsub.f32 %v1490_v23, %v1522_v63 }
 0x357   :  { %v1702_v27 = vmul.f32 0.5, %v1701_v20 }
 0x358   :  { %v1586_v7 = vmax.f32 %v1554_v21, 0.0  ;;  %1455 = vadd.xlane.f32.xlu0 %v1407_v50  ;;  %v2177_v38 = vadd.f32 %v2146_v31, %v2145_v62  ;;  %v4154_v60 = vpop.f32.mrf.mxu3  ;;  %v1408_v21 = vmul.f32 %v4164_v24, %v4164_v24 }
 0x359   :  { %v1703_v35 = vsub.f32 1.5, %v1702_v27 }
 0x35a   :  { %v1650_v5 = vadd.f32 1e-05, %v1586_v7 }
 0x35b   :  { %v1704_v42 = vmul.f32 %v2499_v39, %v1703_v35  ;;  %v1304_v29 = vpop.xlane.xlu0 %1303  ;;  %1477 = vadd.xlane.f32.xlu2 %v1418_v3 }
 0x35c   :  { %2500 = vrsqrt.f32 %v1650_v5  ;;  %v4161_v16 = vmul.f32 %v1304_v29, %v2964_v9  ;;  %vm1715_vm13 = vweird.f32 %v1650_v5 }
 0x35d   :  { %v1708_v43 = vsel %vm1707_vm11, %v2499_v39, %v1704_v42 }
 0x35e   :  { %v2001_v40 = vmul.f32 %v1708_v43, %v1617_v18  ;;  %v1523_v32 = vmul.f32 %v4161_v16, %v4161_v16 }
 0x360   :  { %v2034_v57 = vmul.f32 %v4105_v15, %v2001_v40  ;;  %v1555_v51 = vsub.f32 %v1491_v4, %v1523_v32  ;;  %1329 = vadd.xlane.f32.xlu0 %v4164_v24  ;;  %v1219_v39 = vpop.f32.mrf.mxu3 }
 0x361   :  { %v4178_v8 = vadd.f32 %v4063_v58, %v1219_v39 }
 0x362   :  { %v2501_v53 = vpop.eup %2500  ;;  %v2067_v41 = vadd.f32 %v4112_v49, %v2034_v57  ;;  %v1587_v34 = vmax.f32 %v1555_v51, 0.0 }
 0x363   :  { %v1710_v47 = vmul.f32 %v2501_v53, %v1650_v5  ;;  %v1306_v63 = vpop.xlane.xlu0 %1305  ;;  %1353 = vadd.xlane.f32.xlu1 %v4178_v8  ;;  %vm1716_vm12 = vweird.f32 %v2501_v53  ;;  %v1420_v18 = vmul.f32 %v4178_v8, %v4178_v8  ;;  %v4199_v5 = vadd.f32 %v4063_v58, %v1186_v37 }
 0x364   :  { %v2099_v23 = vmax.f32 %v2067_v41, 0.0  ;;  %v1651_v20 = vadd.f32 1e-05, %v1587_v34  ;;  %v4185_v7 = vmul.f32 %v1306_v63, %v2964_v9  ;;  %vm1717_vm15 = vmor %vm1715_vm13, %vm1716_vm12 }
 0x365   :  { %v1711_v62 = vmul.f32 %v2501_v53, %v1710_v47 }
 0x366   :  { %v2147_v31 = vmul.f32 %v4175_v13, %v2099_v23  ;;  %2502 = vrsqrt.f32 %v1651_v20  ;;  %v1524_v4 = vmul.f32 %v4185_v7, %v4185_v7  ;;  %v4207_v23 = vld [vmem:[%s4952_s2 + $0x198] sm:$0xff]  ;;  %vm1725_vm1 = vweird.f32 %v1651_v20 }
 0x367   :  { %v1712_v50 = vmul.f32 0.5, %v1711_v62 }
 0x368   :  { %v2178_v27 = vadd.f32 %v2177_v38, %v2147_v31  ;;  %1457 = vadd.xlane.f32.xlu0 %v1408_v21  ;;  %v1222_v14 = vpop.f32.mrf.mxu3  ;;  %v1618_v38 = vsub.f32 %v3994_v46, %v4127_v52 }
 0x369   :  { %v1713_v35 = vsub.f32 1.5, %v1712_v50  ;;  %v4188_v29 = vadd.f32 %v4063_v58, %v1222_v14 }
 0x36b   :  { %v1714_v42 = vmul.f32 %v2501_v53, %v1713_v35  ;;  %v1434_v3 = vpop.xlane.xlu0 %1433  ;;  %1481 = vadd.xlane.f32.xlu1 %v1420_v18  ;;  %1355 = vadd.xlane.f32.xlu2 %v4188_v29  ;;  %v1421_v50 = vmul.f32 %v4188_v29, %v4188_v29  ;;  %v1409_v18 = vmul.f32 %v4199_v5, %v4199_v5 }
 0x36c   :  { %v2503_v43 = vpop.eup %2502  ;;  %v1492_v40 = vmul.f32 %v1434_v3, %v2964_v9  ;;  %v1619_v3 = vsub.f32 %v3986_v25, %v4161_v16 }
 0x36d   :  { %v1718_v32 = vsel %vm1717_vm15, %v2501_v53, %v1714_v42  ;;  %v1720_v57 = vmul.f32 %v2503_v43, %v1651_v20  ;;  %vm1726_vm0 = vweird.f32 %v2503_v43 }
 0x36e   :  { %v2002_v51 = vmul.f32 %v1718_v32, %v1618_v38  ;;  %v1556_v41 = vsub.f32 %v1492_v40, %v1524_v4  ;;  %vm1727_vm2 = vmor %vm1725_vm1, %vm1726_vm0 }
 0x36f   :  { %v1721_v34 = vmul.f32 %v2503_v43, %v1720_v57 }
 0x370   :  { %v2035_v39 = vmul.f32 %v4105_v15, %v2002_v51  ;;  %v1588_v46 = vmax.f32 %v1556_v41, 0.0  ;;  %1331 = vadd.xlane.f32.xlu0 %v4199_v5  ;;  %v1225_v53 = vpop.f32.mrf.mxu3 }
 0x371   :  { %v1722_v52 = vmul.f32 0.5, %v1721_v34  ;;  %v4210_v31 = vadd.f32 %v4063_v58, %v1225_v53 }
 0x372   :  { %v2068_v47 = vadd.f32 %v4112_v49, %v2035_v39  ;;  %v1652_v63 = vadd.f32 1e-05, %v1588_v46  ;;  %v4236_v39 = vadd.f32 %v4063_v58, %v4040_v19  ;;  %v1620_v19 = vsub.f32 %v4006_v2, %v4185_v7  ;;  %v4254_v2 = vld [vmem:[%s4952_s2 + $0x1a8] sm:$0xff] }
 0x373   :  { %v1723_v62 = vsub.f32 1.5, %v1722_v52  ;;  %v1308_v21 = vpop.xlane.xlu0 %1307  ;;  %1483 = vadd.xlane.f32.xlu2 %v1421_v50  ;;  %v1422_v37 = vmul.f32 %v4210_v31, %v4210_v31 }
 0x374   :  { %v2100_v35 = vmax.f32 %v2068_v47, 0.0  ;;  %2504 = vrsqrt.f32 %v1652_v63  ;;  %v4222_v32 = vmul.f32 %v1308_v21, %v2964_v9  ;;  %vm1735_vm4 = vweird.f32 %v1652_v63 }
 0x375   :  { %v1724_v14 = vmul.f32 %v2503_v43, %v1723_v62  ;;  %1485 = vadd.xlane.f32.xlu1 %v1422_v37 }
 0x376   :  { %v2148_v42 = vmul.f32 %v4207_v23, %v2100_v35  ;;  %v1525_v25 = vmul.f32 %v4222_v32, %v4222_v32 }
 0x377   :  { %v1728_v38 = vsel %vm1727_vm2, %v2503_v43, %v1724_v14 }
 0x378   :  { %v2179_v4 = vadd.f32 %v2178_v27, %v2148_v42  ;;  %v2003_v40 = vmul.f32 %v1728_v38, %v1619_v3  ;;  %1459 = vadd.xlane.f32.xlu0 %v1409_v18  ;;  %v4232_v27 = vld [vmem:[%s4952_s2 + $0x1a0] sm:$0xff]  ;;  %v1440_v42 = vpop.xlane.xlu1 %1439  ;;  %v1410_v38 = vmul.f32 %v4236_v39, %v4236_v39 }
 0x37a   :  { %v2505_v20 = vpop.eup %2504  ;;  %v2036_v57 = vmul.f32 %v4105_v15, %v2003_v40  ;;  %v4244_v40 = vpop.xlane.xlu2 %1441 }
 0x37b   :  { %v1730_v51 = vmul.f32 %v2505_v20, %v1652_v63  ;;  %v1436_v41 = vpop.xlane.xlu0 %1435  ;;  %vm1736_vm3 = vweird.f32 %v2505_v20 }
 0x37c   :  { %v2069_v34 = vadd.f32 %v4112_v49, %v2036_v57  ;;  %v1493_v16 = vmul.f32 %v1436_v41, %v2964_v9  ;;  %vm1737_vm5 = vmor %vm1735_vm4, %vm1736_vm3 }
 0x37d   :  { %v1731_v43 = vmul.f32 %v2505_v20, %v1730_v51 }
 0x37e   :  { %v2101_v46 = vmax.f32 %v2069_v34, 0.0  ;;  %v1557_v52 = vsub.f32 %v1493_v16, %v1525_v25 }
 0x37f   :  { %v1732_v47 = vmul.f32 0.5, %v1731_v43 }
 0x380   :  { %v2149_v53 = vmul.f32 %v4232_v27, %v2101_v46  ;;  %v1589_v62 = vmax.f32 %v1557_v52, 0.0  ;;  %1333 = vadd.xlane.f32.xlu0 %v4236_v39  ;;  %v1318_v34 = vpop.xlane.xlu1 %1317  ;;  %v4261_v46 = vadd.f32 %v4063_v58, %v4048_v55 }
 0x381   :  { %v1733_v21 = vsub.f32 1.5, %v1732_v47 }
 0x382   :  { %v2180_v50 = vadd.f32 %v2179_v4, %v2149_v53  ;;  %v1653_v35 = vadd.f32 1e-05, %v1589_v62  ;;  %v1320_v62 = vpop.xlane.xlu2 %1319 }
 0x383   :  { %v1734_v14 = vmul.f32 %v2505_v20, %v1733_v21  ;;  %v1310_v37 = vpop.xlane.xlu0 %1309 }
 0x384   :  { %2506 = vrsqrt.f32 %v1653_v35  ;;  %v4248_v4 = vmul.f32 %v1310_v37, %v2964_v9  ;;  %vm1745_vm7 = vweird.f32 %v1653_v35 }
 0x385   :  { %v1738_v3 = vsel %vm1737_vm5, %v2505_v20, %v1734_v14 }
 0x386   :  { %v2004_v18 = vmul.f32 %v1738_v3, %v1620_v19  ;;  %v1526_v25 = vmul.f32 %v4248_v4, %v4248_v4 }
 0x388   :  { %v2037_v57 = vmul.f32 %v4105_v15, %v2004_v18  ;;  %1461 = vadd.xlane.f32.xlu0 %v1410_v38  ;;  %v1621_v38 = vsub.f32 %v4017_v54, %v4222_v32 }
 0x38a   :  { %v2507_v63 = vpop.eup %2506  ;;  %v2070_v51 = vadd.f32 %v4112_v49, %v2037_v57 }
 0x38b   :  { %v1740_v7 = vmul.f32 %v2507_v63, %v1653_v35  ;;  %v1438_v20 = vpop.xlane.xlu0 %1437  ;;  %vm1746_vm6 = vweird.f32 %v2507_v63 }
 0x38c   :  { %v2102_v41 = vmax.f32 %v2070_v51, 0.0  ;;  %v1494_v16 = vmul.f32 %v1438_v20, %v2964_v9  ;;  %vm1747_vm8 = vmor %vm1745_vm7, %vm1746_vm6  ;;  %v1495_v20 = vmul.f32 %v1440_v42, %v2964_v9  ;;  %v2135_v42 = vld [vmem:[%s4952_s2 + $0x1b0] sm:$0xff] }
 0x38d   :  { %v1741_v43 = vmul.f32 %v2507_v63, %v1740_v7  ;;  %v1446_v7 = vpop.xlane.xlu1 %1445 }
 0x38e   :  { %v2150_v52 = vmul.f32 %v4254_v2, %v2102_v41  ;;  %v1558_v47 = vsub.f32 %v1494_v16, %v1526_v25  ;;  %v4274_v41 = vmul.f32 %v1318_v34, %v2964_v9  ;;  %v1498_v32 = vmul.f32 %v1446_v7, %v2964_v9 }
 0x38f   :  { %v1742_v53 = vmul.f32 0.5, %v1741_v43  ;;  %v1448_v43 = vpop.xlane.xlu2 %1447  ;;  %v4287_v34 = vmul.f32 %v1320_v62, %v2964_v9  ;;  %v4295_v7 = vadd.f32 %v4063_v58, %v4058_v12 }
 0x390   :  { %v1590_v21 = vmax.f32 %v1558_v47, 0.0  ;;  %1335 = vadd.xlane.f32.xlu0 %v4261_v46  ;;  %v2181_v14 = vadd.f32 %v2180_v50, %v2150_v52  ;;  %v1411_v50 = vmul.f32 %v4261_v46, %v4261_v46  ;;  %v1530_v52 = vmul.f32 %v4274_v41, %v4274_v41 }
 0x391   :  { %v1743_v37 = vsub.f32 1.5, %v1742_v53  ;;  %v1531_v62 = vmul.f32 %v4287_v34, %v4287_v34 }
 0x392   :  { %v1654_v19 = vadd.f32 1e-05, %v1590_v21 }
 0x393   :  { %v1744_v3 = vmul.f32 %v2507_v63, %v1743_v37  ;;  %v1312_v18 = vpop.xlane.xlu0 %1311 }
 0x394   :  { %2508 = vrsqrt.f32 %v1654_v19  ;;  %v4268_v57 = vmul.f32 %v1312_v18, %v2964_v9  ;;  %v1562_v18 = vsub.f32 %v1498_v32, %v1530_v52  ;;  %vm1755_vm10 = vweird.f32 %v1654_v19 }
 0x395   :  { %v1748_v55 = vsel %vm1747_vm8, %v2507_v63, %v1744_v3 }
 0x396   :  { %v2005_v51 = vmul.f32 %v1748_v55, %v1621_v38  ;;  %v1527_v35 = vmul.f32 %v4268_v57, %v4268_v57  ;;  %v1499_v38 = vmul.f32 %v1448_v43, %v2964_v9 }
 0x398   :  { %v2038_v54 = vmul.f32 %v4105_v15, %v2005_v51  ;;  %1463 = vadd.xlane.f32.xlu0 %v1411_v50  ;;  %v1559_v63 = vsub.f32 %v1495_v20, %v1527_v35  ;;  %v1496_v35 = vmul.f32 %v4244_v40, %v2964_v9 }
 0x39a   :  { %v2509_v25 = vpop.eup %2508  ;;  %v2071_v16 = vadd.f32 %v4112_v49, %v2038_v54  ;;  %v1591_v53 = vmax.f32 %v1559_v63, 0.0  ;;  %v1594_v63 = vmax.f32 %v1562_v18, 0.0 }
 0x39b   :  { %v1750_v47 = vmul.f32 %v2509_v25, %v1654_v19  ;;  %v1314_v21 = vpop.xlane.xlu0 %1313  ;;  %vm1756_vm9 = vweird.f32 %v2509_v25 }
 0x39c   :  { %v2103_v37 = vmax.f32 %v2071_v16, 0.0  ;;  %v4290_v3 = vmul.f32 %v1314_v21, %v2964_v9  ;;  %v1655_v51 = vadd.f32 1e-05, %v1591_v53  ;;  %v1563_v16 = vsub.f32 %v1499_v38, %v1531_v62  ;;  %vm1757_vm11 = vmor %vm1755_vm10, %vm1756_vm9 }
 0x39d   :  { %v1751_v55 = vmul.f32 %v2509_v25, %v1750_v47  ;;  %v1622_v47 = vsub.f32 %v4035_v1, %v4248_v4  ;;  %v1412_v38 = vmul.f32 %v4295_v7, %v4295_v7 }
 0x39e   :  { %v2151_v50 = vmul.f32 %v2135_v42, %v2103_v37  ;;  %2510 = vrsqrt.f32 %v1655_v51  ;;  %v1528_v32 = vmul.f32 %v4290_v3, %v4290_v3  ;;  %v1595_v21 = vmax.f32 %v1563_v16, 0.0 }
 0x39f   :  { %v1752_v20 = vmul.f32 0.5, %v1751_v55  ;;  %vm1765_vm13 = vweird.f32 %v1655_v51 }
 0x3a0   :  { %v2182_v54 = vadd.f32 %v2181_v14, %v2151_v50  ;;  %1337 = vadd.xlane.f32.xlu0 %v4295_v7  ;;  %v1560_v12 = vsub.f32 %v1496_v35, %v1528_v32  ;;  %v4306_v14 = vadd.f32 1e-05, %v1594_v63  ;;  %v4315_v1 = vadd.f32 1e-05, %v1595_v21  ;;  %v2136_v35 = vld [vmem:[%s4952_s2 + $0x1b8] sm:$0xff] }
 0x3a1   :  { %v1753_v43 = vsub.f32 1.5, %v1752_v20 }
 0x3a2   :  { %v1592_v53 = vmax.f32 %v1560_v12, 0.0  ;;  %vm1795_vm6 = vweird.f32 %v4306_v14  ;;  %vm1805_vm10 = vweird.f32 %v4315_v1 }
 0x3a3   :  { %v1754_v52 = vmul.f32 %v2509_v25, %v1753_v43  ;;  %v1316_v42 = vpop.xlane.xlu0 %1315 }
 0x3a4   :  { %v2511_v40 = vpop.eup %2510  ;;  %v1656_v18 = vadd.f32 1e-05, %v1592_v53  ;;  %v4312_v20 = vmul.f32 %v1316_v42, %v2964_v9 }
 0x3a5   :  { %v1758_v37 = vsel %vm1757_vm11, %v2509_v25, %v1754_v52  ;;  %v1760_v50 = vmul.f32 %v2511_v40, %v1655_v51  ;;  %vm1766_vm12 = vweird.f32 %v2511_v40  ;;  %v1413_v52 = vmul.f32 %v4066_v33, %v4066_v33 }
 0x3a6   :  { %v2006_v55 = vmul.f32 %v1758_v37, %v1622_v47  ;;  %2512 = vrsqrt.f32 %v1656_v18  ;;  %v1529_v43 = vmul.f32 %v4312_v20, %v4312_v20  ;;  %vm1767_vm15 = vmor %vm1765_vm13, %vm1766_vm12  ;;  %vm1775_vm1 = vweird.f32 %v1656_v18 }
 0x3a7   :  { %v1761_v19 = vmul.f32 %v2511_v40, %v1760_v50  ;;  %2514 = vrsqrt.f32 %v4306_v14 }
 0x3a8   :  { %v2039_v62 = vmul.f32 %v4105_v15, %v2006_v55  ;;  %1465 = vadd.xlane.f32.xlu0 %v1412_v38  ;;  %2516 = vrsqrt.f32 %v4315_v1  ;;  %v1623_v55 = vsub.f32 %v4000_v11, %v4268_v57 }
 0x3a9   :  { %v1762_v25 = vmul.f32 0.5, %v1761_v19 }
 0x3aa   :  { %v2072_v4 = vadd.f32 %v4112_v49, %v2039_v62 }
 0x3ab   :  { %v1444_v32 = vpop.xlane.xlu0 %1443  ;;  %v1763_v16 = vsub.f32 1.5, %v1762_v25 }
 0x3ac   :  { %v2104_v63 = vmax.f32 %v2072_v4, 0.0  ;;  %v1497_v12 = vmul.f32 %v1444_v32, %v2964_v9  ;;  %v2513_v42 = vpop.eup %2512 }
 0x3ad   :  { %v1764_v53 = vmul.f32 %v2511_v40, %v1763_v16  ;;  %v4327_v37 = vpop.eup %2514  ;;  %v1770_v50 = vmul.f32 %v2513_v42, %v1656_v18  ;;  %vm1776_vm0 = vweird.f32 %v2513_v42 }
 0x3ae   :  { %v2152_v47 = vmul.f32 %v2136_v35, %v2104_v63  ;;  %v1561_v21 = vsub.f32 %v1497_v12, %v1529_v43  ;;  %v1790_v35 = vmul.f32 %v4327_v37, %v4306_v14  ;;  %v4334_v51 = vpop.eup %2516  ;;  %vm1777_vm2 = vmor %vm1775_vm1, %vm1776_vm0  ;;  %vm1796_vm3 = vweird.f32 %v4327_v37 }
 0x3af   :  { %v1768_v38 = vsel %vm1767_vm15, %v2511_v40, %v1764_v53  ;;  %v1771_v25 = vmul.f32 %v2513_v42, %v1770_v50  ;;  %v1800_v12 = vmul.f32 %v4334_v51, %v4315_v1  ;;  %vm1797_vm8 = vmor %vm1795_vm6, %vm1796_vm3  ;;  %vm1806_vm9 = vweird.f32 %v4334_v51 }
 0x3b0   :  { %v2183_v62 = vadd.f32 %v2182_v54, %v2152_v47  ;;  %v1593_v19 = vmax.f32 %v1561_v21, 0.0  ;;  %1467 = vadd.xlane.f32.xlu0 %v1413_v52  ;;  %v2007_v4 = vmul.f32 %v1768_v38, %v1623_v55  ;;  %v4340_v54 = vadd.f32 %v4063_v58, %v4076_v48  ;;  %v4348_v52 = vld [vmem:[%s4952_s2 + $0x1c0] sm:$0xff]  ;;  %vm1807_vm11 = vmor %vm1805_vm10, %vm1806_vm9 }
 0x3b1   :  { %v1772_v16 = vmul.f32 0.5, %v1771_v25  ;;  %v1791_v40 = vmul.f32 %v4327_v37, %v1790_v35  ;;  %v1624_v21 = vsub.f32 %v4009_v10, %v4290_v3  ;;  %v1626_v14 = vsub.f32 %v4020_v44, %v4274_v41  ;;  %v4396_v44 = vld [vmem:[%s4952_s2 + $0x1d0] sm:$0xff] }
 0x3b2   :  { %v1657_v32 = vadd.f32 1e-05, %v1593_v19  ;;  %v2040_v63 = vmul.f32 %v4105_v15, %v2007_v4  ;;  %v1801_v4 = vmul.f32 %v4334_v51, %v1800_v12 }
 0x3b3   :  { %v1322_v43 = vpop.xlane.xlu0 %1321  ;;  %v1773_v57 = vsub.f32 1.5, %v1772_v16  ;;  %v1792_v19 = vmul.f32 0.5, %v1791_v40 }
 0x3b4   :  { %2518 = vrsqrt.f32 %v1657_v32  ;;  %v2073_v11 = vadd.f32 %v4112_v49, %v2040_v63  ;;  %v4353_v48 = vmul.f32 %v1322_v43, %v2964_v9  ;;  %vm1785_vm5 = vweird.f32 %v1657_v32 }
 0x3b5   :  { %v1774_v53 = vmul.f32 %v2513_v42, %v1773_v57  ;;  %v1802_v57 = vmul.f32 0.5, %v1801_v4 }
 0x3b6   :  { %v2105_v47 = vmax.f32 %v2073_v11, 0.0  ;;  %v1532_v10 = vmul.f32 %v4353_v48, %v4353_v48  ;;  %v1414_v11 = vmul.f32 %v4340_v54, %v4340_v54 }
 0x3b7   :  { %v1778_v50 = vsel %vm1777_vm2, %v2513_v42, %v1774_v53  ;;  %v1793_v42 = vsub.f32 1.5, %v1792_v19  ;;  %v1803_v19 = vsub.f32 1.5, %v1802_v57  ;;  %v1627_v57 = vsub.f32 %v4025_v36, %v4287_v34 }
 0x3b8   :  { %1341 = vadd.xlane.f32.xlu0 %v4340_v54  ;;  %v2153_v55 = vmul.f32 %v4348_v52, %v2105_v47  ;;  %v2008_v25 = vmul.f32 %v1778_v50, %v1624_v21  ;;  %v4404_v36 = vadd.f32 %v4063_v58, %v4097_v6  ;;  %v1628_v6 = vsub.f32 %v4091_v30, %v4353_v48 }
 0x3b9   :  { %v1794_v50 = vmul.f32 %v4327_v37, %v1793_v42 }
 0x3ba   :  { %v2519_v38 = vpop.eup %2518  ;;  %v2184_v35 = vadd.f32 %v2183_v62, %v2153_v55  ;;  %v2041_v16 = vmul.f32 %v4105_v15, %v2008_v25  ;;  %v4368_v62 = vld [vmem:[%s4952_s2 + $0x1c8] sm:$0xff] }
 0x3bb   :  { %v1780_v63 = vmul.f32 %v2519_v38, %v1657_v32  ;;  %v1450_v18 = vpop.xlane.xlu0 %1449  ;;  %vm1786_vm4 = vweird.f32 %v2519_v38 }
 0x3bc   :  { %v1500_v3 = vmul.f32 %v1450_v18, %v2964_v9  ;;  %v2074_v40 = vadd.f32 %v4112_v49, %v2041_v16  ;;  %vm1787_vm7 = vmor %vm1785_vm5, %vm1786_vm4 }
 0x3bd   :  { %v1781_v43 = vmul.f32 %v2519_v38, %v1780_v63 }
 0x3be   :  { %v1564_v12 = vsub.f32 %v1500_v3, %v1532_v10  ;;  %v2106_v53 = vmax.f32 %v2074_v40, 0.0  ;;  %v1625_v10 = vsub.f32 %v4070_v26, %v4312_v20 }
 0x3bf   :  { %v1782_v47 = vmul.f32 0.5, %v1781_v43  ;;  %v1798_v43 = vsel %vm1797_vm8, %v4327_v37, %v1794_v50 }
 0x3c0   :  { %v1596_v21 = vmax.f32 %v1564_v12, 0.0  ;;  %1469 = vadd.xlane.f32.xlu0 %v1414_v11  ;;  %v2154_v4 = vmul.f32 %v4368_v62, %v2106_v53  ;;  %v1804_v11 = vmul.f32 %v4334_v51, %v1803_v19 }
 0x3c1   :  { %v1783_v55 = vsub.f32 1.5, %v1782_v47 }
 0x3c2   :  { %v1660_v25 = vadd.f32 1e-05, %v1596_v21  ;;  %v2185_v16 = vadd.f32 %v2184_v35, %v2154_v4  ;;  %v1808_v35 = vsel %vm1807_vm11, %v4334_v51, %v1804_v11 }
 0x3c3   :  { %v1784_v63 = vmul.f32 %v2519_v38, %v1783_v55  ;;  %v1328_v18 = vpop.xlane.xlu0 %1327  ;;  %v2011_v53 = vmul.f32 %v1808_v35, %v1627_v57  ;;  %v1416_v35 = vmul.f32 %v4404_v36, %v4404_v36 }
 0x3c4   :  { %2520 = vrsqrt.f32 %v1660_v25  ;;  %v4386_v20 = vmul.f32 %v1328_v18, %v2964_v9  ;;  %vm1815_vm13 = vweird.f32 %v1660_v25 }
 0x3c5   :  { %v1788_v3 = vsel %vm1787_vm7, %v2519_v38, %v1784_v63  ;;  %v2010_v38 = vmul.f32 %v1798_v43, %v1626_v14  ;;  %v2044_v18 = vmul.f32 %v4105_v15, %v2011_v53 }
 0x3c6   :  { %v2009_v32 = vmul.f32 %v1788_v3, %v1625_v10  ;;  %v1535_v12 = vmul.f32 %v4386_v20, %v4386_v20 }
 0x3c7   :  { %v2043_v51 = vmul.f32 %v4105_v15, %v2010_v38 }
 0x3c8   :  { %v2042_v26 = vmul.f32 %v4105_v15, %v2009_v32  ;;  %1343 = vadd.xlane.f32.xlu0 %v4084_v61 }
 0x3c9   :  { %v2076_v63 = vadd.f32 %v4112_v49, %v2043_v51 }
 0x3ca   :  { %v2521_v37 = vpop.eup %2520  ;;  %v2075_v42 = vadd.f32 %v4112_v49, %v2042_v26  ;;  %v4416_v26 = vld [vmem:[%s4952_s2 + $0x1d8] sm:$0xff] }
 0x3cb   :  { %v1810_v41 = vmul.f32 %v2521_v37, %v1660_v25  ;;  %v1456_v1 = vpop.xlane.xlu0 %1455  ;;  %vm1816_vm12 = vweird.f32 %v2521_v37  ;;  %v2108_v32 = vmax.f32 %v2076_v63, 0.0 }
 0x3cc   :  { %v2107_v40 = vmax.f32 %v2075_v42, 0.0  ;;  %v1503_v47 = vmul.f32 %v1456_v1, %v2964_v9  ;;  %vm1817_vm15 = vmor %vm1815_vm13, %vm1816_vm12  ;;  %v4432_v1 = vld [vmem:[%s4952_s2 + $0x1e8] sm:$0xff] }
 0x3cd   :  { %v1811_v21 = vmul.f32 %v2521_v37, %v1810_v41  ;;  %v2156_v30 = vmul.f32 %v4416_v26, %v2108_v32 }
 0x3ce   :  { %v2155_v34 = vmul.f32 %v4396_v44, %v2107_v40  ;;  %v1567_v55 = vsub.f32 %v1503_v47, %v1535_v12 }
 0x3cf   :  { %v1812_v50 = vmul.f32 0.5, %v1811_v21 }
 0x3d0   :  { %v2186_v19 = vadd.f32 %v2185_v16, %v2155_v34  ;;  %v1599_v4 = vmax.f32 %v1567_v55, 0.0  ;;  %1345 = vadd.xlane.f32.xlu0 %v4404_v36  ;;  %v2077_v16 = vadd.f32 %v4112_v49, %v2044_v18 }
 0x3d1   :  { %v1813_v10 = vsub.f32 1.5, %v1812_v50  ;;  %v4438_v50 = vadd.f32 %v4063_v58, %v4154_v60  ;;  %v1631_v58 = vsub.f32 %v4123_v59, %v4386_v20 }
 0x3d2   :  { %v1663_v3 = vadd.f32 1e-05, %v1599_v4  ;;  %v2109_v48 = vmax.f32 %v2077_v16, 0.0  ;;  %v2187_v47 = vadd.f32 %v2186_v19, %v2156_v30 }
 0x3d3   :  { %v1814_v43 = vmul.f32 %v2521_v37, %v1813_v10  ;;  %v1330_v11 = vpop.xlane.xlu0 %1329 }
 0x3d4   :  { %2522 = vrsqrt.f32 %v1663_v3  ;;  %v1376_v42 = vmul.f32 %v1330_v11, %v2964_v9  ;;  %vm1845_vm1 = vweird.f32 %v1663_v3 }
 0x3d5   :  { %v1818_v14 = vsel %vm1817_vm15, %v2521_v37, %v1814_v43  ;;  %v4426_v37 = vld [vmem:[%s4952_s2 + $0x1e0] sm:$0xff] }
 0x3d6   :  { %v2012_v38 = vmul.f32 %v1818_v14, %v1628_v6  ;;  %v1536_v53 = vmul.f32 %v1376_v42, %v1376_v42  ;;  %v2157_v34 = vmul.f32 %v4426_v37, %v2109_v48 }
 0x3d8   :  { %v2045_v25 = vmul.f32 %v4105_v15, %v2012_v38  ;;  %1473 = vadd.xlane.f32.xlu0 %v1416_v35  ;;  %v2188_v10 = vadd.f32 %v2187_v47, %v2157_v34  ;;  %v1419_v38 = vmul.f32 %v4438_v50, %v4438_v50  ;;  %v1632_v34 = vsub.f32 %v4164_v24, %v1376_v42 }
 0x3da   :  { %v2523_v57 = vpop.eup %2522  ;;  %v2078_v41 = vadd.f32 %v4112_v49, %v2045_v25 }
 0x3db   :  { %v1840_v40 = vmul.f32 %v2523_v57, %v1663_v3  ;;  %v1458_v12 = vpop.xlane.xlu0 %1457  ;;  %vm1846_vm0 = vweird.f32 %v2523_v57 }
 0x3dc   :  { %v2110_v51 = vmax.f32 %v2078_v41, 0.0  ;;  %v1504_v21 = vmul.f32 %v1458_v12, %v2964_v9  ;;  %vm1847_vm2 = vmor %vm1845_vm1, %vm1846_vm0 }
 0x3dd   :  { %v1841_v55 = vmul.f32 %v2523_v57, %v1840_v40 }
 0x3de   :  { %v2158_v4 = vmul.f32 %v4432_v1, %v2110_v51  ;;  %v1568_v63 = vsub.f32 %v1504_v21, %v1536_v53 }
 0x3df   :  { %v1842_v18 = vmul.f32 0.5, %v1841_v55 }
 0x3e0   :  { %v1600_v43 = vmax.f32 %v1568_v63, 0.0  ;;  %1351 = vadd.xlane.f32.xlu0 %v4438_v50  ;;  %v4442_v11 = vadd.f32 %v2188_v10, %v2158_v4 }
 0x3e1   :  { %v1843_v19 = vsub.f32 1.5, %v1842_v18  ;;  %v1406_v18 = vmul.f32 %v4051_v56, %v4051_v56 }
 0x3e2   :  { %5053 = vst [vmem:[#allocation2_spill] sm:$0xff] %v4442_v11  ;;  %v1664_v6 = vadd.f32 1e-05, %v1600_v43 }
 0x3e3   :  { %v1844_v32 = vmul.f32 %v2523_v57, %v1843_v19  ;;  %v1332_v16 = vpop.xlane.xlu0 %1331 }
 0x3e4   :  { %2524 = vrsqrt.f32 %v1664_v6  ;;  %v1377_v35 = vmul.f32 %v1332_v16, %v2964_v9  ;;  %vm1855_vm4 = vweird.f32 %v1664_v6 }
 0x3e5   :  { %v1848_v60 = vsel %vm1847_vm2, %v2523_v57, %v1844_v32 }
 0x3e6   :  { %v2015_v14 = vmul.f32 %v1848_v60, %v1631_v58  ;;  %v1537_v41 = vmul.f32 %v1377_v35, %v1377_v35 }
 0x3e8   :  { %1479 = vadd.xlane.f32.xlu0 %v1419_v38  ;;  %v2048_v57 = vmul.f32 %v4105_v15, %v2015_v14 }
 0x3ea   :  { %v2525_v25 = vpop.eup %2524  ;;  %v2081_v4 = vadd.f32 %v4112_v49, %v2048_v57 }
 0x3eb   :  { %v1850_v30 = vmul.f32 %v2525_v25, %v1664_v6  ;;  %v1460_v48 = vpop.xlane.xlu0 %1459  ;;  %vm1856_vm3 = vweird.f32 %v2525_v25 }
 0x3ec   :  { %v1505_v3 = vmul.f32 %v1460_v48, %v2964_v9  ;;  %vm1857_vm5 = vmor %vm1855_vm4, %vm1856_vm3  ;;  %v2113_v32 = vmax.f32 %v2081_v4, 0.0 }
 0x3ed   :  { %v1851_v40 = vmul.f32 %v2525_v25, %v1850_v30 }
 0x3ee   :  { %v1569_v12 = vsub.f32 %v1505_v3, %v1537_v41  ;;  %v2161_v38 = vmul.f32 %v4134_v28, %v2113_v32 }
 0x3ef   :  { %v1852_v47 = vmul.f32 0.5, %v1851_v40 }
 0x3f0   :  { %v1601_v59 = vmax.f32 %v1569_v12, 0.0  ;;  %1357 = vadd.xlane.f32.xlu0 %v4210_v31 }
 0x3f1   :  { %v1853_v20 = vsub.f32 1.5, %v1852_v47 }
 0x3f2   :  { %v1665_v51 = vadd.f32 1e-05, %v1601_v59 }
 0x3f3   :  { %v1854_v53 = vmul.f32 %v2525_v25, %v1853_v20  ;;  %v1334_v21 = vpop.xlane.xlu0 %1333  ;;  %v1633_v20 = vsub.f32 %v4199_v5, %v1377_v35 }
 0x3f4   :  { %2526 = vrsqrt.f32 %v1665_v51  ;;  %v1378_v43 = vmul.f32 %v1334_v21, %v2964_v9  ;;  %vm1865_vm7 = vweird.f32 %v1665_v51  ;;  %v4463_v21 = vpop.xlane.xlu1 %1323 }
 0x3f5   :  { %v1858_v55 = vsel %vm1857_vm5, %v2525_v25, %v1854_v53 }
 0x3f6   :  { %v2016_v63 = vmul.f32 %v1858_v55, %v1632_v34  ;;  %v1538_v58 = vmul.f32 %v1378_v43, %v1378_v43 }
 0x3f8   :  { %v2049_v10 = vmul.f32 %v4105_v15, %v2016_v63  ;;  %1453 = vadd.xlane.f32.xlu0 %v1406_v18 }
 0x3fa   :  { %v2527_v19 = vpop.eup %2526  ;;  %v2082_v6 = vadd.f32 %v4112_v49, %v2049_v10 }
 0x3fb   :  { %v1860_v16 = vmul.f32 %v2527_v19, %v1665_v51  ;;  %v1462_v24 = vpop.xlane.xlu0 %1461  ;;  %vm1866_vm6 = vweird.f32 %v2527_v19 }
 0x3fc   :  { %v2114_v42 = vmax.f32 %v2082_v6, 0.0  ;;  %v1506_v60 = vmul.f32 %v1462_v24, %v2964_v9  ;;  %vm1867_vm8 = vmor %vm1865_vm7, %vm1866_vm6  ;;  %v4470_v24 = vpop.xlane.xlu1 %1451 }
 0x3fd   :  { %v1861_v14 = vmul.f32 %v2527_v19, %v1860_v16 }
 0x3fe   :  { %v2162_v25 = vmul.f32 %v4139_v0, %v2114_v42  ;;  %v1570_v30 = vsub.f32 %v1506_v60, %v1538_v58  ;;  %v1634_v60 = vsub.f32 %v4236_v39, %v1378_v43  ;;  %v4487_v39 = vld [vmem:[%s4952_s2 + $0x315] ss:$0 sm:$0xff] }
 0x3ff   :  { %v1862_v48 = vmul.f32 0.5, %v1861_v14 }
 0x400   :  { %v2198_v41 = vadd.f32 %v2162_v25, %v2161_v38  ;;  %v1602_v3 = vmax.f32 %v1570_v30, 0.0  ;;  %v4473_v25 = vpop.xlane.xlu2 %1325 }
 0x401   :  { %v1863_v40 = vsub.f32 1.5, %v1862_v48 }
 0x402   :  { %v1666_v12 = vadd.f32 1e-05, %v1602_v3 }
 0x403   :  { %v1864_v47 = vmul.f32 %v2527_v19, %v1863_v40  ;;  %v1336_v59 = vpop.xlane.xlu0 %1335 }
 0x404   :  { %2528 = vrsqrt.f32 %v1666_v12  ;;  %v1379_v0 = vmul.f32 %v1336_v59, %v2964_v9  ;;  %vm1875_vm10 = vweird.f32 %v1666_v12 }
 0x405   :  { %v1868_v57 = vsel %vm1867_vm8, %v2527_v19, %v1864_v47 }
 0x406   :  { %v2017_v53 = vmul.f32 %v1868_v57, %v1633_v20  ;;  %v1539_v51 = vmul.f32 %v1379_v0, %v1379_v0 }
 0x408   :  { %v2050_v28 = vmul.f32 %v4105_v15, %v2017_v53 }
 0x40a   :  { %v2529_v34 = vpop.eup %2528  ;;  %v2083_v55 = vadd.f32 %v4112_v49, %v2050_v28 }
 0x40b   :  { %v1870_v4 = vmul.f32 %v2529_v34, %v1666_v12  ;;  %v1464_v63 = vpop.xlane.xlu0 %1463  ;;  %vm1876_vm9 = vweird.f32 %v2529_v34 }
 0x40c   :  { %v2115_v18 = vmax.f32 %v2083_v55, 0.0  ;;  %v1507_v10 = vmul.f32 %v1464_v63, %v2964_v9  ;;  %vm1877_vm11 = vmor %vm1875_vm10, %vm1876_vm9 }
 0x40d   :  { %v1871_v5 = vmul.f32 %v2529_v34, %v1870_v4 }
 0x40e   :  { %v2163_v35 = vmul.f32 %v4175_v13, %v2115_v18  ;;  %v1571_v19 = vsub.f32 %v1507_v10, %v1539_v51  ;;  %v4478_v13 = vld [vmem:[%s4952_s2 + $0x314] ss:$0 sm:$0xff] }
 0x40f   :  { %v1872_v32 = vmul.f32 0.5, %v1871_v5 }
 0x410   :  { %v2199_v6 = vadd.f32 %v2198_v41, %v2163_v35  ;;  %v1603_v16 = vmax.f32 %v1571_v19, 0.0  ;;  %v1340_v41 = vpop.xlane.xlu1 %1339  ;;  %v1635_v19 = vsub.f32 %v4261_v46, %v1379_v0 }
 0x411   :  { %v1873_v15 = vsub.f32 1.5, %v1872_v32 }
 0x412   :  { %v1667_v42 = vadd.f32 1e-05, %v1603_v16 }
 0x413   :  { %v1874_v58 = vmul.f32 %v2529_v34, %v1873_v15  ;;  %v1338_v49 = vpop.xlane.xlu0 %1337 }
 0x414   :  { %2530 = vrsqrt.f32 %v1667_v42  ;;  %v4482_v48 = vmul.f32 %v1338_v49, %v2964_v9  ;;  %vm1885_vm13 = vweird.f32 %v1667_v42 }
 0x415   :  { %v1878_v14 = vsel %vm1877_vm11, %v2529_v34, %v1874_v58  ;;  %v4494_v34 = vpop.xlane.xlu2 %1471  ;;  %v4499_v58 = vmul.f32 %v1340_v41, %v2964_v9 }
 0x416   :  { %v2018_v38 = vmul.f32 %v1878_v14, %v1634_v60  ;;  %v1540_v59 = vmul.f32 %v4482_v48, %v4482_v48 }
 0x417   :  { %v1541_v46 = vmul.f32 %v4499_v58, %v4499_v58 }
 0x418   :  { %v2051_v30 = vmul.f32 %v4478_v13, %v2018_v38  ;;  %v1348_v18 = vpop.xlane.xlu1 %1347 }
 0x41a   :  { %v2531_v3 = vpop.eup %2530  ;;  %v2084_v43 = vadd.f32 %v4487_v39, %v2051_v30 }
 0x41b   :  { %v1880_v40 = vmul.f32 %v2531_v3, %v1667_v42  ;;  %v1466_v12 = vpop.xlane.xlu0 %1465  ;;  %vm1886_vm12 = vweird.f32 %v2531_v3 }
 0x41c   :  { %v2116_v47 = vmax.f32 %v2084_v43, 0.0  ;;  %v1508_v20 = vmul.f32 %v1466_v12, %v2964_v9  ;;  %vm1887_vm15 = vmor %vm1885_vm13, %vm1886_vm12  ;;  %v4507_v43 = vmul.f32 %v1348_v18, %v2964_v9  ;;  %v1636_v18 = vsub.f32 %v4295_v7, %v4482_v48 }
 0x41d   :  { %v1881_v57 = vmul.f32 %v2531_v3, %v1880_v40 }
 0x41e   :  { %v2164_v53 = vmul.f32 %v4207_v23, %v2116_v47  ;;  %v1572_v28 = vsub.f32 %v1508_v20, %v1540_v59  ;;  %v1350_v23 = vpop.xlane.xlu2 %1349 }
 0x41f   :  { %v1882_v55 = vmul.f32 0.5, %v1881_v57  ;;  %v4528_v7 = vmul.f32 %v1350_v23, %v2964_v9 }
 0x420   :  { %v2200_v4 = vadd.f32 %v2199_v6, %v2164_v53  ;;  %v1604_v63 = vmax.f32 %v1572_v28, 0.0  ;;  %v1476_v60 = vpop.xlane.xlu1 %1475  ;;  %v1545_v53 = vmul.f32 %v4507_v43, %v4507_v43 }
 0x421   :  { %v1883_v51 = vsub.f32 1.5, %v1882_v55  ;;  %v1513_v59 = vmul.f32 %v1476_v60, %v2964_v9 }
 0x422   :  { %v1668_v10 = vadd.f32 1e-05, %v1604_v63 }
 0x423   :  { %v1884_v5 = vmul.f32 %v2531_v3, %v1883_v51  ;;  %v1468_v35 = vpop.xlane.xlu0 %1467 }
 0x424   :  { %2532 = vrsqrt.f32 %v1668_v10  ;;  %v1509_v42 = vmul.f32 %v1468_v35, %v2964_v9  ;;  %vm1895_vm1 = vweird.f32 %v1668_v10  ;;  %v1577_v35 = vsub.f32 %v1513_v59, %v1545_v53 }
 0x425   :  { %v1888_v32 = vsel %vm1887_vm15, %v2531_v3, %v1884_v5  ;;  %v2235_v5 = vld [vmem:[%s4952_s2 + $0x308] sm:$0xff] }
 0x426   :  { %v2019_v16 = vmul.f32 %v1888_v32, %v1635_v19  ;;  %v1573_v40 = vsub.f32 %v1509_v42, %v1541_v46  ;;  %v1478_v20 = vpop.xlane.xlu2 %1477  ;;  %2251 = vmatpush.msrb.mxu3 %v2235_v5  ;;  %v1609_v60 = vmax.f32 %v1577_v35, 0.0 }
 0x428   :  { %v2052_v15 = vmul.f32 %v4478_v13, %v2019_v16  ;;  %v1354_v28 = vpop.xlane.xlu1 %1353  ;;  %v2574_v16 = vld [vmem:[%s4954_s1] sm:$0x3] }
 0x429   :  { %2383 = vmatmul.msk.f32.vlgmr.msrb.gmra.mxu3 %vm1231_vm14, %v2574_v16 }
 0x42a   :  { %v2533_v6 = vpop.eup %2532  ;;  %v2085_v49 = vadd.f32 %v4487_v39, %v2052_v15 }
 0x42b   :  { %v1890_v14 = vmul.f32 %v2533_v6, %v1668_v10  ;;  %v1342_v38 = vpop.xlane.xlu0 %1341  ;;  %vm1896_vm0 = vweird.f32 %v2533_v6 }
 0x42c   :  { %v2117_v30 = vmax.f32 %v2085_v49, 0.0  ;;  %v4510_v47 = vmul.f32 %v1342_v38, %v2964_v9  ;;  %vm1897_vm2 = vmor %vm1895_vm1, %vm1896_vm0 }
 0x42d   :  { %v1891_v0 = vmul.f32 %v2533_v6, %v1890_v14 }
 0x42e   :  { %v2165_v3 = vmul.f32 %v4232_v27, %v2117_v30  ;;  %v1605_v27 = vmax.f32 %v1573_v40, 0.0  ;;  %v1356_v14 = vpop.xlane.xlu2 %1355  ;;  %v1546_v30 = vmul.f32 %v4528_v7, %v4528_v7 }
 0x42f   :  { %v1892_v41 = vmul.f32 0.5, %v1891_v0 }
 0x430   :  { %v2201_v12 = vadd.f32 %v2200_v4, %v2165_v3  ;;  %v1542_v4 = vmul.f32 %v4510_v47, %v4510_v47  ;;  %v4530_v48 = vadd.f32 1e-05, %v1605_v27  ;;  %v1511_v3 = vmul.f32 %v4494_v34, %v2964_v9  ;;  %v1482_v59 = vpop.xlane.xlu1 %1481 }
 0x431   :  { %v1893_v57 = vsub.f32 1.5, %v1892_v41  ;;  %v4545_v41 = vadd.f32 1e-05, %v1609_v60  ;;  %v1516_v34 = vmul.f32 %v1482_v59, %v2964_v9 }
 0x432   :  { %2534 = vrsqrt.f32 %v4530_v48  ;;  %vm1905_vm3 = vweird.f32 %v4530_v48 }
 0x433   :  { %v1894_v55 = vmul.f32 %v2533_v6, %v1893_v57  ;;  %v1470_v63 = vpop.xlane.xlu0 %1469  ;;  %vm1945_vm12 = vweird.f32 %v4545_v41 }
 0x434   :  { %v1510_v51 = vmul.f32 %v1470_v63, %v2964_v9 }
 0x435   :  { %v1898_v19 = vsel %vm1897_vm2, %v2533_v6, %v1894_v55  ;;  %v1514_v6 = vmul.f32 %v1478_v20, %v2964_v9  ;;  %v4548_v20 = vmul.f32 %v1354_v28, %v2964_v9  ;;  %v4556_v55 = vmul.f32 %v4463_v21, %v2964_v9 }
 0x436   :  { %v2020_v32 = vmul.f32 %v1898_v19, %v1636_v18  ;;  %v1574_v10 = vsub.f32 %v1510_v51, %v1542_v4  ;;  %v1501_v28 = vmul.f32 %v4470_v24, %v2964_v9  ;;  %v1484_v5 = vpop.xlane.xlu2 %1483 }
 0x437   :  { %v1578_v40 = vsub.f32 %v1514_v6, %v1546_v30  ;;  %v1548_v4 = vmul.f32 %v4548_v20, %v4548_v20  ;;  %v1533_v21 = vmul.f32 %v4556_v55, %v4556_v55 }
 0x438   :  { %v2053_v15 = vmul.f32 %v4478_v13, %v2020_v32  ;;  %v1606_v49 = vmax.f32 %v1574_v10, 0.0  ;;  %v4561_v18 = vpop.eup %2534  ;;  %v4573_v32 = vmul.f32 %v1356_v14, %v2964_v9 }
 0x439   :  { %v1580_v19 = vsub.f32 %v1516_v34, %v1548_v4  ;;  %v1900_v24 = vmul.f32 %v4561_v18, %v4530_v48  ;;  %v1565_v16 = vsub.f32 %v1501_v28, %v1533_v21  ;;  %vm1906_vm14 = vweird.f32 %v4561_v18 }
 0x43a   :  { %v2086_v42 = vadd.f32 %v4487_v39, %v2053_v15  ;;  %v4535_v38 = vadd.f32 1e-05, %v1606_v49  ;;  %v1517_v49 = vmul.f32 %v1484_v5, %v2964_v9  ;;  %v1549_v14 = vmul.f32 %v4573_v32, %v4573_v32  ;;  %vm4630_vm4 = vmor %vm1905_vm3, %vm1906_vm14 }
 0x43b   :  { %v1344_v23 = vpop.xlane.xlu0 %1343  ;;  %v1901_v30 = vmul.f32 %v4561_v18, %v1900_v24 }
 0x43c   :  { %v2118_v46 = vmax.f32 %v2086_v42, 0.0  ;;  %v4541_v0 = vmul.f32 %v1344_v23, %v2964_v9  ;;  %2536 = vrsqrt.f32 %v4535_v38  ;;  %v1612_v42 = vmax.f32 %v1580_v19, 0.0 }
 0x43d   :  { %2538 = vrsqrt.f32 %v4545_v41  ;;  %vm1915_vm6 = vweird.f32 %v4535_v38 }
 0x43e   :  { %v2166_v57 = vmul.f32 %v4254_v2, %v2118_v46  ;;  %v1543_v53 = vmul.f32 %v4541_v0, %v4541_v0  ;;  %v1610_v2 = vmax.f32 %v1578_v40, 0.0  ;;  %v1597_v46 = vmax.f32 %v1565_v16, 0.0 }
 0x43f   :  { %v4599_v34 = vadd.f32 1e-05, %v1612_v42 }
 0x440   :  { %v4559_v27 = vadd.f32 %v2201_v12, %v2166_v57  ;;  %v1575_v63 = vsub.f32 %v1511_v3, %v1543_v53  ;;  %v4579_v15 = vadd.f32 1e-05, %v1610_v2  ;;  %v1581_v3 = vsub.f32 %v1517_v49, %v1549_v14 }
 0x441   :  { %v4604_v4 = vadd.f32 1e-05, %v1597_v46 }
 0x442   :  { %v1607_v51 = vmax.f32 %v1575_v63, 0.0  ;;  %v4570_v12 = vpop.eup %2536  ;;  %v1902_v63 = vmul.f32 0.5, %v1901_v30  ;;  %v1613_v21 = vmax.f32 %v1581_v3, 0.0  ;;  %vm1955_vm14 = vweird.f32 %v4579_v15 }
 0x443   :  { %v1346_v35 = vpop.xlane.xlu0 %1345  ;;  %v1910_v60 = vmul.f32 %v4570_v12, %v4535_v38  ;;  %v4585_v6 = vpop.eup %2538  ;;  %vm1916_vm5 = vweird.f32 %v4570_v12 }
 0x444   :  { %v4577_v10 = vadd.f32 1e-05, %v1607_v51  ;;  %v4591_v23 = vmul.f32 %v1346_v35, %v2964_v9  ;;  %v1940_v40 = vmul.f32 %v4585_v6, %v4545_v41  ;;  %v1903_v49 = vsub.f32 1.5, %v1902_v63  ;;  %vm4655_vm8 = vmor %vm1915_vm6, %vm1916_vm5 }
 0x445   :  { %v1911_v59 = vmul.f32 %v4570_v12, %v1910_v60  ;;  %v4616_v30 = vadd.f32 1e-05, %v1613_v21  ;;  %vm1946_vm10 = vweird.f32 %v4585_v6  ;;  %vm1975_vm5 = vweird.f32 %v4599_v34 }
 0x446   :  { %2540 = vrsqrt.f32 %v4577_v10  ;;  %v1544_v28 = vmul.f32 %v4591_v23, %v4591_v23  ;;  %v1941_v16 = vmul.f32 %v4585_v6, %v1940_v40  ;;  %vm1925_vm9 = vweird.f32 %v4577_v10  ;;  %vm4692_vm13 = vmor %vm1945_vm12, %vm1946_vm10 }
 0x447   :  { %2542 = vrsqrt.f32 %v4579_v15  ;;  %v1912_v19 = vmul.f32 0.5, %v1911_v59 }
 0x448   :  { %2544 = vrsqrt.f32 %v4599_v34 }
 0x449   :  { %2546 = vrsqrt.f32 %v4604_v4  ;;  %v1913_v3 = vsub.f32 1.5, %v1912_v19  ;;  %v1637_v19 = vsub.f32 %v4066_v33, %v4499_v58  ;;  %v4653_v58 = vmul.f32 %v4473_v25, %v2964_v9 }
 0x44a   :  { %v1638_v25 = vsub.f32 %v4340_v54, %v4510_v47  ;;  %v1639_v47 = vsub.f32 %v4084_v61, %v4541_v0 }
 0x44b   :  { %v1474_v57 = vpop.xlane.xlu0 %1473 }
 0x44c   :  { %v4597_v53 = vpop.eup %2540  ;;  %v1512_v2 = vmul.f32 %v1474_v57, %v2964_v9  ;;  %v1942_v57 = vmul.f32 0.5, %v1941_v16 }
 0x44d   :  { %v1920_v51 = vmul.f32 %v4597_v53, %v4577_v10  ;;  %v4608_v35 = vpop.eup %2542  ;;  %vm1926_vm7 = vweird.f32 %v4597_v53 }
 0x44e   :  { %v1576_v5 = vsub.f32 %v1512_v2, %v1544_v28  ;;  %v1950_v14 = vmul.f32 %v4608_v35, %v4579_v15  ;;  %v1904_v28 = vmul.f32 %v4561_v18, %v1903_v49  ;;  %v4623_v63 = vpop.eup %2544  ;;  %vm4669_vm11 = vmor %vm1925_vm9, %vm1926_vm7  ;;  %vm1956_vm15 = vweird.f32 %v4608_v35 }
 0x44f   :  { %v1921_v24 = vmul.f32 %v4597_v53, %v1920_v51  ;;  %v4628_v51 = vpop.eup %2546  ;;  %v1970_v49 = vmul.f32 %v4623_v63, %v4599_v34  ;;  %vm4717_vm3 = vmor %vm1955_vm14, %vm1956_vm15  ;;  %v2234_v34 = vld [vmem:[%s4952_s2 + $0x278] sm:$0xff]  ;;  %vm1985_vm9 = vweird.f32 %v4616_v30  ;;  %vm1825_vm15 = vweird.f32 %v4604_v4 }
 0x450   :  { %v1608_v60 = vmax.f32 %v1576_v5, 0.0  ;;  %v1951_v2 = vmul.f32 %v4608_v35, %v1950_v14  ;;  %v1914_v5 = vmul.f32 %v4570_v12, %v1913_v3  ;;  %v1908_v16 = vsel %vm4630_vm4, %v4561_v18, %v1904_v28  ;;  %2261 = vmatpush.msra.mxu2 %v2234_v34 }
 0x451   :  { %v1922_v42 = vmul.f32 0.5, %v1921_v24  ;;  %v1943_v24 = vsub.f32 1.5, %v1942_v57  ;;  %v1820_v33 = vmul.f32 %v4628_v51, %v4604_v4  ;;  %v2021_v3 = vmul.f32 %v1908_v16, %v1637_v19 }
 0x452   :  { %v4618_v46 = vadd.f32 1e-05, %v1608_v60  ;;  %v1952_v18 = vmul.f32 0.5, %v1951_v2  ;;  %v1918_v38 = vsel %vm4655_vm8, %v4570_v12, %v1914_v5  ;;  %v1971_v21 = vmul.f32 %v4623_v63, %v1970_v49 }
 0x453   :  { %v1352_v59 = vpop.xlane.xlu0 %1351  ;;  %v1923_v40 = vsub.f32 1.5, %v1922_v42  ;;  %v1944_v10 = vmul.f32 %v4585_v6, %v1943_v24  ;;  %v2022_v54 = vmul.f32 %v1918_v38, %v1638_v25  ;;  %v1821_v11 = vmul.f32 %v4628_v51, %v1820_v33  ;;  %v1486_v38 = vpop.xlane.xlu1 %1485 }
 0x454   :  { %2548 = vrsqrt.f32 %v4618_v46  ;;  %v4642_v48 = vmul.f32 %v1352_v59, %v2964_v9  ;;  %v1953_v16 = vsub.f32 1.5, %v1952_v18  ;;  %v2054_v24 = vmul.f32 %v4478_v13, %v2021_v3 }
 0x455   :  { %2550 = vrsqrt.f32 %v4616_v30  ;;  %v1924_v60 = vmul.f32 %v4597_v53, %v1923_v40  ;;  %v1641_v49 = vsub.f32 %v4116_v17, %v4507_v43  ;;  %v1972_v0 = vmul.f32 0.5, %v1971_v21 }
 0x456   :  { %v1547_v2 = vmul.f32 %v4642_v48, %v4642_v48  ;;  %v1948_v18 = vsel %vm4692_vm13, %v4585_v6, %v1944_v10  ;;  %v1954_v17 = vmul.f32 %v4608_v35, %v1953_v16  ;;  %v2055_v43 = vmul.f32 %v4478_v13, %v2022_v54 }
 0x457   :  { %v1928_v5 = vsel %vm4669_vm11, %v4597_v53, %v1924_v60  ;;  %vm1935_vm1 = vweird.f32 %v4618_v46  ;;  %v1640_v6 = vsub.f32 %v4404_v36, %v4591_v23  ;;  %v1973_v10 = vsub.f32 1.5, %v1972_v0 }
 0x458   :  { %v2023_v53 = vmul.f32 %v1928_v5, %v1639_v47  ;;  %v1518_v5 = vmul.f32 %v1486_v38, %v2964_v9  ;;  %v2088_v36 = vadd.f32 %v4487_v39, %v2055_v43  ;;  %v1534_v16 = vmul.f32 %v4653_v58, %v4653_v58  ;;  %v2575_v43 = vld [vmem:[%s4952_s2 + $0x1b0] sm:$0xff] }
 0x459   :  { %v1958_v15 = vsel %vm4717_vm3, %v4608_v35, %v1954_v17  ;;  %vm1976_vm4 = vweird.f32 %v4623_v63  ;;  %vm1826_vm7 = vweird.f32 %v4628_v51 }
 0x45a   :  { %v2549_v42 = vpop.eup %2548  ;;  %v2056_v40 = vmul.f32 %v4478_v13, %v2023_v53  ;;  %v1974_v53 = vmul.f32 %v4623_v63, %v1973_v10  ;;  %v2120_v61 = vmax.f32 %v2088_v36, 0.0  ;;  %vm4745_vm6 = vmor %vm1975_vm5, %vm1976_vm4  ;;  %v2576_v10 = vld [vmem:[%s4952_s2 + $0x1b8] sm:$0xff] }
 0x45b   :  { %v1930_v59 = vmul.f32 %v2549_v42, %v4618_v46  ;;  %v1480_v57 = vpop.xlane.xlu0 %1479  ;;  %v4664_v28 = vpop.eup %2550  ;;  %vm1936_vm0 = vweird.f32 %v2549_v42 }
 0x45c   :  { %v1515_v12 = vmul.f32 %v1480_v57, %v2964_v9  ;;  %v1980_v57 = vmul.f32 %v4664_v28, %v4616_v30  ;;  %vm1937_vm2 = vmor %vm1935_vm1, %vm1936_vm0  ;;  %v2089_v47 = vadd.f32 %v4487_v39, %v2056_v40  ;;  %vm1986_vm8 = vweird.f32 %v4664_v28  ;;  %v2230_v30 = vld [vmem:[%s4952_s2 + $0x258] sm:$0xff] }
 0x45d   :  { %v1931_v19 = vmul.f32 %v2549_v42, %v1930_v59  ;;  %v2087_v59 = vadd.f32 %v4487_v39, %v2054_v24  ;;  %v4732_v24 = vmul.f32 0.5, %v1821_v11  ;;  %vm4789_vm11 = vmor %vm1985_vm9, %vm1986_vm8  ;;  %vm2370_vm9 = vcmask 1040384  }
 0x45e   :  { %v1579_v14 = vsub.f32 %v1515_v12, %v1547_v2  ;;  %v1981_v3 = vmul.f32 %v4664_v28, %v1980_v57  ;;  %v2025_v12 = vmul.f32 %v1948_v18, %v1641_v49  ;;  %v1642_v49 = vsub.f32 %v4142_v45, %v4528_v7  ;;  %vm4823_vm0 = vmor %vm1825_vm15, %vm1826_vm7 }
 0x45f   :  { %v1932_v56 = vmul.f32 0.5, %v1931_v19  ;;  %v2119_v54 = vmax.f32 %v2087_v59, 0.0  ;;  %v2121_v38 = vmax.f32 %v2089_v47, 0.0  ;;  %v1823_v40 = vsub.f32 1.5, %v4732_v24 }
 0x460   :  { %v1611_v60 = vmax.f32 %v1579_v14, 0.0  ;;  %v2058_v35 = vmul.f32 %v4478_v13, %v2025_v12  ;;  %v2026_v18 = vmul.f32 %v1958_v15, %v1642_v49  ;;  %v1978_v12 = vsel %vm4745_vm6, %v4623_v63, %v1974_v53 }
 0x461   :  { %v1933_v33 = vsub.f32 1.5, %v1932_v56  ;;  %v2169_v15 = vmul.f32 %v4348_v52, %v2121_v38  ;;  %v2227_v38 = vld [vmem:[%s4952_s2 + $0x240] sm:$0xff]  ;;  %vm2258_vm6 = vcmask 1041409  }
 0x462   :  { %v4702_v41 = vadd.f32 1e-05, %v1611_v60 }
 0x463   :  { %v1934_v25 = vmul.f32 %v2549_v42, %v1933_v33  ;;  %v1358_v56 = vpop.xlane.xlu0 %1357 }
 0x464   :  { %2552 = vrsqrt.f32 %v4702_v41  ;;  %v4712_v2 = vmul.f32 %v1358_v56, %v2964_v9  ;;  %v2233_v56 = vld [vmem:[%s4952_s2 + $0x270] sm:$0xff]  ;;  %vm1965_vm12 = vweird.f32 %v4702_v41 }
 0x465   :  { %v1938_v21 = vsel %vm1937_vm2, %v2549_v42, %v1934_v25  ;;  %v1982_v42 = vmul.f32 0.5, %v1981_v3  ;;  %v2167_v3 = vmul.f32 %v2575_v43, %v2119_v54  ;;  %2262 = vmatpush.msra.mxu2 %v2233_v56 }
 0x466   :  { %v2024_v23 = vmul.f32 %v1938_v21, %v1640_v6  ;;  %v1550_v19 = vmul.f32 %v4712_v2, %v4712_v2  ;;  %v1644_v6 = vsub.f32 %v4178_v8, %v4548_v20  ;;  %v2168_v21 = vmul.f32 %v2576_v10, %v2120_v61  ;;  %v2232_v8 = vld [vmem:[%s4952_s2 + $0x268] sm:$0xff] }
 0x467   :  { %v1983_v11 = vsub.f32 1.5, %v1982_v42  ;;  %v2091_v20 = vadd.f32 %v4487_v39, %v2058_v35  ;;  %2263 = vmatpush.msra.mxu2 %v2232_v8  ;;  %v1643_v61 = vsub.f32 %v4438_v50, %v4642_v48 }
 0x468   :  { %v2057_v14 = vmul.f32 %v4478_v13, %v2024_v23  ;;  %v1582_v57 = vsub.f32 %v1518_v5, %v1550_v19  ;;  %v2059_v23 = vmul.f32 %v4478_v13, %v2026_v18  ;;  %v2203_v19 = vadd.f32 %v4559_v27, %v2167_v3 }
 0x469   :  { %v1984_v63 = vmul.f32 %v4664_v28, %v1983_v11  ;;  %v2028_v54 = vmul.f32 %v1978_v12, %v1644_v6  ;;  %v2123_v49 = vmax.f32 %v2091_v20, 0.0 }
 0x46a   :  { %v4738_v60 = vpop.eup %2552  ;;  %v2090_v0 = vadd.f32 %v4487_v39, %v2057_v14  ;;  %v1614_v33 = vmax.f32 %v1582_v57, 0.0  ;;  %v1645_v14 = vsub.f32 %v4188_v29, %v4573_v32  ;;  %v2204_v52 = vadd.f32 %v2203_v19, %v2168_v21  ;;  %v2224_v19 = vld [vmem:[%s4952_s2 + $0x228] sm:$0xff]  ;;  %v2222_v57 = vld [vmem:[%s4952_s2 + $0x218] sm:$0xff] }
 0x46b   :  { %v1960_v17 = vmul.f32 %v4738_v60, %v4702_v41  ;;  %v1454_v45 = vpop.xlane.xlu0 %1453  ;;  %vm1966_vm10 = vweird.f32 %v4738_v60  ;;  %v1988_v53 = vsel %vm4789_vm11, %v4664_v28, %v1984_v63  ;;  %v2092_v35 = vadd.f32 %v4487_v39, %v2059_v23  ;;  %v2229_v28 = vld [vmem:[%s4952_s2 + $0x250] sm:$0xff] }
 0x46c   :  { %v4752_v59 = vadd.f32 1e-05, %v1614_v33  ;;  %v1502_v25 = vmul.f32 %v1454_v45, %v2964_v9  ;;  %v2122_v46 = vmax.f32 %v2090_v0, 0.0  ;;  %vm1967_vm13 = vmor %vm1965_vm12, %vm1966_vm10  ;;  %v1824_v0 = vmul.f32 %v4628_v51, %v1823_v40 }
 0x46d   :  { %v1961_v9 = vmul.f32 %v4738_v60, %v1960_v17  ;;  %v2061_v41 = vmul.f32 %v4478_v13, %v2028_v54  ;;  %v2029_v11 = vmul.f32 %v1988_v53, %v1645_v14  ;;  %v2228_v17 = vld [vmem:[%s4952_s2 + $0x248] sm:$0xff]  ;;  %v2124_v43 = vmax.f32 %v2092_v35, 0.0 }
 0x46e   :  { %2554 = vrsqrt.f32 %v4752_v59  ;;  %v1566_v5 = vsub.f32 %v1502_v25, %v1534_v16  ;;  %v2231_v16 = vld [vmem:[%s4952_s2 + $0x260] sm:$0xff]  ;;  %v2170_v27 = vmul.f32 %v4368_v62, %v2122_v46  ;;  %v2205_v62 = vadd.f32 %v2204_v52, %v2169_v15 }
 0x46f   :  { %v1962_v36 = vmul.f32 0.5, %v1961_v9  ;;  %2264 = vmatpush.msra.mxu2 %v2231_v16  ;;  %v1828_v4 = vsel %vm4823_vm0, %v4628_v51, %v1824_v0  ;;  %v2094_v25 = vadd.f32 %v4487_v39, %v2061_v41  ;;  %v1629_v40 = vsub.f32 %v4043_v22, %v4556_v55  ;;  %v2226_v9 = vld [vmem:[%s4952_s2 + $0x238] sm:$0xff]  ;;  %v2225_v22 = vld [vmem:[%s4952_s2 + $0x230] sm:$0xff] }
 0x470   :  { %v1598_v42 = vmax.f32 %v1566_v5, 0.0  ;;  %v2206_v50 = vadd.f32 %v2205_v62, %v2170_v27  ;;  %v2172_v46 = vmul.f32 %v4416_v26, %v2124_v43  ;;  %vm1995_vm2 = vweird.f32 %v4752_v59  ;;  %v5071_v43 = vld [vmem:[#allocation2_spill] sm:$0xff] }
 0x471   :  { %v1963_v47 = vsub.f32 1.5, %v1962_v36  ;;  %2265 = vmatpush.msra.mxu2 %v2230_v30  ;;  %v2013_v21 = vmul.f32 %v1828_v4, %v1629_v40  ;;  %v2126_v55 = vmax.f32 %v2094_v25, 0.0  ;;  %v1646_v23 = vsub.f32 %v4210_v31, %v4712_v2  ;;  %v5070_v30 = vld [vmem:[#allocation8_spill] sm:$0xff] }
 0x472   :  { %v4794_v24 = vadd.f32 1e-05, %v1598_v42  ;;  %vm2365_vm12 = vcmask 1041408  }
 0x473   :  { %v1964_v29 = vmul.f32 %v4738_v60, %v1963_v47  ;;  %2266 = vmatpush.msra.mxu2 %v2229_v28  ;;  %v2174_v31 = vmul.f32 %v4432_v1, %v2126_v55  ;;  %v2221_v1 = vld [vmem:[%s4952_s2 + $0x210] sm:$0xff]  ;;  %v2220_v28 = vld [vmem:[%s4952_s2 + $0x208] sm:$0xff]  ;;  %v2315_v55 = vld [vmem:[%s4952_s2 + $0x2d8] sm:$0xff] }
 0x474   :  { %v2555_v32 = vpop.eup %2554  ;;  %2556 = vrsqrt.f32 %v4794_v24  ;;  %vm1835_vm4 = vweird.f32 %v4794_v24 }
 0x475   :  { %v1968_v33 = vsel %vm1967_vm13, %v4738_v60, %v1964_v29  ;;  %v1990_v18 = vmul.f32 %v2555_v32, %v4752_v59  ;;  %v2171_v60 = vmul.f32 %v4396_v44, %v2123_v49  ;;  %2267 = vmatpush.msra.mxu2 %v2228_v17  ;;  %v2062_v44 = vmul.f32 %v4478_v13, %v2029_v11  ;;  %v2219_v11 = vld [vmem:[%s4952_s2 + $0x200] sm:$0xff] }
 0x476   :  { %v2027_v48 = vmul.f32 %v1968_v33, %v1643_v61  ;;  %vm1996_vm1 = vweird.f32 %v2555_v32  ;;  %v2046_v59 = vmul.f32 %v4478_v13, %v2013_v21  ;;  %v1630_v49 = vsub.f32 %v5070_v30, %v4653_v58  ;;  %v2318_v21 = vld [vmem:[%s4952_s2 + $0x2f0] sm:$0xff]  ;;  %v2304_v30 = vld [vmem:[%s4952_s2 + $0x280] sm:$0xff] }
 0x477   :  { %v1991_v45 = vmul.f32 %v2555_v32, %v1990_v18  ;;  %v2207_v6 = vadd.f32 %v2206_v50, %v2171_v60  ;;  %2268 = vmatpush.msra.mxu2 %v2227_v38  ;;  %v2095_v63 = vadd.f32 %v4487_v39, %v2062_v44  ;;  %vm1997_vm14 = vmor %vm1995_vm2, %vm1996_vm1  ;;  %vm2376_vm13 = vcmask 1024  }
 0x478   :  { %v2060_v3 = vmul.f32 %v4478_v13, %v2027_v48  ;;  %v2079_v27 = vadd.f32 %v4487_v39, %v2046_v59 }
 0x479   :  { %v1992_v34 = vmul.f32 0.5, %v1991_v45  ;;  %2269 = vmatpush.msra.mxu2 %v2226_v9  ;;  %v2208_v26 = vadd.f32 %v2207_v6, %v2172_v46  ;;  %v2127_v2 = vmax.f32 %v2095_v63, 0.0  ;;  %v2317_v46 = vld [vmem:[%s4952_s2 + $0x2e8] sm:$0xff]  ;;  %v2314_v63 = vld [vmem:[%s4952_s2 + $0x2d0] sm:$0xff] }
 0x47a   :  { %v2557_v56 = vpop.eup %2556  ;;  %v2093_v12 = vadd.f32 %v4487_v39, %v2060_v3  ;;  %v2111_v0 = vmax.f32 %v2079_v27, 0.0 }
 0x47b   :  { %v1993_v10 = vsub.f32 1.5, %v1992_v34  ;;  %v1830_v51 = vmul.f32 %v2557_v56, %v4794_v24  ;;  %2270 = vmatpush.msra.mxu2 %v2225_v22  ;;  %vm1836_vm3 = vweird.f32 %v2557_v56  ;;  %v2144_v24 = vld [vmem:[%s4952_s2 + $0x1f8] sm:$0xff]  ;;  %v2316_v22 = vld [vmem:[%s4952_s2 + $0x2e0] sm:$0xff] }
 0x47c   :  { %v2125_v5 = vmax.f32 %v2093_v12, 0.0  ;;  %vm1837_vm5 = vmor %vm1835_vm4, %vm1836_vm3 }
 0x47d   :  { %v1994_v8 = vmul.f32 %v2555_v32, %v1993_v10  ;;  %v1831_v20 = vmul.f32 %v2557_v56, %v1830_v51  ;;  %2271 = vmatpush.msra.mxu2 %v2224_v19  ;;  %v2319_v51 = vld [vmem:[%s4952_s2 + $0x2f8] sm:$0xff]  ;;  %v2312_v19 = vld [vmem:[%s4952_s2 + $0x2c0] sm:$0xff] }
 0x47e   :  { %v2173_v36 = vmul.f32 %v4426_v37, %v2125_v5  ;;  %v2223_v37 = vld [vmem:[%s4952_s2 + $0x220] sm:$0xff]  ;;  %2322 = vmatpush.msra.mxu3 %v2319_v51 }
 0x47f   :  { %v1998_v15 = vsel %vm1997_vm14, %v2555_v32, %v1994_v8  ;;  %v1832_v42 = vmul.f32 0.5, %v1831_v20  ;;  %2272 = vmatpush.msra.mxu2 %v2223_v37  ;;  %v2143_v32 = vld [vmem:[%s4952_s2 + $0x1f0] sm:$0xff]  ;;  %v2309_v37 = vld [vmem:[%s4952_s2 + $0x2a8] sm:$0xff] }
 0x480   :  { %v2030_v16 = vmul.f32 %v1998_v15, %v1646_v23  ;;  %v2209_v54 = vadd.f32 %v2208_v26, %v2173_v36  ;;  %v2175_v58 = vmul.f32 %v2143_v32, %v2127_v2  ;;  %v2159_v45 = vmul.f32 %v2143_v32, %v2111_v0  ;;  %2323 = vmatpush.msra.mxu3 %v2318_v21  ;;  %v2425_v8 = vld [vmem:[%s4952_s2 + $0x316] ss:$0 sm:$0xff]  ;;  %v2313_v23 = vld [vmem:[%s4952_s2 + $0x2c8] sm:$0xff]  ;;  %v2369_v0 = vld [vmem:[%s4952_s2 + $0x319] sm:$0x1] }
 0x481   :  { %v1833_v47 = vsub.f32 1.5, %v1832_v42  ;;  %2273 = vmatpush.msra.mxu2 %v2222_v57  ;;  %v2311_v42 = vld [vmem:[%s4952_s2 + $0x2b8] sm:$0xff]  ;;  %v2306_v2 = vld [vmem:[%s4952_s2 + $0x290] sm:$0xff] }
 0x482   :  { %v2063_v14 = vmul.f32 %v4478_v13, %v2030_v16  ;;  %v2210_v29 = vadd.f32 %v2209_v54, %v2174_v31  ;;  %v2190_v3 = vadd.f32 %v5071_v43, %v2159_v45  ;;  %2324 = vmatpush.msra.mxu3 %v2317_v46  ;;  %v2310_v16 = vld [vmem:[%s4952_s2 + $0x2b0] sm:$0xff]  ;;  %v2307_v31 = vld [vmem:[%s4952_s2 + $0x298] sm:$0xff] }
 0x483   :  { %v1834_v52 = vmul.f32 %v2557_v56, %v1833_v47  ;;  %2274 = vmatpush.msra.mxu2 %v2221_v1  ;;  %v2308_v47 = vld [vmem:[%s4952_s2 + $0x2a0] sm:$0xff] }
 0x484   :  { %v2096_v53 = vadd.f32 %v4487_v39, %v2063_v14  ;;  %v2211_v33 = vadd.f32 %v2210_v29, %v2175_v58  ;;  %2325 = vmatpush.msra.mxu3 %v2316_v22 }
 0x485   :  { %v1838_v35 = vsel %vm1837_vm5, %v2557_v56, %v1834_v52  ;;  %2275 = vmatpush.msra.mxu2 %v2220_v28  ;;  %v2305_v52 = vld [vmem:[%s4952_s2 + $0x288] sm:$0xff] }
 0x486   :  { %v2128_v62 = vmax.f32 %v2096_v53, 0.0  ;;  %v2014_v61 = vmul.f32 %v1838_v35, %v1630_v49  ;;  %2326 = vmatpush.msra.mxu3 %v2315_v55 }
 0x487   :  { %2276 = vmatpush.msra.mxu2 %v2219_v11 }
 0x488   :  { %v2176_v41 = vmul.f32 %v2144_v24, %v2128_v62  ;;  %v2047_v18 = vmul.f32 %v4478_v13, %v2014_v61  ;;  %2327 = vmatpush.msra.mxu3 %v2314_v63 }
 0x48a   :  { %v2212_v50 = vadd.f32 %v2211_v33, %v2176_v41  ;;  %v2080_v48 = vadd.f32 %v4487_v39, %v2047_v18  ;;  %2328 = vmatpush.msra.mxu3 %v2313_v23  ;;  %v2426_v41 = vld [vmem:[%s4952_s2 + $0x317] ss:$0 sm:$0xff]  ;;  %v2371_v33 = vsel %vm2370_vm9, %v2369_v0, 0.0 }
 0x48b   :  { %2372 = vadd.xlane.f32.xlu2 %v2371_v33 }
 0x48c   :  { %v2112_v17 = vmax.f32 %v2080_v48, 0.0  ;;  %v2213_v7 = vrot.slane %v2212_v50, 4  ;;  %2329 = vmatpush.msra.mxu3 %v2312_v19 }
 0x48e   :  { %v2160_v60 = vmul.f32 %v2144_v24, %v2112_v17  ;;  %v2214_v38 = vadd.f32 %v2213_v7, %v2212_v50  ;;  %2330 = vmatpush.msra.mxu3 %v2311_v42 }
 0x490   :  { %v2191_v4 = vadd.f32 %v2190_v3, %v2160_v60  ;;  %v2215_v25 = vrot.slane %v2214_v38, 2  ;;  %2331 = vmatpush.msra.mxu3 %v2310_v16 }
 0x492   :  { %v2192_v34 = vrot.slane %v2191_v4, 4  ;;  %v2216_v56 = vadd.f32 %v2215_v25, %v2214_v38  ;;  %2332 = vmatpush.msra.mxu3 %v2309_v37 }
 0x494   :  { %v2193_v13 = vadd.f32 %v2192_v34, %v2191_v4  ;;  %v2217_v6 = vrot.slane %v2216_v56, 1  ;;  %2333 = vmatpush.msra.mxu3 %v2308_v47 }
 0x496   :  { %v2194_v40 = vrot.slane %v2193_v13, 2  ;;  %v2218_v39 = vadd.f32 %v2217_v6, %v2216_v56  ;;  %2334 = vmatpush.msra.mxu3 %v2307_v31 }
 0x498   :  { %v2195_v44 = vadd.f32 %v2194_v40, %v2193_v13  ;;  %2335 = vmatpush.msra.mxu3 %v2306_v2 }
 0x49a   :  { %v2196_v12 = vrot.slane %v2195_v44, 1  ;;  %2336 = vmatpush.msra.mxu3 %v2305_v52 }
 0x49c   :  { %v2197_v9 = vadd.f32 %v2196_v12, %v2195_v44  ;;  %2337 = vmatpush.msra.mxu3 %v2304_v30  ;;  %v2427_v44 = vld [vmem:[%s4952_s2 + $0x318] ss:$0 sm:$0xff] }
 0x49e   :  { %v2259_v10 = vsel %vm2258_vm6, %v2218_v39, %v2197_v9 }
 0x49f   :  { %2277 = vmatmul.f32.vlgmr.msra.gmra.mxu2 %v2259_v10 }
 0x4ac   :  { %v2253_v5 = vpop.f32.mrf.mxu3 }
 0x4fe   :  { %v2373_v10 = vpop.xlane.xlu2 %2372 }
 0x4ff   :  { %v2374_v51 = vperm.slane %v2373_v10, 0 }
 0x522   :  { %v2278_v20 = vpop.f32.mrf.mxu2 }
 0x523   :  { %v2279_v36 = vadd.f32 %v2278_v20, %v2253_v5 }
 0x525   :  { %v2283_v26 = vadd.f32 %v2425_v8, %v2279_v36 }
 0x527   :  { %v2287_v15 = vand.u32 2147483647, %v2283_v26  ;;  %v2284_v24 = vmax.f32 %v2283_v26, 0.0  ;;  %vm2285_vm8 = vcmp.ne.f32.partialorder %v2283_v26, %v2283_v26 }
 0x529   :  { %v2288_v59 = vsub.f32 0.0, %v2287_v15 }
 0x52b   :  { %v2289_v54 = vmul.f32 1.442695, %v2288_v59 }
 0x52d   :  { %2558 = vpow2.f32 %v2289_v54 }
 0x533   :  { %v2559_v14 = vpop.eup %2558 }
 0x534   :  { %v2291_v57 = vadd.f32 1.0, %v2559_v14  ;;  %v2294_v27 = vmul.f32 -0.5, %v2559_v14  ;;  %v2297_v53 = vand.u32 2147483647, %v2559_v14 }
 0x536   :  { %2560 = vlog2.f32 %v2291_v57  ;;  %v2295_v49 = vadd.f32 1.0, %v2294_v27  ;;  %vm2298_vm7 = vcmp.lt.f32.partialorder %v2297_v53, 0.0004427343 }
 0x538   :  { %v2296_v32 = vmul.f32 %v2559_v14, %v2295_v49 }
 0x53c   :  { %v2561_v29 = vpop.eup %2560 }
 0x53d   :  { %v2293_v1 = vmul.f32 0.6931472, %v2561_v29 }
 0x53f   :  { %v2299_v35 = vsel %vm2298_vm7, %v2296_v32, %v2293_v1 }
 0x540   :  { %v2300_v62 = vadd.f32 %v2299_v35, %v2284_v24 }
 0x542   :  { %v2301_v58 = vsel %vm2285_vm8, %v2283_v26, %v2300_v62 }
 0x543   :  { %2562 = vtanh.f32 %v2301_v58 }
 0x549   :  { %v2563_v61 = vpop.eup %2562 }
 0x54a   :  { %v2303_v28 = vmul.f32 %v2563_v61, %v2283_v26 }
 0x54c   :  { %2338 = vmatmul.f32.vlgmr.msra.gmra.mxu3 %v2303_v28 }
 0x5cf   :  { %v2339_v18 = vpop.f32.mrf.mxu3 }
 0x5d0   :  { %v2340_v11 = vadd.f32 %v2426_v41, %v2339_v18 }
 0x5d2   :  { %v2345_v50 = vand.u32 2147483647, %v2340_v11  ;;  %v2342_v34 = vmax.f32 %v2340_v11, 0.0  ;;  %vm2343_vm11 = vcmp.ne.f32.partialorder %v2340_v11, %v2340_v11 }
 0x5d4   :  { %v2346_v48 = vsub.f32 0.0, %v2345_v50 }
 0x5d6   :  { %v2347_v17 = vmul.f32 1.442695, %v2346_v48 }
 0x5d8   :  { %2564 = vpow2.f32 %v2347_v17 }
 0x5de   :  { %v2565_v45 = vpop.eup %2564 }
 0x5df   :  { %v2349_v7 = vadd.f32 1.0, %v2565_v45  ;;  %v2352_v60 = vmul.f32 -0.5, %v2565_v45  ;;  %v2355_v3 = vand.u32 2147483647, %v2565_v45 }
 0x5e1   :  { %2566 = vlog2.f32 %v2349_v7  ;;  %v2353_v43 = vadd.f32 1.0, %v2352_v60  ;;  %vm2356_vm10 = vcmp.lt.f32.partialorder %v2355_v3, 0.0004427343 }
 0x5e3   :  { %v2354_v25 = vmul.f32 %v2565_v45, %v2353_v43 }
 0x5e7   :  { %v2567_v38 = vpop.eup %2566 }
 0x5e8   :  { %v2351_v4 = vmul.f32 0.6931472, %v2567_v38 }
 0x5ea   :  { %v2357_v13 = vsel %vm2356_vm10, %v2354_v25, %v2351_v4 }
 0x5eb   :  { %v2358_v56 = vadd.f32 %v2357_v13, %v2342_v34 }
 0x5ed   :  { %v2359_v40 = vsel %vm2343_vm11, %v2340_v11, %v2358_v56 }
 0x5ee   :  { %2568 = vtanh.f32 %v2359_v40 }
 0x5f4   :  { %v2569_v6 = vpop.eup %2568 }
 0x5f5   :  { %v2361_v12 = vmul.f32 %v2569_v6, %v2340_v11 }
 0x5f7   :  { %v2364_v9 = vmul.f32 %v2427_v44, %v2361_v12 }
 0x5f9   :  { %v2366_v39 = vsel %vm2365_vm12, %v2364_v9, 0.0 }
 0x5fa   :  { %2367 = vadd.xlane.f32.xlu0 %v2366_v39 }
 0x66d   :  { %v2368_v21 = vpop.xlane.xlu0 %2367 }
 0x66e   :  { %v2375_v46 = vadd.f32 %v2374_v51, %v2368_v21 }
 0x670   :  { %2377 = vst.msk [vmem:[%s4955_s3] sm:$0x3] %vm2376_vm13, %v2375_v46 }

</bundles_post_ra>
